<compile_context>
chip_gen: v6e
topology: v6e:2x2x1
jax: 0.10.0
libtpu: 0.0.40
codegen_flags: <defaults>
</compile_context>

<pallas_src>
import jax
import jax.numpy as jnp
from jax import lax
from jax.experimental import pallas as pl
from jax.experimental.pallas import tpu as pltpu

# ----------------------------- configuration --------------------------------
B = 2              # batch
STATE_LEN = 8      # number of state knowledge slots (S)
SEQ_LEN = 8        # pv_r_u encoded sequence length (T)
HIDDEN_DIM = 32    # hidden_dim
EMBED_DIM = 32     # embed_dim (== GRU hidden size of rnn_enc_cell)
GRAPH_DIM = 32     # VO.GATConfig.embed_dim / node_embed_dim
KNOW_VOCAB = 50    # know_vocab_size
WORD_VOCAB = 100   # word vocab for embedder
N_INTENTION = 4    # TO.n_intention
ACTION_NUM = 3     # action_num
NODE_NUM = 16      # graph nodes per example
NODE_VOCAB = 64    # node id vocabulary
EDGE_NUM = 5       # edge type vocabulary
FLAG_NUM = 2       # head-flag vocabulary
LANE = 128         # TPU lane width; small heads padded to this

F32 = jnp.float32


def _vmem_spec():
    return pl.BlockSpec(memory_space=pltpu.MemorySpace.VMEM)


def _smem_spec():
    return pl.BlockSpec(memory_space=pltpu.MemorySpace.SMEM)


# ----------------------------- in-kernel helpers ------------------------------
def _softmax_lanes(logits):
    """Row softmax over the last (lane) axis; EUP reciprocal."""
    l = logits - jnp.max(logits, axis=-1, keepdims=True)
    e = jnp.exp(l)
    return e * pl.reciprocal(jnp.sum(e, axis=-1, keepdims=True), approx=True)


def _first_argmax_onehot(logits):
    """one_hot(argmax(logits, -1)) with first-index tie-breaking (torch semantics)."""
    n = logits.shape[-1]
    iota = lax.broadcasted_iota(jnp.int32, logits.shape, len(logits.shape) - 1)
    mx = jnp.max(logits, axis=-1, keepdims=True)
    idx = jnp.min(jnp.where(logits >= mx, iota, n), axis=-1, keepdims=True)
    return (iota == idx).astype(F32)


def _bilinear_ctx(query, w, keys, mask):
    """Masked bilinear attention: softmax_n((query @ w) . keys[n]) -> sum_n keys."""
    proj = jnp.dot(query, w, preferred_element_type=F32)[:, None, :]          # [B,1,D]
    sc = jnp.einsum('bqd,bnd->bqn', proj, keys, preferred_element_type=F32)   # [B,1,N]
    m = mask[:, None, :] > 0.5
    sc = jnp.where(m, sc, -1e9)
    sc = sc - jnp.max(sc, axis=-1, keepdims=True)
    e = jnp.where(m, jnp.exp(sc), 0.0)
    a = e * pl.reciprocal(jnp.sum(e, axis=-1, keepdims=True) + 1e-9, approx=True)
    return jnp.einsum('bqn,bnd->bqd', a, keys, preferred_element_type=F32)[:, 0, :]


# ----------------------------- fused kernel -----------------------------------
def _prior_policy_kernel(
    # per-forward data
    state_ref,        # [B,S]   int32
    hidden_ref,       # [1,B,H] f32
    pvru_ref,         # [B,T,H] f32
    pvlen_ref,        # [B,1]   int32
    head_nodes_ref,   # [B,N]   int32
    head_flag_ref,    # [B,N]   int32
    edge_type_ref,    # [B,N,N] int32
    adj_ref,          # [B,N,N] f32
    node_eff_ref,     # [B,N]   f32
    # packed parameters
    know_embed_ref,   # [K,E]       (embed_table[know2word] pre-composed)
    node_embed_ref,   # [V,G]
    flag_embed_ref,   # [F,G]
    gru_wih_ref,      # [3,E,E]     gates (r,z,n)
    gru_whh_ref,      # [3,E,E]
    gru_bih_ref,      # [3,1,E]
    gru_bhh_ref,      # [3,1,E]
    gat_wa_ref,       # [G,G]
    gat_wv_ref,       # [G,G]
    attn_w_ref,       # [4,H,32]    (embed, hidden, graph, act)
    int_w_ref,        # [4,32,LANE] (rows: hidden/state_ctx/utt_ctx/graph_ctx)
    int_b_ref,        # [1,LANE]    pads at -1e9
    ht_wh_ref,        # [H,H]
    ht_wi_ref,        # [LANE,H]    pad rows zero
    ht_b_ref,         # [1,H]
    act_w_ref,        # [2,32,A*LANE]
    act_b_ref,        # [1,A*LANE]  pads at -1e9
    edge_bias_ref,    # [EDGE_NUM]  f32 scalars (SMEM)
    # lane-dense outputs (wrapper slices back)
    intent_out_ref,   # [B,LANE]
    action_out_ref,   # [B,A,LANE]
    gumbel_out_ref,   # [B,A,LANE]
    # scratch
    enc_ref,          # [B,S,E]  per-step GRU hidden states
):
    bsz, s_len = state_ref.shape
    k_voc, e_dim = know_embed_ref.shape
    n_voc, g_dim = node_embed_ref.shape
    f_num = flag_embed_ref.shape[0]
    t_len = pvru_ref.shape[1]
    n_nodes = head_nodes_ref.shape[1]
    a_num = action_out_ref.shape[1]
    lane = intent_out_ref.shape[1]

    hidden = hidden_ref[0]                                       # [B,H]

    # 1) state_word = loc2glo(state); state_embed = embedder(state_word)
    #    fused as a one-hot MXU matmul against a pre-composed [K,E] table.
    st = state_ref[...]
    k_iota = lax.broadcasted_iota(jnp.int32, (bsz, s_len, k_voc), 2)
    st_onehot = (k_iota == st[:, :, None]).astype(F32)           # [B,S,K]
    know_tbl = jnp.broadcast_to(know_embed_ref[...], (bsz, k_voc, e_dim))
    state_embed = jnp.einsum('bsk,bke->bse', st_onehot, know_tbl,
                             preferred_element_type=F32)         # [B,S,E]

    # 2) stepwise GRU over state slots (rnn_enc_cell loop).
    #    Input projections hoisted out of the recurrence; only h @ W_hh inside.
    def in_proj(g):
        w = jnp.broadcast_to(gru_wih_ref[g], (bsz, e_dim, e_dim))
        return jnp.einsum('bse,bef->bsf', state_embed, w,
                          preferred_element_type=F32) + gru_bih_ref[g]

    gi_r, gi_z, gi_n = in_proj(0), in_proj(1), in_proj(2)        # [B,S,E] each
    whr, whz, whn = gru_whh_ref[0], gru_whh_ref[1], gru_whh_ref[2]
    bhr = jnp.broadcast_to(gru_bhh_ref[0], (bsz, e_dim))
    bhz = jnp.broadcast_to(gru_bhh_ref[1], (bsz, e_dim))
    bhn = jnp.broadcast_to(gru_bhh_ref[2], (bsz, e_dim))

    h = jnp.zeros((bsz, e_dim), F32)
    for t in range(s_len):                                       # static unroll
        r = jax.nn.sigmoid(gi_r[:, t, :]
                           + jnp.dot(h, whr, preferred_element_type=F32) + bhr)
        z = jax.nn.sigmoid(gi_z[:, t, :]
                           + jnp.dot(h, whz, preferred_element_type=F32) + bhz)
        n = jnp.tanh(gi_n[:, t, :]
                     + r * (jnp.dot(h, whn, preferred_element_type=F32) + bhn))
        h = (1.0 - z) * n + z * h
        enc_ref[:, t, :] = h
    state_enc = enc_ref[...]                                     # [B,S,E]

    # 3) MyGAT node embedding (single-head approximation) + GraphAttn context.
    hn = head_nodes_ref[...]
    v_iota = lax.broadcasted_iota(jnp.int32, (bsz, n_nodes, n_voc), 2)
    hn_onehot = (v_iota == hn[:, :, None]).astype(F32)
    node_tbl = jnp.broadcast_to(node_embed_ref[...], (bsz, n_voc, g_dim))
    node_feat = jnp.einsum('bnv,bvg->bng', hn_onehot, node_tbl,
                           preferred_element_type=F32)
    hf = head_flag_ref[...]
    f_iota = lax.broadcasted_iota(jnp.int32, (bsz, n_nodes, f_num), 2)
    hf_onehot = (f_iota == hf[:, :, None]).astype(F32)
    flag_tbl = jnp.broadcast_to(flag_embed_ref[...], (bsz, f_num, g_dim))
    node_feat = node_feat + jnp.einsum('bnf,bfg->bng', hf_onehot, flag_tbl,
                                       preferred_element_type=F32)

    et = edge_type_ref[...]
    ebias = jnp.zeros((bsz, n_nodes, n_nodes), F32)
    for k in range(edge_bias_ref.shape[0]):                      # EDGE_NUM selects
        ebias = ebias + jnp.where(et == k, edge_bias_ref[k], 0.0)

    adj = adj_ref[...] > 0.5
    wa = jnp.broadcast_to(gat_wa_ref[...], (bsz, g_dim, g_dim))
    wv = jnp.broadcast_to(gat_wv_ref[...], (bsz, g_dim, g_dim))
    q = jnp.einsum('bng,bgf->bnf', node_feat, wa, preferred_element_type=F32)
    v = jnp.einsum('bng,bgf->bnf', node_feat, wv, preferred_element_type=F32)
    sc = jnp.einsum('big,bjg->bij', q, node_feat, preferred_element_type=F32) + ebias
    sc = jnp.where(adj, sc, -1e9)
    sc = sc - jnp.max(sc, axis=-1, keepdims=True)
    e = jnp.where(adj, jnp.exp(sc), 0.0)
    attn = e * pl.reciprocal(jnp.sum(e, axis=-1, keepdims=True) + 1e-9, approx=True)
    node_embedding = jnp.einsum('bij,bjg->big', attn, v,
                                preferred_element_type=F32) + node_feat

    graph_ctx = _bilinear_ctx(hidden, attn_w_ref[2], node_embedding, node_eff_ref[...])

    # 4) intention detector
    # TODO(synk): IntentionDetector internals unspecified upstream; approximated as
    # attention pooling of state_enc / pv_r_u_enc + graph context -> linear -> softmax.
    # TODO(synk): upstream may mask padded state slots; all-ones state mask kept here.
    state_mask = jnp.ones((bsz, s_len), F32)
    state_ctx = _bilinear_ctx(hidden, attn_w_ref[0], state_enc, state_mask)
    t_iota = lax.broadcasted_iota(jnp.int32, (bsz, t_len), 1)
    seq_mask = (t_iota < pvlen_ref[...]).astype(F32)
    utt_ctx = _bilinear_ctx(hidden, attn_w_ref[1], pvru_ref[...], seq_mask)

    int_logits = (jnp.dot(hidden, int_w_ref[0], preferred_element_type=F32)
                  + jnp.dot(state_ctx, int_w_ref[1], preferred_element_type=F32)
                  + jnp.dot(utt_ctx, int_w_ref[2], preferred_element_type=F32)
                  + jnp.dot(graph_ctx, int_w_ref[3], preferred_element_type=F32)
                  + int_b_ref[...])                              # [B,LANE], pads -1e9
    intent_out_ref[...] = _softmax_lanes(int_logits)
    # eval path: gth_intention = one_hot(argmax(intention)); training-stage
    # gumbel-softmax (a_tau) branch intentionally omitted.
    gth_intention = _first_argmax_onehot(int_logits)             # [B,LANE], pads 0

    # 5) hidden = hidden_type_linear(cat([hidden.squeeze(0), gth_intention]))
    #    weight split by rows so no lane concat is needed.
    hidden2 = (jnp.dot(hidden, ht_wh_ref[...], preferred_element_type=F32)
               + jnp.dot(gth_intention, ht_wi_ref[...], preferred_element_type=F32)
               + ht_b_ref[...])                                  # [B,H]

    # 6) basic policy network
    # TODO(synk): BasicPolicyNetwork internals unspecified upstream; approximated as
    # attention over state_enc + projection to [action_num, know_vocab] + softmax.
    act_ctx = _bilinear_ctx(hidden2, attn_w_ref[3], state_enc, state_mask)
    act_logits = (jnp.dot(hidden2, act_w_ref[0], preferred_element_type=F32)
                  + jnp.dot(act_ctx, act_w_ref[1], preferred_element_type=F32)
                  + act_b_ref[...])                              # [B, A*LANE]
    for a in range(a_num):                                       # static unroll
        la = act_logits[:, a * lane:(a + 1) * lane]              # aligned 128-lane slice
        action_out_ref[:, a, :] = _softmax_lanes(la)
        gumbel_out_ref[:, a, :] = _first_argmax_onehot(la)


# ----------------------------- parameters ------------------------------------
def init_params(key):
    ks = jax.random.split(key, 24)
    nrm = lambda k, shp, s=0.1: (s * jax.random.normal(k, shp)).astype(F32)
    p = {}
    # lg_interpreter.loc2glo + embedder
    p['know2word'] = (jax.random.randint(ks[0], (KNOW_VOCAB,), 0, WORD_VOCAB)
                      .astype(jnp.int32))
    p['embed_table'] = nrm(ks[1], (WORD_VOCAB, EMBED_DIM))
    # rnn_enc_cell (GRU, input=embed_dim, hidden=embed_dim), stored transposed
    p['gru_w_ih_t'] = nrm(ks[2], (EMBED_DIM, 3 * EMBED_DIM))
    p['gru_w_hh_t'] = nrm(ks[3], (EMBED_DIM, 3 * EMBED_DIM))
    p['gru_b_ih'] = nrm(ks[4], (1, 3 * EMBED_DIM))
    p['gru_b_hh'] = nrm(ks[5], (1, 3 * EMBED_DIM))
    # MyGAT
    p['node_embed'] = nrm(ks[6], (NODE_VOCAB, GRAPH_DIM))
    p['flag_embed'] = nrm(ks[7], (FLAG_NUM, GRAPH_DIM))
    p['edge_bias'] = nrm(ks[8], (EDGE_NUM,))
    p['gat_wa'] = nrm(ks[9], (GRAPH_DIM, GRAPH_DIM))
    p['gat_wv'] = nrm(ks[10], (GRAPH_DIM, GRAPH_DIM))
    # attention modules (bilinear): Attention(query_dim, key_dim)
    p['graph_attn_w'] = nrm(ks[11], (HIDDEN_DIM, GRAPH_DIM))    # GraphAttn
    p['embed_attn_w'] = nrm(ks[12], (HIDDEN_DIM, EMBED_DIM))    # embed_attn
    p['hidden_attn_w'] = nrm(ks[13], (HIDDEN_DIM, HIDDEN_DIM))  # hidden_attn
    # intention detector head
    int_in = HIDDEN_DIM + EMBED_DIM + HIDDEN_DIM + GRAPH_DIM
    p['int_w'] = nrm(ks[14], (int_in, N_INTENTION))
    p['int_b'] = nrm(ks[15], (1, N_INTENTION))
    # hidden_type_linear: Linear(hidden_dim + n_intention, hidden_dim)
    p['ht_w'] = nrm(ks[16], (HIDDEN_DIM + N_INTENTION, HIDDEN_DIM))
    p['ht_b'] = nrm(ks[17], (1, HIDDEN_DIM))
    # basic policy network head
    p['act_attn_w'] = nrm(ks[18], (HIDDEN_DIM, EMBED_DIM))
    p['act_w'] = nrm(ks[19], (HIDDEN_DIM + EMBED_DIM, ACTION_NUM * KNOW_VOCAB))
    p['act_b'] = nrm(ks[20], (1, ACTION_NUM * KNOW_VOCAB))
    return p


def pack_params(p):
    """One-time (init-time) repack into kernel-ready, lane-padded layouts."""
    assert HIDDEN_DIM == EMBED_DIM == GRAPH_DIM
    assert N_INTENTION <= LANE and KNOW_VOCAB <= LANE
    e = EMBED_DIM
    kp = {}
    kp['know_embed'] = p['embed_table'][p['know2word']].astype(F32)       # [K,E]
    kp['node_embed'] = p['node_embed']
    kp['flag_embed'] = p['flag_embed']
    wih, whh = p['gru_w_ih_t'], p['gru_w_hh_t']
    kp['gru_wih'] = jnp.stack([wih[:, 0:e], wih[:, e:2 * e], wih[:, 2 * e:3 * e]], 0)
    kp['gru_whh'] = jnp.stack([whh[:, 0:e], whh[:, e:2 * e], whh[:, 2 * e:3 * e]], 0)
    bih, bhh = p['gru_b_ih'], p['gru_b_hh']
    kp['gru_bih'] = jnp.stack([bih[:, 0:e], bih[:, e:2 * e], bih[:, 2 * e:3 * e]], 0)
    kp['gru_bhh'] = jnp.stack([bhh[:, 0:e], bhh[:, e:2 * e], bhh[:, 2 * e:3 * e]], 0)
    kp['gat_wa'], kp['gat_wv'] = p['gat_wa'], p['gat_wv']
    kp['edge_bias'] = p['edge_bias']                                      # [EDGE_NUM]
    kp['attn_ws'] = jnp.stack([p['embed_attn_w'], p['hidden_attn_w'],
                               p['graph_attn_w'], p['act_attn_w']], 0)    # [4,H,32]
    # intention head: rows [hidden|state_ctx|utt_ctx|graph_ctx]; cols padded to 128
    iw4 = p['int_w'].reshape(4, HIDDEN_DIM, N_INTENTION)
    kp['int_w'] = jnp.zeros((4, HIDDEN_DIM, LANE), F32).at[:, :, :N_INTENTION].set(iw4)
    kp['int_b'] = jnp.full((1, LANE), -1e9, F32).at[:, :N_INTENTION].set(p['int_b'])
    # hidden_type_linear: split rows into hidden part / (128-padded) intention part
    htw = p['ht_w']
    kp['ht_wh'] = htw[:HIDDEN_DIM]
    kp['ht_wi'] = jnp.zeros((LANE, HIDDEN_DIM), F32).at[:N_INTENTION].set(htw[HIDDEN_DIM:])
    kp['ht_b'] = p['ht_b']
    # action head: rows split hidden2 / act_ctx; cols [A,K] padded to [A,128]
    aw3 = p['act_w'].reshape(HIDDEN_DIM + EMBED_DIM, ACTION_NUM, KNOW_VOCAB)
    aw_pad = (jnp.zeros((HIDDEN_DIM + EMBED_DIM, ACTION_NUM, LANE), F32)
              .at[:, :, :KNOW_VOCAB].set(aw3)
              .reshape(HIDDEN_DIM + EMBED_DIM, ACTION_NUM * LANE))
    kp['act_w'] = jnp.stack([aw_pad[:HIDDEN_DIM], aw_pad[HIDDEN_DIM:]], 0)  # [2,32,384]
    ab3 = p['act_b'].reshape(1, ACTION_NUM, KNOW_VOCAB)
    kp['act_b'] = (jnp.full((1, ACTION_NUM, LANE), -1e9, F32)
                   .at[:, :, :KNOW_VOCAB].set(ab3)
                   .reshape(1, ACTION_NUM * LANE))
    return kp


def build_graph(key):
    # TODO(synk): graph_db.graph_construct is a host-side knowledge-DB lookup;
    # synthesize deterministic graph tensors of matching shapes instead.
    k1, k2, k3, k4, k5 = jax.random.split(key, 5)
    head_nodes = jax.random.randint(k1, (B, NODE_NUM), 0, NODE_VOCAB).astype(jnp.int32)
    head_flag_bit = jax.random.randint(k2, (B, NODE_NUM), 0, FLAG_NUM).astype(jnp.int32)
    edge_type = jax.random.randint(k3, (B, NODE_NUM, NODE_NUM), 0, EDGE_NUM).astype(jnp.int32)
    adj = (jax.random.uniform(k4, (B, NODE_NUM, NODE_NUM)) < 0.3).astype(F32)
    eye = jnp.eye(NODE_NUM, dtype=F32)[None]
    adj = jnp.maximum(adj, eye)                                  # self loops
    node_eff = (jax.random.uniform(k5, (B, NODE_NUM)) < 0.8).astype(F32)
    node_eff = node_eff.at[:, 0].set(1.0)                        # >=1 valid node
    return dict(head_nodes=head_nodes, head_flag_bit=head_flag_bit,
                edge_type=edge_type, adj=adj, node_efficient=node_eff)


# ----------------------------- forward pass -----------------------------------
@jax.jit
def prior_policy_forward(kp, hidden, state, pv_r_u_enc, pv_r_u_len, graph):
    pv_len = pv_r_u_len.astype(jnp.int32).reshape(-1, 1)
    out_shapes = (
        jax.ShapeDtypeStruct((B, LANE), F32),
        jax.ShapeDtypeStruct((B, ACTION_NUM, LANE), F32),
        jax.ShapeDtypeStruct((B, ACTION_NUM, LANE), F32),
    )
    # TODO(synk): grid=() runs on one TensorCore; on v7x a batch-split grid with
    # dimension_semantics=("parallel",) could use the second TC, but at B=2 and
    # 32-dim features the whole forward is microseconds, so single-core is kept
    # for lowering simplicity.
    intent_pad, action_pad, gumbel_pad = pl.pallas_call(
        _prior_policy_kernel,
        out_shape=out_shapes,
        in_specs=[_vmem_spec()] * 26 + [_smem_spec()],
        out_specs=(_vmem_spec(), _vmem_spec(), _vmem_spec()),
        scratch_shapes=[pltpu.VMEM((B, STATE_LEN, EMBED_DIM), F32)],
    )(
        state, hidden, pv_r_u_enc, pv_len,
        graph['head_nodes'], graph['head_flag_bit'], graph['edge_type'],
        graph['adj'], graph['node_efficient'],
        kp['know_embed'], kp['node_embed'], kp['flag_embed'],
        kp['gru_wih'], kp['gru_whh'], kp['gru_bih'], kp['gru_bhh'],
        kp['gat_wa'], kp['gat_wv'], kp['attn_ws'],
        kp['int_w'], kp['int_b'], kp['ht_wh'], kp['ht_wi'], kp['ht_b'],
        kp['act_w'], kp['act_b'], kp['edge_bias'],
    )
    intention = intent_pad[:, :N_INTENTION]
    action = action_pad[:, :, :KNOW_VOCAB]
    gumbel_action = gumbel_pad[:, :, :KNOW_VOCAB]
    return intention, action, gumbel_action


# ----------------------------- driver -----------------------------------------
if __name__ == "__main__":
    root = jax.random.PRNGKey(0)
    k_par, k_graph, k_hid, k_state, k_enc, k_len = jax.random.split(root, 6)

    raw_params = init_params(k_par)
    kparams = pack_params(raw_params)
    graph = build_graph(k_graph)

    hidden = (0.1 * jax.random.normal(k_hid, (1, B, HIDDEN_DIM))).astype(F32)
    state = jax.random.randint(k_state, (B, STATE_LEN), 0, KNOW_VOCAB).astype(jnp.int32)
    pv_r_u_enc = (0.1 * jax.random.normal(k_enc, (B, SEQ_LEN, HIDDEN_DIM))).astype(F32)
    pv_r_u_len = jax.random.randint(k_len, (B,), 3, SEQ_LEN + 1).astype(jnp.int32)

    intention, action, gumbel_action = prior_policy_forward(
        kparams, hidden, state, pv_r_u_enc, pv_r_u_len, graph)
    jax.block_until_ready((intention, action, gumbel_action))

    assert intention.shape == (B, N_INTENTION)
    assert action.shape == (B, ACTION_NUM, KNOW_VOCAB)
    assert gumbel_action.shape == (B, ACTION_NUM, KNOW_VOCAB)
    assert bool(jnp.all(jnp.isfinite(intention)))
    assert bool(jnp.all(jnp.isfinite(action)))
    assert bool(jnp.all(jnp.isfinite(gumbel_action)))
    print("KERNEL_OK")
</pallas_src>

<mosaic_0001>
module attributes {stable_mosaic.version = 11 : i64} {
  func.func @_prior_policy_kernel(%arg0: memref<2x8xi32, #tpu.memory_space<vmem>>, %arg1: memref<1x2x32xf32, #tpu.memory_space<vmem>>, %arg2: memref<2x8x32xf32, #tpu.memory_space<vmem>>, %arg3: memref<2x1xi32, #tpu.memory_space<vmem>>, %arg4: memref<2x16xi32, #tpu.memory_space<vmem>>, %arg5: memref<2x16xi32, #tpu.memory_space<vmem>>, %arg6: memref<2x16x16xi32, #tpu.memory_space<vmem>>, %arg7: memref<2x16x16xf32, #tpu.memory_space<vmem>>, %arg8: memref<2x16xf32, #tpu.memory_space<vmem>>, %arg9: memref<50x32xf32, #tpu.memory_space<vmem>>, %arg10: memref<64x32xf32, #tpu.memory_space<vmem>>, %arg11: memref<2x32xf32, #tpu.memory_space<vmem>>, %arg12: memref<3x32x32xf32, #tpu.memory_space<vmem>>, %arg13: memref<3x32x32xf32, #tpu.memory_space<vmem>>, %arg14: memref<3x1x32xf32, #tpu.memory_space<vmem>>, %arg15: memref<3x1x32xf32, #tpu.memory_space<vmem>>, %arg16: memref<32x32xf32, #tpu.memory_space<vmem>>, %arg17: memref<32x32xf32, #tpu.memory_space<vmem>>, %arg18: memref<4x32x32xf32, #tpu.memory_space<vmem>>, %arg19: memref<4x32x128xf32, #tpu.memory_space<vmem>>, %arg20: memref<1x128xf32, #tpu.memory_space<vmem>>, %arg21: memref<32x32xf32, #tpu.memory_space<vmem>>, %arg22: memref<128x32xf32, #tpu.memory_space<vmem>>, %arg23: memref<1x32xf32, #tpu.memory_space<vmem>>, %arg24: memref<2x32x384xf32, #tpu.memory_space<vmem>>, %arg25: memref<1x384xf32, #tpu.memory_space<vmem>>, %arg26: memref<5xf32, #tpu.memory_space<smem>>, %arg27: memref<2x128xf32, #tpu.memory_space<vmem>>, %arg28: memref<2x3x128xf32, #tpu.memory_space<vmem>>, %arg29: memref<2x3x128xf32, #tpu.memory_space<vmem>>, %arg30: memref<2x8x32xf32, #tpu.memory_space<vmem>>) attributes {dimension_semantics = [], scalar_prefetch = 0 : i64, scratch_operands = 1 : i64, tpu.core_type = #tpu.core_type<tc>} {
    %c0 = arith.constant 0 : index
    %c0_0 = arith.constant 0 : index
    %c0_1 = arith.constant 0 : index
    %0 = vector.load %arg1[%c0, %c0_0, %c0_1] : memref<1x2x32xf32, #tpu.memory_space<vmem>>, vector<1x2x32xf32>
    %1 = vector.shape_cast %0 : vector<1x2x32xf32> to vector<2x32xf32>
    %c0_2 = arith.constant 0 : index
    %c0_3 = arith.constant 0 : index
    %2 = vector.load %arg0[%c0_2, %c0_3] : memref<2x8xi32, #tpu.memory_space<vmem>>, vector<2x8xi32>
    %3 = tpu.iota {dimensions = array<i32: 2>} : vector<2x8x50xi32>
    %4 = vector.shape_cast %2 : vector<2x8xi32> to vector<2x8x1xi32>
    %5 = vector.broadcast %4 : vector<2x8x1xi32> to vector<2x8x50xi32>
    %6 = arith.cmpi eq, %3, %5 : vector<2x8x50xi32>
    %7 = arith.extui %6 : vector<2x8x50xi1> to vector<2x8x50xi32>
    %8 = arith.sitofp %7 : vector<2x8x50xi32> to vector<2x8x50xf32>
    %c0_4 = arith.constant 0 : index
    %c0_5 = arith.constant 0 : index
    %9 = vector.load %arg9[%c0_4, %c0_5] : memref<50x32xf32, #tpu.memory_space<vmem>>, vector<50x32xf32>
    %10 = vector.shape_cast %9 : vector<50x32xf32> to vector<1x50x32xf32>
    %11 = vector.broadcast %10 : vector<1x50x32xf32> to vector<2x50x32xf32>
    "tpu.trace_start"() <{level = 10 : i32, message = "bsk,bke->bse"}> : () -> ()
    %cst = arith.constant dense<0.000000e+00> : vector<2x8x32xf32>
    %12 = tpu.matmul %8, %11, %cst {dimension_numbers = #tpu.dot_dimension_numbers<[2], [1], [1], [2], [0, 0, 0, 1, 1, 2], [0], [0]>} : vector<2x8x50xf32>, vector<2x50x32xf32>, vector<2x8x32xf32> -> vector<2x8x32xf32>
    "tpu.trace_stop"() : () -> ()
    %c0_6 = arith.constant 0 : index
    %c0_7 = arith.constant 0 : index
    %c0_8 = arith.constant 0 : index
    %13 = vector.load %arg12[%c0_6, %c0_7, %c0_8] : memref<3x32x32xf32, #tpu.memory_space<vmem>>, vector<1x32x32xf32>
    %14 = vector.shape_cast %13 : vector<1x32x32xf32> to vector<32x32xf32>
    %15 = vector.shape_cast %14 : vector<32x32xf32> to vector<1x32x32xf32>
    %16 = vector.broadcast %15 : vector<1x32x32xf32> to vector<2x32x32xf32>
    "tpu.trace_start"() <{level = 10 : i32, message = "bse,bef->bsf"}> : () -> ()
    %cst_9 = arith.constant dense<0.000000e+00> : vector<2x8x32xf32>
    %17 = tpu.matmul %12, %16, %cst_9 {dimension_numbers = #tpu.dot_dimension_numbers<[2], [1], [1], [2], [0, 0, 0, 1, 1, 2], [0], [0]>} : vector<2x8x32xf32>, vector<2x32x32xf32>, vector<2x8x32xf32> -> vector<2x8x32xf32>
    "tpu.trace_stop"() : () -> ()
    %c0_10 = arith.constant 0 : index
    %c0_11 = arith.constant 0 : index
    %c0_12 = arith.constant 0 : index
    %18 = vector.load %arg14[%c0_10, %c0_11, %c0_12] : memref<3x1x32xf32, #tpu.memory_space<vmem>>, vector<1x1x32xf32>
    %19 = vector.shape_cast %18 : vector<1x1x32xf32> to vector<1x32xf32>
    %20 = vector.shape_cast %19 : vector<1x32xf32> to vector<1x1x32xf32>
    %21 = vector.broadcast %20 : vector<1x1x32xf32> to vector<2x8x32xf32>
    %22 = arith.addf %17, %21 : vector<2x8x32xf32>
    %c1 = arith.constant 1 : index
    %c0_13 = arith.constant 0 : index
    %c0_14 = arith.constant 0 : index
    %23 = vector.load %arg12[%c1, %c0_13, %c0_14] : memref<3x32x32xf32, #tpu.memory_space<vmem>>, vector<1x32x32xf32>
    %24 = vector.shape_cast %23 : vector<1x32x32xf32> to vector<32x32xf32>
    %25 = vector.shape_cast %24 : vector<32x32xf32> to vector<1x32x32xf32>
    %26 = vector.broadcast %25 : vector<1x32x32xf32> to vector<2x32x32xf32>
    "tpu.trace_start"() <{level = 10 : i32, message = "bse,bef->bsf"}> : () -> ()
    %cst_15 = arith.constant dense<0.000000e+00> : vector<2x8x32xf32>
    %27 = tpu.matmul %12, %26, %cst_15 {dimension_numbers = #tpu.dot_dimension_numbers<[2], [1], [1], [2], [0, 0, 0, 1, 1, 2], [0], [0]>} : vector<2x8x32xf32>, vector<2x32x32xf32>, vector<2x8x32xf32> -> vector<2x8x32xf32>
    "tpu.trace_stop"() : () -> ()
    %c1_16 = arith.constant 1 : index
    %c0_17 = arith.constant 0 : index
    %c0_18 = arith.constant 0 : index
    %28 = vector.load %arg14[%c1_16, %c0_17, %c0_18] : memref<3x1x32xf32, #tpu.memory_space<vmem>>, vector<1x1x32xf32>
    %29 = vector.shape_cast %28 : vector<1x1x32xf32> to vector<1x32xf32>
    %30 = vector.shape_cast %29 : vector<1x32xf32> to vector<1x1x32xf32>
    %31 = vector.broadcast %30 : vector<1x1x32xf32> to vector<2x8x32xf32>
    %32 = arith.addf %27, %31 : vector<2x8x32xf32>
    %c2 = arith.constant 2 : index
    %c0_19 = arith.constant 0 : index
    %c0_20 = arith.constant 0 : index
    %33 = vector.load %arg12[%c2, %c0_19, %c0_20] : memref<3x32x32xf32, #tpu.memory_space<vmem>>, vector<1x32x32xf32>
    %34 = vector.shape_cast %33 : vector<1x32x32xf32> to vector<32x32xf32>
    %35 = vector.shape_cast %34 : vector<32x32xf32> to vector<1x32x32xf32>
    %36 = vector.broadcast %35 : vector<1x32x32xf32> to vector<2x32x32xf32>
    "tpu.trace_start"() <{level = 10 : i32, message = "bse,bef->bsf"}> : () -> ()
    %cst_21 = arith.constant dense<0.000000e+00> : vector<2x8x32xf32>
    %37 = tpu.matmul %12, %36, %cst_21 {dimension_numbers = #tpu.dot_dimension_numbers<[2], [1], [1], [2], [0, 0, 0, 1, 1, 2], [0], [0]>} : vector<2x8x32xf32>, vector<2x32x32xf32>, vector<2x8x32xf32> -> vector<2x8x32xf32>
    "tpu.trace_stop"() : () -> ()
    %c2_22 = arith.constant 2 : index
    %c0_23 = arith.constant 0 : index
    %c0_24 = arith.constant 0 : index
    %38 = vector.load %arg14[%c2_22, %c0_23, %c0_24] : memref<3x1x32xf32, #tpu.memory_space<vmem>>, vector<1x1x32xf32>
    %39 = vector.shape_cast %38 : vector<1x1x32xf32> to vector<1x32xf32>
    %40 = vector.shape_cast %39 : vector<1x32xf32> to vector<1x1x32xf32>
    %41 = vector.broadcast %40 : vector<1x1x32xf32> to vector<2x8x32xf32>
    %42 = arith.addf %37, %41 : vector<2x8x32xf32>
    %c0_25 = arith.constant 0 : index
    %c0_26 = arith.constant 0 : index
    %c0_27 = arith.constant 0 : index
    %43 = vector.load %arg13[%c0_25, %c0_26, %c0_27] : memref<3x32x32xf32, #tpu.memory_space<vmem>>, vector<1x32x32xf32>
    %44 = vector.shape_cast %43 : vector<1x32x32xf32> to vector<32x32xf32>
    %c1_28 = arith.constant 1 : index
    %c0_29 = arith.constant 0 : index
    %c0_30 = arith.constant 0 : index
    %45 = vector.load %arg13[%c1_28, %c0_29, %c0_30] : memref<3x32x32xf32, #tpu.memory_space<vmem>>, vector<1x32x32xf32>
    %46 = vector.shape_cast %45 : vector<1x32x32xf32> to vector<32x32xf32>
    %c2_31 = arith.constant 2 : index
    %c0_32 = arith.constant 0 : index
    %c0_33 = arith.constant 0 : index
    %47 = vector.load %arg13[%c2_31, %c0_32, %c0_33] : memref<3x32x32xf32, #tpu.memory_space<vmem>>, vector<1x32x32xf32>
    %48 = vector.shape_cast %47 : vector<1x32x32xf32> to vector<32x32xf32>
    %c0_34 = arith.constant 0 : index
    %c0_35 = arith.constant 0 : index
    %c0_36 = arith.constant 0 : index
    %49 = vector.load %arg15[%c0_34, %c0_35, %c0_36] : memref<3x1x32xf32, #tpu.memory_space<vmem>>, vector<1x1x32xf32>
    %50 = vector.shape_cast %49 : vector<1x1x32xf32> to vector<1x32xf32>
    %51 = vector.shape_cast %50 : vector<1x32xf32> to vector<1x32xf32>
    %52 = vector.broadcast %51 : vector<1x32xf32> to vector<2x32xf32>
    %c1_37 = arith.constant 1 : index
    %c0_38 = arith.constant 0 : index
    %c0_39 = arith.constant 0 : index
    %53 = vector.load %arg15[%c1_37, %c0_38, %c0_39] : memref<3x1x32xf32, #tpu.memory_space<vmem>>, vector<1x1x32xf32>
    %54 = vector.shape_cast %53 : vector<1x1x32xf32> to vector<1x32xf32>
    %55 = vector.shape_cast %54 : vector<1x32xf32> to vector<1x32xf32>
    %56 = vector.broadcast %55 : vector<1x32xf32> to vector<2x32xf32>
    %c2_40 = arith.constant 2 : index
    %c0_41 = arith.constant 0 : index
    %c0_42 = arith.constant 0 : index
    %57 = vector.load %arg15[%c2_40, %c0_41, %c0_42] : memref<3x1x32xf32, #tpu.memory_space<vmem>>, vector<1x1x32xf32>
    %58 = vector.shape_cast %57 : vector<1x1x32xf32> to vector<1x32xf32>
    %59 = vector.shape_cast %58 : vector<1x32xf32> to vector<1x32xf32>
    %60 = vector.broadcast %59 : vector<1x32xf32> to vector<2x32xf32>
    %cst_43 = arith.constant 0.000000e+00 : f32
    %61 = vector.broadcast %cst_43 : f32 to vector<2x32xf32>
    %62 = vector.extract_strided_slice %22 {offsets = [0, 0, 0], sizes = [2, 1, 32], strides = [1, 1, 1]} : vector<2x8x32xf32> to vector<2x1x32xf32>
    %63 = vector.shape_cast %62 : vector<2x1x32xf32> to vector<2x32xf32>
    %cst_44 = arith.constant dense<0.000000e+00> : vector<2x32xf32>
    %64 = tpu.matmul %61, %44, %cst_44 {dimension_numbers = #tpu.dot_dimension_numbers<[1], [0], [0], [1], [0, 0, 1, 1], [], []>} : vector<2x32xf32>, vector<32x32xf32>, vector<2x32xf32> -> vector<2x32xf32>
    %65 = arith.addf %63, %64 : vector<2x32xf32>
    %66 = arith.addf %65, %52 : vector<2x32xf32>
    %67 = arith.negf %66 : vector<2x32xf32>
    %68 = math.exp %67 : vector<2x32xf32>
    %cst_45 = arith.constant 1.000000e+00 : f32
    %69 = vector.broadcast %cst_45 : f32 to vector<2x32xf32>
    %70 = arith.addf %69, %68 : vector<2x32xf32>
    %71 = arith.divf %69, %70 : vector<2x32xf32>
    %72 = vector.extract_strided_slice %32 {offsets = [0, 0, 0], sizes = [2, 1, 32], strides = [1, 1, 1]} : vector<2x8x32xf32> to vector<2x1x32xf32>
    %73 = vector.shape_cast %72 : vector<2x1x32xf32> to vector<2x32xf32>
    %cst_46 = arith.constant dense<0.000000e+00> : vector<2x32xf32>
    %74 = tpu.matmul %61, %46, %cst_46 {dimension_numbers = #tpu.dot_dimension_numbers<[1], [0], [0], [1], [0, 0, 1, 1], [], []>} : vector<2x32xf32>, vector<32x32xf32>, vector<2x32xf32> -> vector<2x32xf32>
    %75 = arith.addf %73, %74 : vector<2x32xf32>
    %76 = arith.addf %75, %56 : vector<2x32xf32>
    %77 = arith.negf %76 : vector<2x32xf32>
    %78 = math.exp %77 : vector<2x32xf32>
    %cst_47 = arith.constant 1.000000e+00 : f32
    %79 = vector.broadcast %cst_47 : f32 to vector<2x32xf32>
    %80 = arith.addf %79, %78 : vector<2x32xf32>
    %81 = arith.divf %79, %80 : vector<2x32xf32>
    %82 = vector.extract_strided_slice %42 {offsets = [0, 0, 0], sizes = [2, 1, 32], strides = [1, 1, 1]} : vector<2x8x32xf32> to vector<2x1x32xf32>
    %83 = vector.shape_cast %82 : vector<2x1x32xf32> to vector<2x32xf32>
    %cst_48 = arith.constant dense<0.000000e+00> : vector<2x32xf32>
    %84 = tpu.matmul %61, %48, %cst_48 {dimension_numbers = #tpu.dot_dimension_numbers<[1], [0], [0], [1], [0, 0, 1, 1], [], []>} : vector<2x32xf32>, vector<32x32xf32>, vector<2x32xf32> -> vector<2x32xf32>
    %85 = arith.addf %84, %60 : vector<2x32xf32>
    %86 = arith.mulf %71, %85 : vector<2x32xf32>
    %87 = arith.addf %83, %86 : vector<2x32xf32>
    %88 = math.tanh %87 : vector<2x32xf32>
    %cst_49 = arith.constant 1.000000e+00 : f32
    %89 = vector.broadcast %cst_49 : f32 to vector<2x32xf32>
    %90 = arith.subf %89, %81 : vector<2x32xf32>
    %91 = arith.mulf %90, %88 : vector<2x32xf32>
    %92 = arith.mulf %81, %61 : vector<2x32xf32>
    %93 = arith.addf %91, %92 : vector<2x32xf32>
    %c0_50 = arith.constant 0 : index
    %c0_51 = arith.constant 0 : index
    %c0_52 = arith.constant 0 : index
    %94 = vector.load %arg30[%c0_50, %c0_51, %c0_52] : memref<2x8x32xf32, #tpu.memory_space<vmem>>, vector<2x1x32xf32>
    %95 = vector.shape_cast %94 : vector<2x1x32xf32> to vector<2x32xf32>
    %96 = vector.shape_cast %93 : vector<2x32xf32> to vector<2x1x32xf32>
    tpu.vector_store %arg30[%c0_50, %c0_51, %c0_52], %96 {strides = array<i32>} : memref<2x8x32xf32, #tpu.memory_space<vmem>>, vector<2x1x32xf32>,
    %97 = vector.extract_strided_slice %22 {offsets = [0, 1, 0], sizes = [2, 1, 32], strides = [1, 1, 1]} : vector<2x8x32xf32> to vector<2x1x32xf32>
    %98 = vector.shape_cast %97 : vector<2x1x32xf32> to vector<2x32xf32>
    %cst_53 = arith.constant dense<0.000000e+00> : vector<2x32xf32>
    %99 = tpu.matmul %93, %44, %cst_53 {dimension_numbers = #tpu.dot_dimension_numbers<[1], [0], [0], [1], [0, 0, 1, 1], [], []>} : vector<2x32xf32>, vector<32x32xf32>, vector<2x32xf32> -> vector<2x32xf32>
    %100 = arith.addf %98, %99 : vector<2x32xf32>
    %101 = arith.addf %100, %52 : vector<2x32xf32>
    %102 = arith.negf %101 : vector<2x32xf32>
    %103 = math.exp %102 : vector<2x32xf32>
    %cst_54 = arith.constant 1.000000e+00 : f32
    %104 = vector.broadcast %cst_54 : f32 to vector<2x32xf32>
    %105 = arith.addf %104, %103 : vector<2x32xf32>
    %106 = arith.divf %104, %105 : vector<2x32xf32>
    %107 = vector.extract_strided_slice %32 {offsets = [0, 1, 0], sizes = [2, 1, 32], strides = [1, 1, 1]} : vector<2x8x32xf32> to vector<2x1x32xf32>
    %108 = vector.shape_cast %107 : vector<2x1x32xf32> to vector<2x32xf32>
    %cst_55 = arith.constant dense<0.000000e+00> : vector<2x32xf32>
    %109 = tpu.matmul %93, %46, %cst_55 {dimension_numbers = #tpu.dot_dimension_numbers<[1], [0], [0], [1], [0, 0, 1, 1], [], []>} : vector<2x32xf32>, vector<32x32xf32>, vector<2x32xf32> -> vector<2x32xf32>
    %110 = arith.addf %108, %109 : vector<2x32xf32>
    %111 = arith.addf %110, %56 : vector<2x32xf32>
    %112 = arith.negf %111 : vector<2x32xf32>
    %113 = math.exp %112 : vector<2x32xf32>
    %cst_56 = arith.constant 1.000000e+00 : f32
    %114 = vector.broadcast %cst_56 : f32 to vector<2x32xf32>
    %115 = arith.addf %114, %113 : vector<2x32xf32>
    %116 = arith.divf %114, %115 : vector<2x32xf32>
    %117 = vector.extract_strided_slice %42 {offsets = [0, 1, 0], sizes = [2, 1, 32], strides = [1, 1, 1]} : vector<2x8x32xf32> to vector<2x1x32xf32>
    %118 = vector.shape_cast %117 : vector<2x1x32xf32> to vector<2x32xf32>
    %cst_57 = arith.constant dense<0.000000e+00> : vector<2x32xf32>
    %119 = tpu.matmul %93, %48, %cst_57 {dimension_numbers = #tpu.dot_dimension_numbers<[1], [0], [0], [1], [0, 0, 1, 1], [], []>} : vector<2x32xf32>, vector<32x32xf32>, vector<2x32xf32> -> vector<2x32xf32>
    %120 = arith.addf %119, %60 : vector<2x32xf32>
    %121 = arith.mulf %106, %120 : vector<2x32xf32>
    %122 = arith.addf %118, %121 : vector<2x32xf32>
    %123 = math.tanh %122 : vector<2x32xf32>
    %cst_58 = arith.constant 1.000000e+00 : f32
    %124 = vector.broadcast %cst_58 : f32 to vector<2x32xf32>
    %125 = arith.subf %124, %116 : vector<2x32xf32>
    %126 = arith.mulf %125, %123 : vector<2x32xf32>
    %127 = arith.mulf %116, %93 : vector<2x32xf32>
    %128 = arith.addf %126, %127 : vector<2x32xf32>
    %c0_59 = arith.constant 0 : index
    %c1_60 = arith.constant 1 : index
    %c0_61 = arith.constant 0 : index
    %129 = vector.load %arg30[%c0_59, %c1_60, %c0_61] : memref<2x8x32xf32, #tpu.memory_space<vmem>>, vector<2x1x32xf32>
    %130 = vector.shape_cast %129 : vector<2x1x32xf32> to vector<2x32xf32>
    %131 = vector.shape_cast %128 : vector<2x32xf32> to vector<2x1x32xf32>
    tpu.vector_store %arg30[%c0_59, %c1_60, %c0_61], %131 {strides = array<i32>} : memref<2x8x32xf32, #tpu.memory_space<vmem>>, vector<2x1x32xf32>,
    %132 = vector.extract_strided_slice %22 {offsets = [0, 2, 0], sizes = [2, 1, 32], strides = [1, 1, 1]} : vector<2x8x32xf32> to vector<2x1x32xf32>
    %133 = vector.shape_cast %132 : vector<2x1x32xf32> to vector<2x32xf32>
    %cst_62 = arith.constant dense<0.000000e+00> : vector<2x32xf32>
    %134 = tpu.matmul %128, %44, %cst_62 {dimension_numbers = #tpu.dot_dimension_numbers<[1], [0], [0], [1], [0, 0, 1, 1], [], []>} : vector<2x32xf32>, vector<32x32xf32>, vector<2x32xf32> -> vector<2x32xf32>
    %135 = arith.addf %133, %134 : vector<2x32xf32>
    %136 = arith.addf %135, %52 : vector<2x32xf32>
    %137 = arith.negf %136 : vector<2x32xf32>
    %138 = math.exp %137 : vector<2x32xf32>
    %cst_63 = arith.constant 1.000000e+00 : f32
    %139 = vector.broadcast %cst_63 : f32 to vector<2x32xf32>
    %140 = arith.addf %139, %138 : vector<2x32xf32>
    %141 = arith.divf %139, %140 : vector<2x32xf32>
    %142 = vector.extract_strided_slice %32 {offsets = [0, 2, 0], sizes = [2, 1, 32], strides = [1, 1, 1]} : vector<2x8x32xf32> to vector<2x1x32xf32>
    %143 = vector.shape_cast %142 : vector<2x1x32xf32> to vector<2x32xf32>
    %cst_64 = arith.constant dense<0.000000e+00> : vector<2x32xf32>
    %144 = tpu.matmul %128, %46, %cst_64 {dimension_numbers = #tpu.dot_dimension_numbers<[1], [0], [0], [1], [0, 0, 1, 1], [], []>} : vector<2x32xf32>, vector<32x32xf32>, vector<2x32xf32> -> vector<2x32xf32>
    %145 = arith.addf %143, %144 : vector<2x32xf32>
    %146 = arith.addf %145, %56 : vector<2x32xf32>
    %147 = arith.negf %146 : vector<2x32xf32>
    %148 = math.exp %147 : vector<2x32xf32>
    %cst_65 = arith.constant 1.000000e+00 : f32
    %149 = vector.broadcast %cst_65 : f32 to vector<2x32xf32>
    %150 = arith.addf %149, %148 : vector<2x32xf32>
    %151 = arith.divf %149, %150 : vector<2x32xf32>
    %152 = vector.extract_strided_slice %42 {offsets = [0, 2, 0], sizes = [2, 1, 32], strides = [1, 1, 1]} : vector<2x8x32xf32> to vector<2x1x32xf32>
    %153 = vector.shape_cast %152 : vector<2x1x32xf32> to vector<2x32xf32>
    %cst_66 = arith.constant dense<0.000000e+00> : vector<2x32xf32>
    %154 = tpu.matmul %128, %48, %cst_66 {dimension_numbers = #tpu.dot_dimension_numbers<[1], [0], [0], [1], [0, 0, 1, 1], [], []>} : vector<2x32xf32>, vector<32x32xf32>, vector<2x32xf32> -> vector<2x32xf32>
    %155 = arith.addf %154, %60 : vector<2x32xf32>
    %156 = arith.mulf %141, %155 : vector<2x32xf32>
    %157 = arith.addf %153, %156 : vector<2x32xf32>
    %158 = math.tanh %157 : vector<2x32xf32>
    %cst_67 = arith.constant 1.000000e+00 : f32
    %159 = vector.broadcast %cst_67 : f32 to vector<2x32xf32>
    %160 = arith.subf %159, %151 : vector<2x32xf32>
    %161 = arith.mulf %160, %158 : vector<2x32xf32>
    %162 = arith.mulf %151, %128 : vector<2x32xf32>
    %163 = arith.addf %161, %162 : vector<2x32xf32>
    %c0_68 = arith.constant 0 : index
    %c2_69 = arith.constant 2 : index
    %c0_70 = arith.constant 0 : index
    %164 = vector.load %arg30[%c0_68, %c2_69, %c0_70] : memref<2x8x32xf32, #tpu.memory_space<vmem>>, vector<2x1x32xf32>
    %165 = vector.shape_cast %164 : vector<2x1x32xf32> to vector<2x32xf32>
    %166 = vector.shape_cast %163 : vector<2x32xf32> to vector<2x1x32xf32>
    tpu.vector_store %arg30[%c0_68, %c2_69, %c0_70], %166 {strides = array<i32>} : memref<2x8x32xf32, #tpu.memory_space<vmem>>, vector<2x1x32xf32>,
    %167 = vector.extract_strided_slice %22 {offsets = [0, 3, 0], sizes = [2, 1, 32], strides = [1, 1, 1]} : vector<2x8x32xf32> to vector<2x1x32xf32>
    %168 = vector.shape_cast %167 : vector<2x1x32xf32> to vector<2x32xf32>
    %cst_71 = arith.constant dense<0.000000e+00> : vector<2x32xf32>
    %169 = tpu.matmul %163, %44, %cst_71 {dimension_numbers = #tpu.dot_dimension_numbers<[1], [0], [0], [1], [0, 0, 1, 1], [], []>} : vector<2x32xf32>, vector<32x32xf32>, vector<2x32xf32> -> vector<2x32xf32>
    %170 = arith.addf %168, %169 : vector<2x32xf32>
    %171 = arith.addf %170, %52 : vector<2x32xf32>
    %172 = arith.negf %171 : vector<2x32xf32>
    %173 = math.exp %172 : vector<2x32xf32>
    %cst_72 = arith.constant 1.000000e+00 : f32
    %174 = vector.broadcast %cst_72 : f32 to vector<2x32xf32>
    %175 = arith.addf %174, %173 : vector<2x32xf32>
    %176 = arith.divf %174, %175 : vector<2x32xf32>
    %177 = vector.extract_strided_slice %32 {offsets = [0, 3, 0], sizes = [2, 1, 32], strides = [1, 1, 1]} : vector<2x8x32xf32> to vector<2x1x32xf32>
    %178 = vector.shape_cast %177 : vector<2x1x32xf32> to vector<2x32xf32>
    %cst_73 = arith.constant dense<0.000000e+00> : vector<2x32xf32>
    %179 = tpu.matmul %163, %46, %cst_73 {dimension_numbers = #tpu.dot_dimension_numbers<[1], [0], [0], [1], [0, 0, 1, 1], [], []>} : vector<2x32xf32>, vector<32x32xf32>, vector<2x32xf32> -> vector<2x32xf32>
    %180 = arith.addf %178, %179 : vector<2x32xf32>
    %181 = arith.addf %180, %56 : vector<2x32xf32>
    %182 = arith.negf %181 : vector<2x32xf32>
    %183 = math.exp %182 : vector<2x32xf32>
    %cst_74 = arith.constant 1.000000e+00 : f32
    %184 = vector.broadcast %cst_74 : f32 to vector<2x32xf32>
    %185 = arith.addf %184, %183 : vector<2x32xf32>
    %186 = arith.divf %184, %185 : vector<2x32xf32>
    %187 = vector.extract_strided_slice %42 {offsets = [0, 3, 0], sizes = [2, 1, 32], strides = [1, 1, 1]} : vector<2x8x32xf32> to vector<2x1x32xf32>
    %188 = vector.shape_cast %187 : vector<2x1x32xf32> to vector<2x32xf32>
    %cst_75 = arith.constant dense<0.000000e+00> : vector<2x32xf32>
    %189 = tpu.matmul %163, %48, %cst_75 {dimension_numbers = #tpu.dot_dimension_numbers<[1], [0], [0], [1], [0, 0, 1, 1], [], []>} : vector<2x32xf32>, vector<32x32xf32>, vector<2x32xf32> -> vector<2x32xf32>
    %190 = arith.addf %189, %60 : vector<2x32xf32>
    %191 = arith.mulf %176, %190 : vector<2x32xf32>
    %192 = arith.addf %188, %191 : vector<2x32xf32>
    %193 = math.tanh %192 : vector<2x32xf32>
    %cst_76 = arith.constant 1.000000e+00 : f32
    %194 = vector.broadcast %cst_76 : f32 to vector<2x32xf32>
    %195 = arith.subf %194, %186 : vector<2x32xf32>
    %196 = arith.mulf %195, %193 : vector<2x32xf32>
    %197 = arith.mulf %186, %163 : vector<2x32xf32>
    %198 = arith.addf %196, %197 : vector<2x32xf32>
    %c0_77 = arith.constant 0 : index
    %c3 = arith.constant 3 : index
    %c0_78 = arith.constant 0 : index
    %199 = vector.load %arg30[%c0_77, %c3, %c0_78] : memref<2x8x32xf32, #tpu.memory_space<vmem>>, vector<2x1x32xf32>
    %200 = vector.shape_cast %199 : vector<2x1x32xf32> to vector<2x32xf32>
    %201 = vector.shape_cast %198 : vector<2x32xf32> to vector<2x1x32xf32>
    tpu.vector_store %arg30[%c0_77, %c3, %c0_78], %201 {strides = array<i32>} : memref<2x8x32xf32, #tpu.memory_space<vmem>>, vector<2x1x32xf32>,
    %202 = vector.extract_strided_slice %22 {offsets = [0, 4, 0], sizes = [2, 1, 32], strides = [1, 1, 1]} : vector<2x8x32xf32> to vector<2x1x32xf32>
    %203 = vector.shape_cast %202 : vector<2x1x32xf32> to vector<2x32xf32>
    %cst_79 = arith.constant dense<0.000000e+00> : vector<2x32xf32>
    %204 = tpu.matmul %198, %44, %cst_79 {dimension_numbers = #tpu.dot_dimension_numbers<[1], [0], [0], [1], [0, 0, 1, 1], [], []>} : vector<2x32xf32>, vector<32x32xf32>, vector<2x32xf32> -> vector<2x32xf32>
    %205 = arith.addf %203, %204 : vector<2x32xf32>
    %206 = arith.addf %205, %52 : vector<2x32xf32>
    %207 = arith.negf %206 : vector<2x32xf32>
    %208 = math.exp %207 : vector<2x32xf32>
    %cst_80 = arith.constant 1.000000e+00 : f32
    %209 = vector.broadcast %cst_80 : f32 to vector<2x32xf32>
    %210 = arith.addf %209, %208 : vector<2x32xf32>
    %211 = arith.divf %209, %210 : vector<2x32xf32>
    %212 = vector.extract_strided_slice %32 {offsets = [0, 4, 0], sizes = [2, 1, 32], strides = [1, 1, 1]} : vector<2x8x32xf32> to vector<2x1x32xf32>
    %213 = vector.shape_cast %212 : vector<2x1x32xf32> to vector<2x32xf32>
    %cst_81 = arith.constant dense<0.000000e+00> : vector<2x32xf32>
    %214 = tpu.matmul %198, %46, %cst_81 {dimension_numbers = #tpu.dot_dimension_numbers<[1], [0], [0], [1], [0, 0, 1, 1], [], []>} : vector<2x32xf32>, vector<32x32xf32>, vector<2x32xf32> -> vector<2x32xf32>
    %215 = arith.addf %213, %214 : vector<2x32xf32>
    %216 = arith.addf %215, %56 : vector<2x32xf32>
    %217 = arith.negf %216 : vector<2x32xf32>
    %218 = math.exp %217 : vector<2x32xf32>
    %cst_82 = arith.constant 1.000000e+00 : f32
    %219 = vector.broadcast %cst_82 : f32 to vector<2x32xf32>
    %220 = arith.addf %219, %218 : vector<2x32xf32>
    %221 = arith.divf %219, %220 : vector<2x32xf32>
    %222 = vector.extract_strided_slice %42 {offsets = [0, 4, 0], sizes = [2, 1, 32], strides = [1, 1, 1]} : vector<2x8x32xf32> to vector<2x1x32xf32>
    %223 = vector.shape_cast %222 : vector<2x1x32xf32> to vector<2x32xf32>
    %cst_83 = arith.constant dense<0.000000e+00> : vector<2x32xf32>
    %224 = tpu.matmul %198, %48, %cst_83 {dimension_numbers = #tpu.dot_dimension_numbers<[1], [0], [0], [1], [0, 0, 1, 1], [], []>} : vector<2x32xf32>, vector<32x32xf32>, vector<2x32xf32> -> vector<2x32xf32>
    %225 = arith.addf %224, %60 : vector<2x32xf32>
    %226 = arith.mulf %211, %225 : vector<2x32xf32>
    %227 = arith.addf %223, %226 : vector<2x32xf32>
    %228 = math.tanh %227 : vector<2x32xf32>
    %cst_84 = arith.constant 1.000000e+00 : f32
    %229 = vector.broadcast %cst_84 : f32 to vector<2x32xf32>
    %230 = arith.subf %229, %221 : vector<2x32xf32>
    %231 = arith.mulf %230, %228 : vector<2x32xf32>
    %232 = arith.mulf %221, %198 : vector<2x32xf32>
    %233 = arith.addf %231, %232 : vector<2x32xf32>
    %c0_85 = arith.constant 0 : index
    %c4 = arith.constant 4 : index
    %c0_86 = arith.constant 0 : index
    %234 = vector.load %arg30[%c0_85, %c4, %c0_86] : memref<2x8x32xf32, #tpu.memory_space<vmem>>, vector<2x1x32xf32>
    %235 = vector.shape_cast %234 : vector<2x1x32xf32> to vector<2x32xf32>
    %236 = vector.shape_cast %233 : vector<2x32xf32> to vector<2x1x32xf32>
    tpu.vector_store %arg30[%c0_85, %c4, %c0_86], %236 {strides = array<i32>} : memref<2x8x32xf32, #tpu.memory_space<vmem>>, vector<2x1x32xf32>,
    %237 = vector.extract_strided_slice %22 {offsets = [0, 5, 0], sizes = [2, 1, 32], strides = [1, 1, 1]} : vector<2x8x32xf32> to vector<2x1x32xf32>
    %238 = vector.shape_cast %237 : vector<2x1x32xf32> to vector<2x32xf32>
    %cst_87 = arith.constant dense<0.000000e+00> : vector<2x32xf32>
    %239 = tpu.matmul %233, %44, %cst_87 {dimension_numbers = #tpu.dot_dimension_numbers<[1], [0], [0], [1], [0, 0, 1, 1], [], []>} : vector<2x32xf32>, vector<32x32xf32>, vector<2x32xf32> -> vector<2x32xf32>
    %240 = arith.addf %238, %239 : vector<2x32xf32>
    %241 = arith.addf %240, %52 : vector<2x32xf32>
    %242 = arith.negf %241 : vector<2x32xf32>
    %243 = math.exp %242 : vector<2x32xf32>
    %cst_88 = arith.constant 1.000000e+00 : f32
    %244 = vector.broadcast %cst_88 : f32 to vector<2x32xf32>
    %245 = arith.addf %244, %243 : vector<2x32xf32>
    %246 = arith.divf %244, %245 : vector<2x32xf32>
    %247 = vector.extract_strided_slice %32 {offsets = [0, 5, 0], sizes = [2, 1, 32], strides = [1, 1, 1]} : vector<2x8x32xf32> to vector<2x1x32xf32>
    %248 = vector.shape_cast %247 : vector<2x1x32xf32> to vector<2x32xf32>
    %cst_89 = arith.constant dense<0.000000e+00> : vector<2x32xf32>
    %249 = tpu.matmul %233, %46, %cst_89 {dimension_numbers = #tpu.dot_dimension_numbers<[1], [0], [0], [1], [0, 0, 1, 1], [], []>} : vector<2x32xf32>, vector<32x32xf32>, vector<2x32xf32> -> vector<2x32xf32>
    %250 = arith.addf %248, %249 : vector<2x32xf32>
    %251 = arith.addf %250, %56 : vector<2x32xf32>
    %252 = arith.negf %251 : vector<2x32xf32>
    %253 = math.exp %252 : vector<2x32xf32>
    %cst_90 = arith.constant 1.000000e+00 : f32
    %254 = vector.broadcast %cst_90 : f32 to vector<2x32xf32>
    %255 = arith.addf %254, %253 : vector<2x32xf32>
    %256 = arith.divf %254, %255 : vector<2x32xf32>
    %257 = vector.extract_strided_slice %42 {offsets = [0, 5, 0], sizes = [2, 1, 32], strides = [1, 1, 1]} : vector<2x8x32xf32> to vector<2x1x32xf32>
    %258 = vector.shape_cast %257 : vector<2x1x32xf32> to vector<2x32xf32>
    %cst_91 = arith.constant dense<0.000000e+00> : vector<2x32xf32>
    %259 = tpu.matmul %233, %48, %cst_91 {dimension_numbers = #tpu.dot_dimension_numbers<[1], [0], [0], [1], [0, 0, 1, 1], [], []>} : vector<2x32xf32>, vector<32x32xf32>, vector<2x32xf32> -> vector<2x32xf32>
    %260 = arith.addf %259, %60 : vector<2x32xf32>
    %261 = arith.mulf %246, %260 : vector<2x32xf32>
    %262 = arith.addf %258, %261 : vector<2x32xf32>
    %263 = math.tanh %262 : vector<2x32xf32>
    %cst_92 = arith.constant 1.000000e+00 : f32
    %264 = vector.broadcast %cst_92 : f32 to vector<2x32xf32>
    %265 = arith.subf %264, %256 : vector<2x32xf32>
    %266 = arith.mulf %265, %263 : vector<2x32xf32>
    %267 = arith.mulf %256, %233 : vector<2x32xf32>
    %268 = arith.addf %266, %267 : vector<2x32xf32>
    %c0_93 = arith.constant 0 : index
    %c5 = arith.constant 5 : index
    %c0_94 = arith.constant 0 : index
    %269 = vector.load %arg30[%c0_93, %c5, %c0_94] : memref<2x8x32xf32, #tpu.memory_space<vmem>>, vector<2x1x32xf32>
    %270 = vector.shape_cast %269 : vector<2x1x32xf32> to vector<2x32xf32>
    %271 = vector.shape_cast %268 : vector<2x32xf32> to vector<2x1x32xf32>
    tpu.vector_store %arg30[%c0_93, %c5, %c0_94], %271 {strides = array<i32>} : memref<2x8x32xf32, #tpu.memory_space<vmem>>, vector<2x1x32xf32>,
    %272 = vector.extract_strided_slice %22 {offsets = [0, 6, 0], sizes = [2, 1, 32], strides = [1, 1, 1]} : vector<2x8x32xf32> to vector<2x1x32xf32>
    %273 = vector.shape_cast %272 : vector<2x1x32xf32> to vector<2x32xf32>
    %cst_95 = arith.constant dense<0.000000e+00> : vector<2x32xf32>
    %274 = tpu.matmul %268, %44, %cst_95 {dimension_numbers = #tpu.dot_dimension_numbers<[1], [0], [0], [1], [0, 0, 1, 1], [], []>} : vector<2x32xf32>, vector<32x32xf32>, vector<2x32xf32> -> vector<2x32xf32>
    %275 = arith.addf %273, %274 : vector<2x32xf32>
    %276 = arith.addf %275, %52 : vector<2x32xf32>
    %277 = arith.negf %276 : vector<2x32xf32>
    %278 = math.exp %277 : vector<2x32xf32>
    %cst_96 = arith.constant 1.000000e+00 : f32
    %279 = vector.broadcast %cst_96 : f32 to vector<2x32xf32>
    %280 = arith.addf %279, %278 : vector<2x32xf32>
    %281 = arith.divf %279, %280 : vector<2x32xf32>
    %282 = vector.extract_strided_slice %32 {offsets = [0, 6, 0], sizes = [2, 1, 32], strides = [1, 1, 1]} : vector<2x8x32xf32> to vector<2x1x32xf32>
    %283 = vector.shape_cast %282 : vector<2x1x32xf32> to vector<2x32xf32>
    %cst_97 = arith.constant dense<0.000000e+00> : vector<2x32xf32>
    %284 = tpu.matmul %268, %46, %cst_97 {dimension_numbers = #tpu.dot_dimension_numbers<[1], [0], [0], [1], [0, 0, 1, 1], [], []>} : vector<2x32xf32>, vector<32x32xf32>, vector<2x32xf32> -> vector<2x32xf32>
    %285 = arith.addf %283, %284 : vector<2x32xf32>
    %286 = arith.addf %285, %56 : vector<2x32xf32>
    %287 = arith.negf %286 : vector<2x32xf32>
    %288 = math.exp %287 : vector<2x32xf32>
    %cst_98 = arith.constant 1.000000e+00 : f32
    %289 = vector.broadcast %cst_98 : f32 to vector<2x32xf32>
    %290 = arith.addf %289, %288 : vector<2x32xf32>
    %291 = arith.divf %289, %290 : vector<2x32xf32>
    %292 = vector.extract_strided_slice %42 {offsets = [0, 6, 0], sizes = [2, 1, 32], strides = [1, 1, 1]} : vector<2x8x32xf32> to vector<2x1x32xf32>
    %293 = vector.shape_cast %292 : vector<2x1x32xf32> to vector<2x32xf32>
    %cst_99 = arith.constant dense<0.000000e+00> : vector<2x32xf32>
    %294 = tpu.matmul %268, %48, %cst_99 {dimension_numbers = #tpu.dot_dimension_numbers<[1], [0], [0], [1], [0, 0, 1, 1], [], []>} : vector<2x32xf32>, vector<32x32xf32>, vector<2x32xf32> -> vector<2x32xf32>
    %295 = arith.addf %294, %60 : vector<2x32xf32>
    %296 = arith.mulf %281, %295 : vector<2x32xf32>
    %297 = arith.addf %293, %296 : vector<2x32xf32>
    %298 = math.tanh %297 : vector<2x32xf32>
    %cst_100 = arith.constant 1.000000e+00 : f32
    %299 = vector.broadcast %cst_100 : f32 to vector<2x32xf32>
    %300 = arith.subf %299, %291 : vector<2x32xf32>
    %301 = arith.mulf %300, %298 : vector<2x32xf32>
    %302 = arith.mulf %291, %268 : vector<2x32xf32>
    %303 = arith.addf %301, %302 : vector<2x32xf32>
    %c0_101 = arith.constant 0 : index
    %c6 = arith.constant 6 : index
    %c0_102 = arith.constant 0 : index
    %304 = vector.load %arg30[%c0_101, %c6, %c0_102] : memref<2x8x32xf32, #tpu.memory_space<vmem>>, vector<2x1x32xf32>
    %305 = vector.shape_cast %304 : vector<2x1x32xf32> to vector<2x32xf32>
    %306 = vector.shape_cast %303 : vector<2x32xf32> to vector<2x1x32xf32>
    tpu.vector_store %arg30[%c0_101, %c6, %c0_102], %306 {strides = array<i32>} : memref<2x8x32xf32, #tpu.memory_space<vmem>>, vector<2x1x32xf32>,
    %307 = vector.extract_strided_slice %22 {offsets = [0, 7, 0], sizes = [2, 1, 32], strides = [1, 1, 1]} : vector<2x8x32xf32> to vector<2x1x32xf32>
    %308 = vector.shape_cast %307 : vector<2x1x32xf32> to vector<2x32xf32>
    %cst_103 = arith.constant dense<0.000000e+00> : vector<2x32xf32>
    %309 = tpu.matmul %303, %44, %cst_103 {dimension_numbers = #tpu.dot_dimension_numbers<[1], [0], [0], [1], [0, 0, 1, 1], [], []>} : vector<2x32xf32>, vector<32x32xf32>, vector<2x32xf32> -> vector<2x32xf32>
    %310 = arith.addf %308, %309 : vector<2x32xf32>
    %311 = arith.addf %310, %52 : vector<2x32xf32>
    %312 = arith.negf %311 : vector<2x32xf32>
    %313 = math.exp %312 : vector<2x32xf32>
    %cst_104 = arith.constant 1.000000e+00 : f32
    %314 = vector.broadcast %cst_104 : f32 to vector<2x32xf32>
    %315 = arith.addf %314, %313 : vector<2x32xf32>
    %316 = arith.divf %314, %315 : vector<2x32xf32>
    %317 = vector.extract_strided_slice %32 {offsets = [0, 7, 0], sizes = [2, 1, 32], strides = [1, 1, 1]} : vector<2x8x32xf32> to vector<2x1x32xf32>
    %318 = vector.shape_cast %317 : vector<2x1x32xf32> to vector<2x32xf32>
    %cst_105 = arith.constant dense<0.000000e+00> : vector<2x32xf32>
    %319 = tpu.matmul %303, %46, %cst_105 {dimension_numbers = #tpu.dot_dimension_numbers<[1], [0], [0], [1], [0, 0, 1, 1], [], []>} : vector<2x32xf32>, vector<32x32xf32>, vector<2x32xf32> -> vector<2x32xf32>
    %320 = arith.addf %318, %319 : vector<2x32xf32>
    %321 = arith.addf %320, %56 : vector<2x32xf32>
    %322 = arith.negf %321 : vector<2x32xf32>
    %323 = math.exp %322 : vector<2x32xf32>
    %cst_106 = arith.constant 1.000000e+00 : f32
    %324 = vector.broadcast %cst_106 : f32 to vector<2x32xf32>
    %325 = arith.addf %324, %323 : vector<2x32xf32>
    %326 = arith.divf %324, %325 : vector<2x32xf32>
    %327 = vector.extract_strided_slice %42 {offsets = [0, 7, 0], sizes = [2, 1, 32], strides = [1, 1, 1]} : vector<2x8x32xf32> to vector<2x1x32xf32>
    %328 = vector.shape_cast %327 : vector<2x1x32xf32> to vector<2x32xf32>
    %cst_107 = arith.constant dense<0.000000e+00> : vector<2x32xf32>
    %329 = tpu.matmul %303, %48, %cst_107 {dimension_numbers = #tpu.dot_dimension_numbers<[1], [0], [0], [1], [0, 0, 1, 1], [], []>} : vector<2x32xf32>, vector<32x32xf32>, vector<2x32xf32> -> vector<2x32xf32>
    %330 = arith.addf %329, %60 : vector<2x32xf32>
    %331 = arith.mulf %316, %330 : vector<2x32xf32>
    %332 = arith.addf %328, %331 : vector<2x32xf32>
    %333 = math.tanh %332 : vector<2x32xf32>
    %cst_108 = arith.constant 1.000000e+00 : f32
    %334 = vector.broadcast %cst_108 : f32 to vector<2x32xf32>
    %335 = arith.subf %334, %326 : vector<2x32xf32>
    %336 = arith.mulf %335, %333 : vector<2x32xf32>
    %337 = arith.mulf %326, %303 : vector<2x32xf32>
    %338 = arith.addf %336, %337 : vector<2x32xf32>
    %c0_109 = arith.constant 0 : index
    %c7 = arith.constant 7 : index
    %c0_110 = arith.constant 0 : index
    %339 = vector.load %arg30[%c0_109, %c7, %c0_110] : memref<2x8x32xf32, #tpu.memory_space<vmem>>, vector<2x1x32xf32>
    %340 = vector.shape_cast %339 : vector<2x1x32xf32> to vector<2x32xf32>
    %341 = vector.shape_cast %338 : vector<2x32xf32> to vector<2x1x32xf32>
    tpu.vector_store %arg30[%c0_109, %c7, %c0_110], %341 {strides = array<i32>} : memref<2x8x32xf32, #tpu.memory_space<vmem>>, vector<2x1x32xf32>,
    %c0_111 = arith.constant 0 : index
    %c0_112 = arith.constant 0 : index
    %c0_113 = arith.constant 0 : index
    %342 = vector.load %arg30[%c0_111, %c0_112, %c0_113] : memref<2x8x32xf32, #tpu.memory_space<vmem>>, vector<2x8x32xf32>
    %c0_114 = arith.constant 0 : index
    %c0_115 = arith.constant 0 : index
    %343 = vector.load %arg4[%c0_114, %c0_115] : memref<2x16xi32, #tpu.memory_space<vmem>>, vector<2x16xi32>
    %344 = tpu.iota {dimensions = array<i32: 2>} : vector<2x16x64xi32>
    %345 = vector.shape_cast %343 : vector<2x16xi32> to vector<2x16x1xi32>
    %346 = vector.broadcast %345 : vector<2x16x1xi32> to vector<2x16x64xi32>
    %347 = arith.cmpi eq, %344, %346 : vector<2x16x64xi32>
    %348 = arith.extui %347 : vector<2x16x64xi1> to vector<2x16x64xi32>
    %349 = arith.sitofp %348 : vector<2x16x64xi32> to vector<2x16x64xf32>
    %c0_116 = arith.constant 0 : index
    %c0_117 = arith.constant 0 : index
    %350 = vector.load %arg10[%c0_116, %c0_117] : memref<64x32xf32, #tpu.memory_space<vmem>>, vector<64x32xf32>
    %351 = vector.shape_cast %350 : vector<64x32xf32> to vector<1x64x32xf32>
    %352 = vector.broadcast %351 : vector<1x64x32xf32> to vector<2x64x32xf32>
    "tpu.trace_start"() <{level = 10 : i32, message = "bnv,bvg->bng"}> : () -> ()
    %cst_118 = arith.constant dense<0.000000e+00> : vector<2x16x32xf32>
    %353 = tpu.matmul %349, %352, %cst_118 {dimension_numbers = #tpu.dot_dimension_numbers<[2], [1], [1], [2], [0, 0, 0, 1, 1, 2], [0], [0]>} : vector<2x16x64xf32>, vector<2x64x32xf32>, vector<2x16x32xf32> -> vector<2x16x32xf32>
    "tpu.trace_stop"() : () -> ()
    %c0_119 = arith.constant 0 : index
    %c0_120 = arith.constant 0 : index
    %354 = vector.load %arg5[%c0_119, %c0_120] : memref<2x16xi32, #tpu.memory_space<vmem>>, vector<2x16xi32>
    %355 = tpu.iota {dimensions = array<i32: 2>} : vector<2x16x2xi32>
    %356 = vector.shape_cast %354 : vector<2x16xi32> to vector<2x16x1xi32>
    %357 = vector.broadcast %356 : vector<2x16x1xi32> to vector<2x16x2xi32>
    %358 = arith.cmpi eq, %355, %357 : vector<2x16x2xi32>
    %359 = arith.extui %358 : vector<2x16x2xi1> to vector<2x16x2xi32>
    %360 = arith.sitofp %359 : vector<2x16x2xi32> to vector<2x16x2xf32>
    %c0_121 = arith.constant 0 : index
    %c0_122 = arith.constant 0 : index
    %361 = vector.load %arg11[%c0_121, %c0_122] : memref<2x32xf32, #tpu.memory_space<vmem>>, vector<2x32xf32>
    %362 = vector.shape_cast %361 : vector<2x32xf32> to vector<1x2x32xf32>
    %363 = vector.broadcast %362 : vector<1x2x32xf32> to vector<2x2x32xf32>
    "tpu.trace_start"() <{level = 10 : i32, message = "bnf,bfg->bng"}> : () -> ()
    %cst_123 = arith.constant dense<0.000000e+00> : vector<2x16x32xf32>
    %364 = tpu.matmul %360, %363, %cst_123 {dimension_numbers = #tpu.dot_dimension_numbers<[2], [1], [1], [2], [0, 0, 0, 1, 1, 2], [0], [0]>} : vector<2x16x2xf32>, vector<2x2x32xf32>, vector<2x16x32xf32> -> vector<2x16x32xf32>
    "tpu.trace_stop"() : () -> ()
    %365 = arith.addf %353, %364 : vector<2x16x32xf32>
    %c0_124 = arith.constant 0 : index
    %c0_125 = arith.constant 0 : index
    %c0_126 = arith.constant 0 : index
    %366 = vector.load %arg6[%c0_124, %c0_125, %c0_126] : memref<2x16x16xi32, #tpu.memory_space<vmem>>, vector<2x16x16xi32>
    %cst_127 = arith.constant 0.000000e+00 : f32
    %367 = vector.broadcast %cst_127 : f32 to vector<2x16x16xf32>
    %c0_i32 = arith.constant 0 : i32
    %368 = vector.broadcast %c0_i32 : i32 to vector<2x16x16xi32>
    %369 = arith.cmpi eq, %366, %368 : vector<2x16x16xi32>
    %c0_128 = arith.constant 0 : index
    %370 = memref.load %arg26[%c0_128] : memref<5xf32, #tpu.memory_space<smem>>
    %cst_129 = arith.constant 0.000000e+00 : f32
    %371 = vector.broadcast %370 : f32 to vector<2x16x16xf32>
    %372 = vector.broadcast %cst_129 : f32 to vector<2x16x16xf32>
    %373 = arith.select %369, %371, %372 : vector<2x16x16xi1>, vector<2x16x16xf32>
    %374 = arith.addf %367, %373 : vector<2x16x16xf32>
    %c1_i32 = arith.constant 1 : i32
    %375 = vector.broadcast %c1_i32 : i32 to vector<2x16x16xi32>
    %376 = arith.cmpi eq, %366, %375 : vector<2x16x16xi32>
    %c1_130 = arith.constant 1 : index
    %377 = memref.load %arg26[%c1_130] : memref<5xf32, #tpu.memory_space<smem>>
    %cst_131 = arith.constant 0.000000e+00 : f32
    %378 = vector.broadcast %377 : f32 to vector<2x16x16xf32>
    %379 = vector.broadcast %cst_131 : f32 to vector<2x16x16xf32>
    %380 = arith.select %376, %378, %379 : vector<2x16x16xi1>, vector<2x16x16xf32>
    %381 = arith.addf %374, %380 : vector<2x16x16xf32>
    %c2_i32 = arith.constant 2 : i32
    %382 = vector.broadcast %c2_i32 : i32 to vector<2x16x16xi32>
    %383 = arith.cmpi eq, %366, %382 : vector<2x16x16xi32>
    %c2_132 = arith.constant 2 : index
    %384 = memref.load %arg26[%c2_132] : memref<5xf32, #tpu.memory_space<smem>>
    %cst_133 = arith.constant 0.000000e+00 : f32
    %385 = vector.broadcast %384 : f32 to vector<2x16x16xf32>
    %386 = vector.broadcast %cst_133 : f32 to vector<2x16x16xf32>
    %387 = arith.select %383, %385, %386 : vector<2x16x16xi1>, vector<2x16x16xf32>
    %388 = arith.addf %381, %387 : vector<2x16x16xf32>
    %c3_i32 = arith.constant 3 : i32
    %389 = vector.broadcast %c3_i32 : i32 to vector<2x16x16xi32>
    %390 = arith.cmpi eq, %366, %389 : vector<2x16x16xi32>
    %c3_134 = arith.constant 3 : index
    %391 = memref.load %arg26[%c3_134] : memref<5xf32, #tpu.memory_space<smem>>
    %cst_135 = arith.constant 0.000000e+00 : f32
    %392 = vector.broadcast %391 : f32 to vector<2x16x16xf32>
    %393 = vector.broadcast %cst_135 : f32 to vector<2x16x16xf32>
    %394 = arith.select %390, %392, %393 : vector<2x16x16xi1>, vector<2x16x16xf32>
    %395 = arith.addf %388, %394 : vector<2x16x16xf32>
    %c4_i32 = arith.constant 4 : i32
    %396 = vector.broadcast %c4_i32 : i32 to vector<2x16x16xi32>
    %397 = arith.cmpi eq, %366, %396 : vector<2x16x16xi32>
    %c4_136 = arith.constant 4 : index
    %398 = memref.load %arg26[%c4_136] : memref<5xf32, #tpu.memory_space<smem>>
    %cst_137 = arith.constant 0.000000e+00 : f32
    %399 = vector.broadcast %398 : f32 to vector<2x16x16xf32>
    %400 = vector.broadcast %cst_137 : f32 to vector<2x16x16xf32>
    %401 = arith.select %397, %399, %400 : vector<2x16x16xi1>, vector<2x16x16xf32>
    %402 = arith.addf %395, %401 : vector<2x16x16xf32>
    %c0_138 = arith.constant 0 : index
    %c0_139 = arith.constant 0 : index
    %c0_140 = arith.constant 0 : index
    %403 = vector.load %arg7[%c0_138, %c0_139, %c0_140] : memref<2x16x16xf32, #tpu.memory_space<vmem>>, vector<2x16x16xf32>
    %cst_141 = arith.constant 5.000000e-01 : f32
    %404 = vector.broadcast %cst_141 : f32 to vector<2x16x16xf32>
    %405 = arith.cmpf ogt, %403, %404 : vector<2x16x16xf32>
    %c0_142 = arith.constant 0 : index
    %c0_143 = arith.constant 0 : index
    %406 = vector.load %arg16[%c0_142, %c0_143] : memref<32x32xf32, #tpu.memory_space<vmem>>, vector<32x32xf32>
    %407 = vector.shape_cast %406 : vector<32x32xf32> to vector<1x32x32xf32>
    %408 = vector.broadcast %407 : vector<1x32x32xf32> to vector<2x32x32xf32>
    %c0_144 = arith.constant 0 : index
    %c0_145 = arith.constant 0 : index
    %409 = vector.load %arg17[%c0_144, %c0_145] : memref<32x32xf32, #tpu.memory_space<vmem>>, vector<32x32xf32>
    %410 = vector.shape_cast %409 : vector<32x32xf32> to vector<1x32x32xf32>
    %411 = vector.broadcast %410 : vector<1x32x32xf32> to vector<2x32x32xf32>
    "tpu.trace_start"() <{level = 10 : i32, message = "bng,bgf->bnf"}> : () -> ()
    %cst_146 = arith.constant dense<0.000000e+00> : vector<2x16x32xf32>
    %412 = tpu.matmul %365, %408, %cst_146 {dimension_numbers = #tpu.dot_dimension_numbers<[2], [1], [1], [2], [0, 0, 0, 1, 1, 2], [0], [0]>} : vector<2x16x32xf32>, vector<2x32x32xf32>, vector<2x16x32xf32> -> vector<2x16x32xf32>
    %cst_147 = arith.constant dense<0.000000e+00> : vector<2x16x32xf32>
    %413 = tpu.matmul %365, %411, %cst_147 {dimension_numbers = #tpu.dot_dimension_numbers<[2], [1], [1], [2], [0, 0, 0, 1, 1, 2], [0], [0]>} : vector<2x16x32xf32>, vector<2x32x32xf32>, vector<2x16x32xf32> -> vector<2x16x32xf32>
    "tpu.trace_stop"() : () -> ()
    "tpu.trace_start"() <{level = 10 : i32, message = "big,bjg->bij"}> : () -> ()
    %cst_148 = arith.constant dense<0.000000e+00> : vector<2x16x16xf32>
    %414 = tpu.matmul %412, %365, %cst_148 {dimension_numbers = #tpu.dot_dimension_numbers<[2], [2], [1], [1], [0, 0, 0, 1, 1, 1], [0], [0]>} : vector<2x16x32xf32>, vector<2x16x32xf32>, vector<2x16x16xf32> -> vector<2x16x16xf32>
    "tpu.trace_stop"() : () -> ()
    %415 = arith.addf %414, %402 : vector<2x16x16xf32>
    %cst_149 = arith.constant -1.000000e+09 : f32
    %416 = vector.broadcast %cst_149 : f32 to vector<2x16x16xf32>
    %417 = arith.select %405, %415, %416 : vector<2x16x16xi1>, vector<2x16x16xf32>
    %cst_150 = arith.constant dense<0xFF800000> : vector<2x16xf32>
    %418 = vector.multi_reduction <maximumf>, %417, %cst_150 [2] : vector<2x16x16xf32> to vector<2x16xf32>
    %419 = vector.shape_cast %418 : vector<2x16xf32> to vector<2x16x1xf32>
    %420 = vector.broadcast %419 : vector<2x16x1xf32> to vector<2x16x16xf32>
    %421 = arith.subf %417, %420 : vector<2x16x16xf32>
    %422 = math.exp %421 : vector<2x16x16xf32>
    %cst_151 = arith.constant 0.000000e+00 : f32
    %423 = vector.broadcast %cst_151 : f32 to vector<2x16x16xf32>
    %424 = arith.select %405, %422, %423 : vector<2x16x16xi1>, vector<2x16x16xf32>
    %cst_152 = arith.constant dense<0.000000e+00> : vector<2x16xf32>
    %425 = vector.multi_reduction <add>, %424, %cst_152 [2] : vector<2x16x16xf32> to vector<2x16xf32>
    %426 = vector.shape_cast %425 : vector<2x16xf32> to vector<2x16x1xf32>
    %cst_153 = arith.constant 9.99999971E-10 : f32
    %427 = vector.broadcast %cst_153 : f32 to vector<2x16x1xf32>
    %428 = arith.addf %426, %427 : vector<2x16x1xf32>
    %429 = tpu.reciprocal %428 {approx = true} : vector<2x16x1xf32> -> vector<2x16x1xf32>
    %430 = vector.broadcast %429 : vector<2x16x1xf32> to vector<2x16x16xf32>
    %431 = arith.mulf %424, %430 : vector<2x16x16xf32>
    "tpu.trace_start"() <{level = 10 : i32, message = "bij,bjg->big"}> : () -> ()
    %cst_154 = arith.constant dense<0.000000e+00> : vector<2x16x32xf32>
    %432 = tpu.matmul %431, %413, %cst_154 {dimension_numbers = #tpu.dot_dimension_numbers<[2], [1], [1], [2], [0, 0, 0, 1, 1, 2], [0], [0]>} : vector<2x16x16xf32>, vector<2x16x32xf32>, vector<2x16x32xf32> -> vector<2x16x32xf32>
    "tpu.trace_stop"() : () -> ()
    %433 = arith.addf %432, %365 : vector<2x16x32xf32>
    %c2_155 = arith.constant 2 : index
    %c0_156 = arith.constant 0 : index
    %c0_157 = arith.constant 0 : index
    %434 = vector.load %arg18[%c2_155, %c0_156, %c0_157] : memref<4x32x32xf32, #tpu.memory_space<vmem>>, vector<1x32x32xf32>
    %435 = vector.shape_cast %434 : vector<1x32x32xf32> to vector<32x32xf32>
    %c0_158 = arith.constant 0 : index
    %c0_159 = arith.constant 0 : index
    %436 = vector.load %arg8[%c0_158, %c0_159] : memref<2x16xf32, #tpu.memory_space<vmem>>, vector<2x16xf32>
    %cst_160 = arith.constant dense<0.000000e+00> : vector<2x32xf32>
    %437 = tpu.matmul %1, %435, %cst_160 {dimension_numbers = #tpu.dot_dimension_numbers<[1], [0], [0], [1], [0, 0, 1, 1], [], []>} : vector<2x32xf32>, vector<32x32xf32>, vector<2x32xf32> -> vector<2x32xf32>
    %438 = vector.shape_cast %437 : vector<2x32xf32> to vector<2x1x32xf32>
    "tpu.trace_start"() <{level = 10 : i32, message = "bqd,bnd->bqn"}> : () -> ()
    %cst_161 = arith.constant dense<0.000000e+00> : vector<2x1x16xf32>
    %439 = tpu.matmul %438, %433, %cst_161 {dimension_numbers = #tpu.dot_dimension_numbers<[2], [2], [1], [1], [0, 0, 0, 1, 1, 1], [0], [0]>} : vector<2x1x32xf32>, vector<2x16x32xf32>, vector<2x1x16xf32> -> vector<2x1x16xf32>
    "tpu.trace_stop"() : () -> ()
    %440 = vector.shape_cast %436 : vector<2x16xf32> to vector<2x1x16xf32>
    %cst_162 = arith.constant 5.000000e-01 : f32
    %441 = vector.broadcast %cst_162 : f32 to vector<2x1x16xf32>
    %442 = arith.cmpf ogt, %440, %441 : vector<2x1x16xf32>
    %cst_163 = arith.constant -1.000000e+09 : f32
    %443 = vector.broadcast %cst_163 : f32 to vector<2x1x16xf32>
    %444 = arith.select %442, %439, %443 : vector<2x1x16xi1>, vector<2x1x16xf32>
    %cst_164 = arith.constant dense<0xFF800000> : vector<2x1xf32>
    %445 = vector.multi_reduction <maximumf>, %444, %cst_164 [2] : vector<2x1x16xf32> to vector<2x1xf32>
    %446 = vector.shape_cast %445 : vector<2x1xf32> to vector<2x1x1xf32>
    %447 = vector.broadcast %446 : vector<2x1x1xf32> to vector<2x1x16xf32>
    %448 = arith.subf %444, %447 : vector<2x1x16xf32>
    %449 = math.exp %448 : vector<2x1x16xf32>
    %cst_165 = arith.constant 0.000000e+00 : f32
    %450 = vector.broadcast %cst_165 : f32 to vector<2x1x16xf32>
    %451 = arith.select %442, %449, %450 : vector<2x1x16xi1>, vector<2x1x16xf32>
    %cst_166 = arith.constant dense<0.000000e+00> : vector<2x1xf32>
    %452 = vector.multi_reduction <add>, %451, %cst_166 [2] : vector<2x1x16xf32> to vector<2x1xf32>
    %453 = vector.shape_cast %452 : vector<2x1xf32> to vector<2x1x1xf32>
    %cst_167 = arith.constant 9.99999971E-10 : f32
    %454 = vector.broadcast %cst_167 : f32 to vector<2x1x1xf32>
    %455 = arith.addf %453, %454 : vector<2x1x1xf32>
    %456 = tpu.reciprocal %455 {approx = true} : vector<2x1x1xf32> -> vector<2x1x1xf32>
    %457 = vector.broadcast %456 : vector<2x1x1xf32> to vector<2x1x16xf32>
    %458 = arith.mulf %451, %457 : vector<2x1x16xf32>
    "tpu.trace_start"() <{level = 10 : i32, message = "bqn,bnd->bqd"}> : () -> ()
    %cst_168 = arith.constant dense<0.000000e+00> : vector<2x1x32xf32>
    %459 = tpu.matmul %458, %433, %cst_168 {dimension_numbers = #tpu.dot_dimension_numbers<[2], [1], [1], [2], [0, 0, 0, 1, 1, 2], [0], [0]>} : vector<2x1x16xf32>, vector<2x16x32xf32>, vector<2x1x32xf32> -> vector<2x1x32xf32>
    "tpu.trace_stop"() : () -> ()
    %460 = vector.shape_cast %459 : vector<2x1x32xf32> to vector<2x32xf32>
    %cst_169 = arith.constant 1.000000e+00 : f32
    %461 = vector.broadcast %cst_169 : f32 to vector<2x8xf32>
    %c0_170 = arith.constant 0 : index
    %c0_171 = arith.constant 0 : index
    %c0_172 = arith.constant 0 : index
    %462 = vector.load %arg18[%c0_170, %c0_171, %c0_172] : memref<4x32x32xf32, #tpu.memory_space<vmem>>, vector<1x32x32xf32>
    %463 = vector.shape_cast %462 : vector<1x32x32xf32> to vector<32x32xf32>
    %cst_173 = arith.constant dense<0.000000e+00> : vector<2x32xf32>
    %464 = tpu.matmul %1, %463, %cst_173 {dimension_numbers = #tpu.dot_dimension_numbers<[1], [0], [0], [1], [0, 0, 1, 1], [], []>} : vector<2x32xf32>, vector<32x32xf32>, vector<2x32xf32> -> vector<2x32xf32>
    %465 = vector.shape_cast %464 : vector<2x32xf32> to vector<2x1x32xf32>
    "tpu.trace_start"() <{level = 10 : i32, message = "bqd,bnd->bqn"}> : () -> ()
    %cst_174 = arith.constant dense<0.000000e+00> : vector<2x1x8xf32>
    %466 = tpu.matmul %465, %342, %cst_174 {dimension_numbers = #tpu.dot_dimension_numbers<[2], [2], [1], [1], [0, 0, 0, 1, 1, 1], [0], [0]>} : vector<2x1x32xf32>, vector<2x8x32xf32>, vector<2x1x8xf32> -> vector<2x1x8xf32>
    "tpu.trace_stop"() : () -> ()
    %467 = vector.shape_cast %461 : vector<2x8xf32> to vector<2x1x8xf32>
    %cst_175 = arith.constant 5.000000e-01 : f32
    %468 = vector.broadcast %cst_175 : f32 to vector<2x1x8xf32>
    %469 = arith.cmpf ogt, %467, %468 : vector<2x1x8xf32>
    %cst_176 = arith.constant -1.000000e+09 : f32
    %470 = vector.broadcast %cst_176 : f32 to vector<2x1x8xf32>
    %471 = arith.select %469, %466, %470 : vector<2x1x8xi1>, vector<2x1x8xf32>
    %cst_177 = arith.constant dense<0xFF800000> : vector<2x1xf32>
    %472 = vector.multi_reduction <maximumf>, %471, %cst_177 [2] : vector<2x1x8xf32> to vector<2x1xf32>
    %473 = vector.shape_cast %472 : vector<2x1xf32> to vector<2x1x1xf32>
    %474 = vector.broadcast %473 : vector<2x1x1xf32> to vector<2x1x8xf32>
    %475 = arith.subf %471, %474 : vector<2x1x8xf32>
    %476 = math.exp %475 : vector<2x1x8xf32>
    %cst_178 = arith.constant 0.000000e+00 : f32
    %477 = vector.broadcast %cst_178 : f32 to vector<2x1x8xf32>
    %478 = arith.select %469, %476, %477 : vector<2x1x8xi1>, vector<2x1x8xf32>
    %cst_179 = arith.constant dense<0.000000e+00> : vector<2x1xf32>
    %479 = vector.multi_reduction <add>, %478, %cst_179 [2] : vector<2x1x8xf32> to vector<2x1xf32>
    %480 = vector.shape_cast %479 : vector<2x1xf32> to vector<2x1x1xf32>
    %cst_180 = arith.constant 9.99999971E-10 : f32
    %481 = vector.broadcast %cst_180 : f32 to vector<2x1x1xf32>
    %482 = arith.addf %480, %481 : vector<2x1x1xf32>
    %483 = tpu.reciprocal %482 {approx = true} : vector<2x1x1xf32> -> vector<2x1x1xf32>
    %484 = vector.broadcast %483 : vector<2x1x1xf32> to vector<2x1x8xf32>
    %485 = arith.mulf %478, %484 : vector<2x1x8xf32>
    "tpu.trace_start"() <{level = 10 : i32, message = "bqn,bnd->bqd"}> : () -> ()
    %cst_181 = arith.constant dense<0.000000e+00> : vector<2x1x32xf32>
    %486 = tpu.matmul %485, %342, %cst_181 {dimension_numbers = #tpu.dot_dimension_numbers<[2], [1], [1], [2], [0, 0, 0, 1, 1, 2], [0], [0]>} : vector<2x1x8xf32>, vector<2x8x32xf32>, vector<2x1x32xf32> -> vector<2x1x32xf32>
    "tpu.trace_stop"() : () -> ()
    %487 = vector.shape_cast %486 : vector<2x1x32xf32> to vector<2x32xf32>
    %488 = tpu.iota {dimensions = array<i32: 1>} : vector<2x8xi32>
    %c0_182 = arith.constant 0 : index
    %c0_183 = arith.constant 0 : index
    %489 = vector.load %arg3[%c0_182, %c0_183] : memref<2x1xi32, #tpu.memory_space<vmem>>, vector<2x1xi32>
    %490 = vector.broadcast %489 : vector<2x1xi32> to vector<2x8xi32>
    %491 = arith.cmpi slt, %488, %490 : vector<2x8xi32>
    %492 = arith.extui %491 : vector<2x8xi1> to vector<2x8xi32>
    %493 = arith.sitofp %492 : vector<2x8xi32> to vector<2x8xf32>
    %c1_184 = arith.constant 1 : index
    %c0_185 = arith.constant 0 : index
    %c0_186 = arith.constant 0 : index
    %494 = vector.load %arg18[%c1_184, %c0_185, %c0_186] : memref<4x32x32xf32, #tpu.memory_space<vmem>>, vector<1x32x32xf32>
    %495 = vector.shape_cast %494 : vector<1x32x32xf32> to vector<32x32xf32>
    %c0_187 = arith.constant 0 : index
    %c0_188 = arith.constant 0 : index
    %c0_189 = arith.constant 0 : index
    %496 = vector.load %arg2[%c0_187, %c0_188, %c0_189] : memref<2x8x32xf32, #tpu.memory_space<vmem>>, vector<2x8x32xf32>
    %cst_190 = arith.constant dense<0.000000e+00> : vector<2x32xf32>
    %497 = tpu.matmul %1, %495, %cst_190 {dimension_numbers = #tpu.dot_dimension_numbers<[1], [0], [0], [1], [0, 0, 1, 1], [], []>} : vector<2x32xf32>, vector<32x32xf32>, vector<2x32xf32> -> vector<2x32xf32>
    %498 = vector.shape_cast %497 : vector<2x32xf32> to vector<2x1x32xf32>
    "tpu.trace_start"() <{level = 10 : i32, message = "bqd,bnd->bqn"}> : () -> ()
    %cst_191 = arith.constant dense<0.000000e+00> : vector<2x1x8xf32>
    %499 = tpu.matmul %498, %496, %cst_191 {dimension_numbers = #tpu.dot_dimension_numbers<[2], [2], [1], [1], [0, 0, 0, 1, 1, 1], [0], [0]>} : vector<2x1x32xf32>, vector<2x8x32xf32>, vector<2x1x8xf32> -> vector<2x1x8xf32>
    "tpu.trace_stop"() : () -> ()
    %500 = vector.shape_cast %493 : vector<2x8xf32> to vector<2x1x8xf32>
    %cst_192 = arith.constant 5.000000e-01 : f32
    %501 = vector.broadcast %cst_192 : f32 to vector<2x1x8xf32>
    %502 = arith.cmpf ogt, %500, %501 : vector<2x1x8xf32>
    %cst_193 = arith.constant -1.000000e+09 : f32
    %503 = vector.broadcast %cst_193 : f32 to vector<2x1x8xf32>
    %504 = arith.select %502, %499, %503 : vector<2x1x8xi1>, vector<2x1x8xf32>
    %cst_194 = arith.constant dense<0xFF800000> : vector<2x1xf32>
    %505 = vector.multi_reduction <maximumf>, %504, %cst_194 [2] : vector<2x1x8xf32> to vector<2x1xf32>
    %506 = vector.shape_cast %505 : vector<2x1xf32> to vector<2x1x1xf32>
    %507 = vector.broadcast %506 : vector<2x1x1xf32> to vector<2x1x8xf32>
    %508 = arith.subf %504, %507 : vector<2x1x8xf32>
    %509 = math.exp %508 : vector<2x1x8xf32>
    %cst_195 = arith.constant 0.000000e+00 : f32
    %510 = vector.broadcast %cst_195 : f32 to vector<2x1x8xf32>
    %511 = arith.select %502, %509, %510 : vector<2x1x8xi1>, vector<2x1x8xf32>
    %cst_196 = arith.constant dense<0.000000e+00> : vector<2x1xf32>
    %512 = vector.multi_reduction <add>, %511, %cst_196 [2] : vector<2x1x8xf32> to vector<2x1xf32>
    %513 = vector.shape_cast %512 : vector<2x1xf32> to vector<2x1x1xf32>
    %cst_197 = arith.constant 9.99999971E-10 : f32
    %514 = vector.broadcast %cst_197 : f32 to vector<2x1x1xf32>
    %515 = arith.addf %513, %514 : vector<2x1x1xf32>
    %516 = tpu.reciprocal %515 {approx = true} : vector<2x1x1xf32> -> vector<2x1x1xf32>
    %517 = vector.broadcast %516 : vector<2x1x1xf32> to vector<2x1x8xf32>
    %518 = arith.mulf %511, %517 : vector<2x1x8xf32>
    "tpu.trace_start"() <{level = 10 : i32, message = "bqn,bnd->bqd"}> : () -> ()
    %cst_198 = arith.constant dense<0.000000e+00> : vector<2x1x32xf32>
    %519 = tpu.matmul %518, %496, %cst_198 {dimension_numbers = #tpu.dot_dimension_numbers<[2], [1], [1], [2], [0, 0, 0, 1, 1, 2], [0], [0]>} : vector<2x1x8xf32>, vector<2x8x32xf32>, vector<2x1x32xf32> -> vector<2x1x32xf32>
    "tpu.trace_stop"() : () -> ()
    %520 = vector.shape_cast %519 : vector<2x1x32xf32> to vector<2x32xf32>
    %c0_199 = arith.constant 0 : index
    %c0_200 = arith.constant 0 : index
    %c0_201 = arith.constant 0 : index
    %521 = vector.load %arg19[%c0_199, %c0_200, %c0_201] : memref<4x32x128xf32, #tpu.memory_space<vmem>>, vector<1x32x128xf32>
    %522 = vector.shape_cast %521 : vector<1x32x128xf32> to vector<32x128xf32>
    %cst_202 = arith.constant dense<0.000000e+00> : vector<2x128xf32>
    %523 = tpu.matmul %1, %522, %cst_202 {dimension_numbers = #tpu.dot_dimension_numbers<[1], [0], [0], [1], [0, 0, 1, 1], [], []>} : vector<2x32xf32>, vector<32x128xf32>, vector<2x128xf32> -> vector<2x128xf32>
    %c1_203 = arith.constant 1 : index
    %c0_204 = arith.constant 0 : index
    %c0_205 = arith.constant 0 : index
    %524 = vector.load %arg19[%c1_203, %c0_204, %c0_205] : memref<4x32x128xf32, #tpu.memory_space<vmem>>, vector<1x32x128xf32>
    %525 = vector.shape_cast %524 : vector<1x32x128xf32> to vector<32x128xf32>
    %cst_206 = arith.constant dense<0.000000e+00> : vector<2x128xf32>
    %526 = tpu.matmul %487, %525, %cst_206 {dimension_numbers = #tpu.dot_dimension_numbers<[1], [0], [0], [1], [0, 0, 1, 1], [], []>} : vector<2x32xf32>, vector<32x128xf32>, vector<2x128xf32> -> vector<2x128xf32>
    %527 = arith.addf %523, %526 : vector<2x128xf32>
    %c2_207 = arith.constant 2 : index
    %c0_208 = arith.constant 0 : index
    %c0_209 = arith.constant 0 : index
    %528 = vector.load %arg19[%c2_207, %c0_208, %c0_209] : memref<4x32x128xf32, #tpu.memory_space<vmem>>, vector<1x32x128xf32>
    %529 = vector.shape_cast %528 : vector<1x32x128xf32> to vector<32x128xf32>
    %cst_210 = arith.constant dense<0.000000e+00> : vector<2x128xf32>
    %530 = tpu.matmul %520, %529, %cst_210 {dimension_numbers = #tpu.dot_dimension_numbers<[1], [0], [0], [1], [0, 0, 1, 1], [], []>} : vector<2x32xf32>, vector<32x128xf32>, vector<2x128xf32> -> vector<2x128xf32>
    %531 = arith.addf %527, %530 : vector<2x128xf32>
    %c3_211 = arith.constant 3 : index
    %c0_212 = arith.constant 0 : index
    %c0_213 = arith.constant 0 : index
    %532 = vector.load %arg19[%c3_211, %c0_212, %c0_213] : memref<4x32x128xf32, #tpu.memory_space<vmem>>, vector<1x32x128xf32>
    %533 = vector.shape_cast %532 : vector<1x32x128xf32> to vector<32x128xf32>
    %cst_214 = arith.constant dense<0.000000e+00> : vector<2x128xf32>
    %534 = tpu.matmul %460, %533, %cst_214 {dimension_numbers = #tpu.dot_dimension_numbers<[1], [0], [0], [1], [0, 0, 1, 1], [], []>} : vector<2x32xf32>, vector<32x128xf32>, vector<2x128xf32> -> vector<2x128xf32>
    %535 = arith.addf %531, %534 : vector<2x128xf32>
    %c0_215 = arith.constant 0 : index
    %c0_216 = arith.constant 0 : index
    %536 = vector.load %arg20[%c0_215, %c0_216] : memref<1x128xf32, #tpu.memory_space<vmem>>, vector<1x128xf32>
    %537 = vector.broadcast %536 : vector<1x128xf32> to vector<2x128xf32>
    %538 = arith.addf %535, %537 : vector<2x128xf32>
    %cst_217 = arith.constant dense<0xFF800000> : vector<2xf32>
    %539 = vector.multi_reduction <maximumf>, %538, %cst_217 [1] : vector<2x128xf32> to vector<2xf32>
    %540 = vector.shape_cast %539 : vector<2xf32> to vector<2x1xf32>
    %541 = vector.broadcast %540 : vector<2x1xf32> to vector<2x128xf32>
    %542 = arith.subf %538, %541 : vector<2x128xf32>
    %543 = math.exp %542 : vector<2x128xf32>
    %cst_218 = arith.constant dense<0.000000e+00> : vector<2xf32>
    %544 = vector.multi_reduction <add>, %543, %cst_218 [1] : vector<2x128xf32> to vector<2xf32>
    %545 = vector.shape_cast %544 : vector<2xf32> to vector<2x1xf32>
    %546 = tpu.reciprocal %545 {approx = true} : vector<2x1xf32> -> vector<2x1xf32>
    %547 = vector.broadcast %546 : vector<2x1xf32> to vector<2x128xf32>
    %548 = arith.mulf %543, %547 : vector<2x128xf32>
    %c0_219 = arith.constant 0 : index
    %c0_220 = arith.constant 0 : index
    %549 = vector.load %arg27[%c0_219, %c0_220] : memref<2x128xf32, #tpu.memory_space<vmem>>, vector<2x128xf32>
    tpu.vector_store %arg27[%c0_219, %c0_220], %548 {strides = array<i32>} : memref<2x128xf32, #tpu.memory_space<vmem>>, vector<2x128xf32>,
    %550 = tpu.iota {dimensions = array<i32: 1>} : vector<2x128xi32>
    %cst_221 = arith.constant dense<0xFF800000> : vector<2xf32>
    %551 = vector.multi_reduction <maximumf>, %538, %cst_221 [1] : vector<2x128xf32> to vector<2xf32>
    %552 = vector.shape_cast %551 : vector<2xf32> to vector<2x1xf32>
    %553 = vector.broadcast %552 : vector<2x1xf32> to vector<2x128xf32>
    %554 = arith.cmpf oge, %538, %553 : vector<2x128xf32>
    %c128_i32 = arith.constant 128 : i32
    %555 = vector.broadcast %c128_i32 : i32 to vector<2x128xi32>
    %556 = arith.select %554, %550, %555 : vector<2x128xi1>, vector<2x128xi32>
    %cst_222 = arith.constant dense<2147483647> : vector<2xi32>
    %557 = vector.multi_reduction <minsi>, %556, %cst_222 [1] : vector<2x128xi32> to vector<2xi32>
    %558 = vector.shape_cast %557 : vector<2xi32> to vector<2x1xi32>
    %559 = vector.broadcast %558 : vector<2x1xi32> to vector<2x128xi32>
    %560 = arith.cmpi eq, %550, %559 : vector<2x128xi32>
    %561 = arith.extui %560 : vector<2x128xi1> to vector<2x128xi32>
    %562 = arith.sitofp %561 : vector<2x128xi32> to vector<2x128xf32>
    %c0_223 = arith.constant 0 : index
    %c0_224 = arith.constant 0 : index
    %563 = vector.load %arg21[%c0_223, %c0_224] : memref<32x32xf32, #tpu.memory_space<vmem>>, vector<32x32xf32>
    %cst_225 = arith.constant dense<0.000000e+00> : vector<2x32xf32>
    %564 = tpu.matmul %1, %563, %cst_225 {dimension_numbers = #tpu.dot_dimension_numbers<[1], [0], [0], [1], [0, 0, 1, 1], [], []>} : vector<2x32xf32>, vector<32x32xf32>, vector<2x32xf32> -> vector<2x32xf32>
    %c0_226 = arith.constant 0 : index
    %c0_227 = arith.constant 0 : index
    %565 = vector.load %arg22[%c0_226, %c0_227] : memref<128x32xf32, #tpu.memory_space<vmem>>, vector<128x32xf32>
    %cst_228 = arith.constant dense<0.000000e+00> : vector<2x32xf32>
    %566 = tpu.matmul %562, %565, %cst_228 {dimension_numbers = #tpu.dot_dimension_numbers<[1], [0], [0], [1], [0, 0, 1, 1], [], []>} : vector<2x128xf32>, vector<128x32xf32>, vector<2x32xf32> -> vector<2x32xf32>
    %567 = arith.addf %564, %566 : vector<2x32xf32>
    %c0_229 = arith.constant 0 : index
    %c0_230 = arith.constant 0 : index
    %568 = vector.load %arg23[%c0_229, %c0_230] : memref<1x32xf32, #tpu.memory_space<vmem>>, vector<1x32xf32>
    %569 = vector.broadcast %568 : vector<1x32xf32> to vector<2x32xf32>
    %570 = arith.addf %567, %569 : vector<2x32xf32>
    %c3_231 = arith.constant 3 : index
    %c0_232 = arith.constant 0 : index
    %c0_233 = arith.constant 0 : index
    %571 = vector.load %arg18[%c3_231, %c0_232, %c0_233] : memref<4x32x32xf32, #tpu.memory_space<vmem>>, vector<1x32x32xf32>
    %572 = vector.shape_cast %571 : vector<1x32x32xf32> to vector<32x32xf32>
    %cst_234 = arith.constant dense<0.000000e+00> : vector<2x32xf32>
    %573 = tpu.matmul %570, %572, %cst_234 {dimension_numbers = #tpu.dot_dimension_numbers<[1], [0], [0], [1], [0, 0, 1, 1], [], []>} : vector<2x32xf32>, vector<32x32xf32>, vector<2x32xf32> -> vector<2x32xf32>
    %574 = vector.shape_cast %573 : vector<2x32xf32> to vector<2x1x32xf32>
    "tpu.trace_start"() <{level = 10 : i32, message = "bqd,bnd->bqn"}> : () -> ()
    %cst_235 = arith.constant dense<0.000000e+00> : vector<2x1x8xf32>
    %575 = tpu.matmul %574, %342, %cst_235 {dimension_numbers = #tpu.dot_dimension_numbers<[2], [2], [1], [1], [0, 0, 0, 1, 1, 1], [0], [0]>} : vector<2x1x32xf32>, vector<2x8x32xf32>, vector<2x1x8xf32> -> vector<2x1x8xf32>
    "tpu.trace_stop"() : () -> ()
    %576 = vector.shape_cast %461 : vector<2x8xf32> to vector<2x1x8xf32>
    %cst_236 = arith.constant 5.000000e-01 : f32
    %577 = vector.broadcast %cst_236 : f32 to vector<2x1x8xf32>
    %578 = arith.cmpf ogt, %576, %577 : vector<2x1x8xf32>
    %cst_237 = arith.constant -1.000000e+09 : f32
    %579 = vector.broadcast %cst_237 : f32 to vector<2x1x8xf32>
    %580 = arith.select %578, %575, %579 : vector<2x1x8xi1>, vector<2x1x8xf32>
    %cst_238 = arith.constant dense<0xFF800000> : vector<2x1xf32>
    %581 = vector.multi_reduction <maximumf>, %580, %cst_238 [2] : vector<2x1x8xf32> to vector<2x1xf32>
    %582 = vector.shape_cast %581 : vector<2x1xf32> to vector<2x1x1xf32>
    %583 = vector.broadcast %582 : vector<2x1x1xf32> to vector<2x1x8xf32>
    %584 = arith.subf %580, %583 : vector<2x1x8xf32>
    %585 = math.exp %584 : vector<2x1x8xf32>
    %cst_239 = arith.constant 0.000000e+00 : f32
    %586 = vector.broadcast %cst_239 : f32 to vector<2x1x8xf32>
    %587 = arith.select %578, %585, %586 : vector<2x1x8xi1>, vector<2x1x8xf32>
    %cst_240 = arith.constant dense<0.000000e+00> : vector<2x1xf32>
    %588 = vector.multi_reduction <add>, %587, %cst_240 [2] : vector<2x1x8xf32> to vector<2x1xf32>
    %589 = vector.shape_cast %588 : vector<2x1xf32> to vector<2x1x1xf32>
    %cst_241 = arith.constant 9.99999971E-10 : f32
    %590 = vector.broadcast %cst_241 : f32 to vector<2x1x1xf32>
    %591 = arith.addf %589, %590 : vector<2x1x1xf32>
    %592 = tpu.reciprocal %591 {approx = true} : vector<2x1x1xf32> -> vector<2x1x1xf32>
    %593 = vector.broadcast %592 : vector<2x1x1xf32> to vector<2x1x8xf32>
    %594 = arith.mulf %587, %593 : vector<2x1x8xf32>
    "tpu.trace_start"() <{level = 10 : i32, message = "bqn,bnd->bqd"}> : () -> ()
    %cst_242 = arith.constant dense<0.000000e+00> : vector<2x1x32xf32>
    %595 = tpu.matmul %594, %342, %cst_242 {dimension_numbers = #tpu.dot_dimension_numbers<[2], [1], [1], [2], [0, 0, 0, 1, 1, 2], [0], [0]>} : vector<2x1x8xf32>, vector<2x8x32xf32>, vector<2x1x32xf32> -> vector<2x1x32xf32>
    "tpu.trace_stop"() : () -> ()
    %596 = vector.shape_cast %595 : vector<2x1x32xf32> to vector<2x32xf32>
    %c0_243 = arith.constant 0 : index
    %c0_244 = arith.constant 0 : index
    %c0_245 = arith.constant 0 : index
    %597 = vector.load %arg24[%c0_243, %c0_244, %c0_245] : memref<2x32x384xf32, #tpu.memory_space<vmem>>, vector<1x32x384xf32>
    %598 = vector.shape_cast %597 : vector<1x32x384xf32> to vector<32x384xf32>
    %cst_246 = arith.constant dense<0.000000e+00> : vector<2x384xf32>
    %599 = tpu.matmul %570, %598, %cst_246 {dimension_numbers = #tpu.dot_dimension_numbers<[1], [0], [0], [1], [0, 0, 1, 1], [], []>} : vector<2x32xf32>, vector<32x384xf32>, vector<2x384xf32> -> vector<2x384xf32>
    %c1_247 = arith.constant 1 : index
    %c0_248 = arith.constant 0 : index
    %c0_249 = arith.constant 0 : index
    %600 = vector.load %arg24[%c1_247, %c0_248, %c0_249] : memref<2x32x384xf32, #tpu.memory_space<vmem>>, vector<1x32x384xf32>
    %601 = vector.shape_cast %600 : vector<1x32x384xf32> to vector<32x384xf32>
    %cst_250 = arith.constant dense<0.000000e+00> : vector<2x384xf32>
    %602 = tpu.matmul %596, %601, %cst_250 {dimension_numbers = #tpu.dot_dimension_numbers<[1], [0], [0], [1], [0, 0, 1, 1], [], []>} : vector<2x32xf32>, vector<32x384xf32>, vector<2x384xf32> -> vector<2x384xf32>
    %603 = arith.addf %599, %602 : vector<2x384xf32>
    %c0_251 = arith.constant 0 : index
    %c0_252 = arith.constant 0 : index
    %604 = vector.load %arg25[%c0_251, %c0_252] : memref<1x384xf32, #tpu.memory_space<vmem>>, vector<1x384xf32>
    %605 = vector.broadcast %604 : vector<1x384xf32> to vector<2x384xf32>
    %606 = arith.addf %603, %605 : vector<2x384xf32>
    %607 = vector.extract_strided_slice %606 {offsets = [0, 0], sizes = [2, 128], strides = [1, 1]} : vector<2x384xf32> to vector<2x128xf32>
    %cst_253 = arith.constant dense<0xFF800000> : vector<2xf32>
    %608 = vector.multi_reduction <maximumf>, %607, %cst_253 [1] : vector<2x128xf32> to vector<2xf32>
    %609 = vector.shape_cast %608 : vector<2xf32> to vector<2x1xf32>
    %610 = vector.broadcast %609 : vector<2x1xf32> to vector<2x128xf32>
    %611 = arith.subf %607, %610 : vector<2x128xf32>
    %612 = math.exp %611 : vector<2x128xf32>
    %cst_254 = arith.constant dense<0.000000e+00> : vector<2xf32>
    %613 = vector.multi_reduction <add>, %612, %cst_254 [1] : vector<2x128xf32> to vector<2xf32>
    %614 = vector.shape_cast %613 : vector<2xf32> to vector<2x1xf32>
    %615 = tpu.reciprocal %614 {approx = true} : vector<2x1xf32> -> vector<2x1xf32>
    %616 = vector.broadcast %615 : vector<2x1xf32> to vector<2x128xf32>
    %617 = arith.mulf %612, %616 : vector<2x128xf32>
    %c0_255 = arith.constant 0 : index
    %c0_256 = arith.constant 0 : index
    %c0_257 = arith.constant 0 : index
    %618 = vector.load %arg28[%c0_255, %c0_256, %c0_257] : memref<2x3x128xf32, #tpu.memory_space<vmem>>, vector<2x1x128xf32>
    %619 = vector.shape_cast %618 : vector<2x1x128xf32> to vector<2x128xf32>
    %620 = vector.shape_cast %617 : vector<2x128xf32> to vector<2x1x128xf32>
    tpu.vector_store %arg28[%c0_255, %c0_256, %c0_257], %620 {strides = array<i32>} : memref<2x3x128xf32, #tpu.memory_space<vmem>>, vector<2x1x128xf32>,
    %621 = tpu.iota {dimensions = array<i32: 1>} : vector<2x128xi32>
    %cst_258 = arith.constant dense<0xFF800000> : vector<2xf32>
    %622 = vector.multi_reduction <maximumf>, %607, %cst_258 [1] : vector<2x128xf32> to vector<2xf32>
    %623 = vector.shape_cast %622 : vector<2xf32> to vector<2x1xf32>
    %624 = vector.broadcast %623 : vector<2x1xf32> to vector<2x128xf32>
    %625 = arith.cmpf oge, %607, %624 : vector<2x128xf32>
    %c128_i32_259 = arith.constant 128 : i32
    %626 = vector.broadcast %c128_i32_259 : i32 to vector<2x128xi32>
    %627 = arith.select %625, %621, %626 : vector<2x128xi1>, vector<2x128xi32>
    %cst_260 = arith.constant dense<2147483647> : vector<2xi32>
    %628 = vector.multi_reduction <minsi>, %627, %cst_260 [1] : vector<2x128xi32> to vector<2xi32>
    %629 = vector.shape_cast %628 : vector<2xi32> to vector<2x1xi32>
    %630 = vector.broadcast %629 : vector<2x1xi32> to vector<2x128xi32>
    %631 = arith.cmpi eq, %621, %630 : vector<2x128xi32>
    %632 = arith.extui %631 : vector<2x128xi1> to vector<2x128xi32>
    %633 = arith.sitofp %632 : vector<2x128xi32> to vector<2x128xf32>
    %c0_261 = arith.constant 0 : index
    %c0_262 = arith.constant 0 : index
    %c0_263 = arith.constant 0 : index
    %634 = vector.load %arg29[%c0_261, %c0_262, %c0_263] : memref<2x3x128xf32, #tpu.memory_space<vmem>>, vector<2x1x128xf32>
    %635 = vector.shape_cast %634 : vector<2x1x128xf32> to vector<2x128xf32>
    %636 = vector.shape_cast %633 : vector<2x128xf32> to vector<2x1x128xf32>
    tpu.vector_store %arg29[%c0_261, %c0_262, %c0_263], %636 {strides = array<i32>} : memref<2x3x128xf32, #tpu.memory_space<vmem>>, vector<2x1x128xf32>,
    %637 = vector.extract_strided_slice %606 {offsets = [0, 128], sizes = [2, 128], strides = [1, 1]} : vector<2x384xf32> to vector<2x128xf32>
    %cst_264 = arith.constant dense<0xFF800000> : vector<2xf32>
    %638 = vector.multi_reduction <maximumf>, %637, %cst_264 [1] : vector<2x128xf32> to vector<2xf32>
    %639 = vector.shape_cast %638 : vector<2xf32> to vector<2x1xf32>
    %640 = vector.broadcast %639 : vector<2x1xf32> to vector<2x128xf32>
    %641 = arith.subf %637, %640 : vector<2x128xf32>
    %642 = math.exp %641 : vector<2x128xf32>
    %cst_265 = arith.constant dense<0.000000e+00> : vector<2xf32>
    %643 = vector.multi_reduction <add>, %642, %cst_265 [1] : vector<2x128xf32> to vector<2xf32>
    %644 = vector.shape_cast %643 : vector<2xf32> to vector<2x1xf32>
    %645 = tpu.reciprocal %644 {approx = true} : vector<2x1xf32> -> vector<2x1xf32>
    %646 = vector.broadcast %645 : vector<2x1xf32> to vector<2x128xf32>
    %647 = arith.mulf %642, %646 : vector<2x128xf32>
    %c0_266 = arith.constant 0 : index
    %c1_267 = arith.constant 1 : index
    %c0_268 = arith.constant 0 : index
    %648 = vector.load %arg28[%c0_266, %c1_267, %c0_268] : memref<2x3x128xf32, #tpu.memory_space<vmem>>, vector<2x1x128xf32>
    %649 = vector.shape_cast %648 : vector<2x1x128xf32> to vector<2x128xf32>
    %650 = vector.shape_cast %647 : vector<2x128xf32> to vector<2x1x128xf32>
    tpu.vector_store %arg28[%c0_266, %c1_267, %c0_268], %650 {strides = array<i32>} : memref<2x3x128xf32, #tpu.memory_space<vmem>>, vector<2x1x128xf32>,
    %651 = tpu.iota {dimensions = array<i32: 1>} : vector<2x128xi32>
    %cst_269 = arith.constant dense<0xFF800000> : vector<2xf32>
    %652 = vector.multi_reduction <maximumf>, %637, %cst_269 [1] : vector<2x128xf32> to vector<2xf32>
    %653 = vector.shape_cast %652 : vector<2xf32> to vector<2x1xf32>
    %654 = vector.broadcast %653 : vector<2x1xf32> to vector<2x128xf32>
    %655 = arith.cmpf oge, %637, %654 : vector<2x128xf32>
    %c128_i32_270 = arith.constant 128 : i32
    %656 = vector.broadcast %c128_i32_270 : i32 to vector<2x128xi32>
    %657 = arith.select %655, %651, %656 : vector<2x128xi1>, vector<2x128xi32>
    %cst_271 = arith.constant dense<2147483647> : vector<2xi32>
    %658 = vector.multi_reduction <minsi>, %657, %cst_271 [1] : vector<2x128xi32> to vector<2xi32>
    %659 = vector.shape_cast %658 : vector<2xi32> to vector<2x1xi32>
    %660 = vector.broadcast %659 : vector<2x1xi32> to vector<2x128xi32>
    %661 = arith.cmpi eq, %651, %660 : vector<2x128xi32>
    %662 = arith.extui %661 : vector<2x128xi1> to vector<2x128xi32>
    %663 = arith.sitofp %662 : vector<2x128xi32> to vector<2x128xf32>
    %c0_272 = arith.constant 0 : index
    %c1_273 = arith.constant 1 : index
    %c0_274 = arith.constant 0 : index
    %664 = vector.load %arg29[%c0_272, %c1_273, %c0_274] : memref<2x3x128xf32, #tpu.memory_space<vmem>>, vector<2x1x128xf32>
    %665 = vector.shape_cast %664 : vector<2x1x128xf32> to vector<2x128xf32>
    %666 = vector.shape_cast %663 : vector<2x128xf32> to vector<2x1x128xf32>
    tpu.vector_store %arg29[%c0_272, %c1_273, %c0_274], %666 {strides = array<i32>} : memref<2x3x128xf32, #tpu.memory_space<vmem>>, vector<2x1x128xf32>,
    %667 = vector.extract_strided_slice %606 {offsets = [0, 256], sizes = [2, 128], strides = [1, 1]} : vector<2x384xf32> to vector<2x128xf32>
    %cst_275 = arith.constant dense<0xFF800000> : vector<2xf32>
    %668 = vector.multi_reduction <maximumf>, %667, %cst_275 [1] : vector<2x128xf32> to vector<2xf32>
    %669 = vector.shape_cast %668 : vector<2xf32> to vector<2x1xf32>
    %670 = vector.broadcast %669 : vector<2x1xf32> to vector<2x128xf32>
    %671 = arith.subf %667, %670 : vector<2x128xf32>
    %672 = math.exp %671 : vector<2x128xf32>
    %cst_276 = arith.constant dense<0.000000e+00> : vector<2xf32>
    %673 = vector.multi_reduction <add>, %672, %cst_276 [1] : vector<2x128xf32> to vector<2xf32>
    %674 = vector.shape_cast %673 : vector<2xf32> to vector<2x1xf32>
    %675 = tpu.reciprocal %674 {approx = true} : vector<2x1xf32> -> vector<2x1xf32>
    %676 = vector.broadcast %675 : vector<2x1xf32> to vector<2x128xf32>
    %677 = arith.mulf %672, %676 : vector<2x128xf32>
    %c0_277 = arith.constant 0 : index
    %c2_278 = arith.constant 2 : index
    %c0_279 = arith.constant 0 : index
    %678 = vector.load %arg28[%c0_277, %c2_278, %c0_279] : memref<2x3x128xf32, #tpu.memory_space<vmem>>, vector<2x1x128xf32>
    %679 = vector.shape_cast %678 : vector<2x1x128xf32> to vector<2x128xf32>
    %680 = vector.shape_cast %677 : vector<2x128xf32> to vector<2x1x128xf32>
    tpu.vector_store %arg28[%c0_277, %c2_278, %c0_279], %680 {strides = array<i32>} : memref<2x3x128xf32, #tpu.memory_space<vmem>>, vector<2x1x128xf32>,
    %681 = tpu.iota {dimensions = array<i32: 1>} : vector<2x128xi32>
    %cst_280 = arith.constant dense<0xFF800000> : vector<2xf32>
    %682 = vector.multi_reduction <maximumf>, %667, %cst_280 [1] : vector<2x128xf32> to vector<2xf32>
    %683 = vector.shape_cast %682 : vector<2xf32> to vector<2x1xf32>
    %684 = vector.broadcast %683 : vector<2x1xf32> to vector<2x128xf32>
    %685 = arith.cmpf oge, %667, %684 : vector<2x128xf32>
    %c128_i32_281 = arith.constant 128 : i32
    %686 = vector.broadcast %c128_i32_281 : i32 to vector<2x128xi32>
    %687 = arith.select %685, %681, %686 : vector<2x128xi1>, vector<2x128xi32>
    %cst_282 = arith.constant dense<2147483647> : vector<2xi32>
    %688 = vector.multi_reduction <minsi>, %687, %cst_282 [1] : vector<2x128xi32> to vector<2xi32>
    %689 = vector.shape_cast %688 : vector<2xi32> to vector<2x1xi32>
    %690 = vector.broadcast %689 : vector<2x1xi32> to vector<2x128xi32>
    %691 = arith.cmpi eq, %681, %690 : vector<2x128xi32>
    %692 = arith.extui %691 : vector<2x128xi1> to vector<2x128xi32>
    %693 = arith.sitofp %692 : vector<2x128xi32> to vector<2x128xf32>
    %c0_283 = arith.constant 0 : index
    %c2_284 = arith.constant 2 : index
    %c0_285 = arith.constant 0 : index
    %694 = vector.load %arg29[%c0_283, %c2_284, %c0_285] : memref<2x3x128xf32, #tpu.memory_space<vmem>>, vector<2x1x128xf32>
    %695 = vector.shape_cast %694 : vector<2x1x128xf32> to vector<2x128xf32>
    %696 = vector.shape_cast %693 : vector<2x128xf32> to vector<2x1x128xf32>
    tpu.vector_store %arg29[%c0_283, %c2_284, %c0_285], %696 {strides = array<i32>} : memref<2x3x128xf32, #tpu.memory_space<vmem>>, vector<2x1x128xf32>,
    return
  }
}

</mosaic_0001>

<bundles_post_ra>
// kernel: prior_policy_forward.1
= control target key start
LH: loop header
LB: loop body
LE: loop exit
PB: predicated region body
PF: predicated region fallthrough
CT: control target
= control target key end

     0   :  { %s9171_s6 = smov 1   ;;  %s9172_s10 = smov 2   ;;  %s10525_s0 = inlined_call_operand.smem [shape: u32[30], index: -1, kind: input, shape index: {}] }
   0x1   :  { %s9228_s5 = sld [smem:[%s10525_s0]]   ;;  %s9173_s14 = smov 3  }
   0x2   :  { %s9233_s9 = sld [smem:[%s10525_s0 + %s9171_s6]]   ;;  %s9174_s18 = smov 4  }
   0x3   :  { %s9238_s13 = sld [smem:[%s10525_s0 + %s9172_s10]]   ;;  %s9175_s22 = smov 5  }
   0x4   :  { %s9243_s17 = sld [smem:[%s10525_s0 + %s9173_s14]]   ;;  %s9176_s26 = smov 6  }
   0x5   :  { %s9248_s21 = sld [smem:[%s10525_s0 + %s9174_s18]]   ;;  %s9177_s30 = smov 7  }
   0x6   :  { %s9253_s25 = sld [smem:[%s10525_s0 + %s9175_s22]]   ;;  %s9178_s4 = smov 8  }
   0x7   :  { %s9258_s29 = sld [smem:[%s10525_s0 + %s9176_s26]]   ;;  %s9179_s10 = smov 9  }
   0x8   :  { %10532 = sst [smem:[#allocation32_spill]] %s9233_s9  ;;  %s9180_s15 = smov 10  }
   0x9   :  { %10533 = sst [smem:[#allocation33_spill]] %s9238_s13  ;;  %s9181_s20 = smov 11  }
   0xa   :  { %10534 = sst [smem:[#allocation34_spill]] %s9243_s17  ;;  %s9182_s26 = smov 12  }
   0xb   :  { %10535 = sst [smem:[#allocation35_spill]] %s9248_s21  ;;  %s9183_s1 = smov 13  }
   0xc   :  { %10536 = sst [smem:[#allocation36_spill]] %s9253_s25  ;;  %s9184_s7 = smov 14  }
   0xd   :  { %s9263_s3 = sld [smem:[%s10525_s0 + %s9177_s30]]   ;;  %s9186_s22 = smov 16  }
   0xe   :  { %s9268_s8 = sld [smem:[%s10525_s0 + %s9178_s4]]   ;;  %s9187_s28 = smov 17  }
   0xf   :  { %s9273_s14 = sld [smem:[%s10525_s0 + %s9179_s10]]  }
  0x10   :  { %s9278_s19 = sld [smem:[%s10525_s0 + %s9180_s15]]   ;;  %s9185_s15 = smov 15  }
  0x11   :  { %s9283_s24 = sld [smem:[%s10525_s0 + %s9181_s20]]  }
  0x12   :  { %s9288_s30 = sld [smem:[%s10525_s0 + %s9182_s26]]  }
  0x13   :  { %s9293_s6 = sld [smem:[%s10525_s0 + %s9183_s1]]  }
  0x14   :  { %10537 = sst [smem:[#allocation37_spill]] %s9268_s8 }
  0x15   :  { %s9298_s12 = sld [smem:[%s10525_s0 + %s9184_s7]]   ;;  %s9188_s7 = smov 18  }
  0x16   :  { %10538 = sst [smem:[#allocation38_spill]] %s9278_s19 }
  0x17   :  { %s9303_s20 = sld [smem:[%s10525_s0 + %s9185_s15]]   ;;  %s9189_s15 = smov 19  }
  0x18   :  { %s9308_s27 = sld [smem:[%s10525_s0 + %s9186_s22]]   ;;  %s9190_s22 = smov 20  }
  0x19   :  { %s9313_s4 = sld [smem:[%s10525_s0 + %s9187_s28]]   ;;  %s9191_s28 = smov 21  }
  0x1a   :  { %s9318_s17 = sld [smem:[%s10525_s0 + %s9188_s7]]   ;;  %s9192_s7 = smov 22  }
  0x1b   :  { %s9323_s13 = sld [smem:[%s10525_s0 + %s9189_s15]]   ;;  %s9193_s15 = smov 23  }
  0x1c   :  { %s9328_s8 = sld [smem:[%s10525_s0 + %s9190_s22]]   ;;  %s9194_s22 = smov 24  }
  0x1d   :  { %10539 = sst [smem:[#allocation39_spill]] %s9303_s20 }
  0x1e   :  { %s9333_s9 = sld [smem:[%s10525_s0 + %s9191_s28]]   ;;  %s9195_s28 = smov 25  }
  0x1f   :  { %s9343_s19 = sld [smem:[%s10525_s0 + %s9193_s15]]   ;;  %s9197_s15 = smov 27  }
  0x20   :  { %10540 = sst [smem:[#allocation40_spill]] %s9318_s17 }
  0x21   :  { %s9338_s17 = sld [smem:[%s10525_s0 + %s9192_s7]]   ;;  %s9196_s7 = smov 26  }
  0x22   :  { %s9348_s21 = sld [smem:[%s10525_s0 + %s9194_s22]]   ;;  %s9198_s22 = smov 28  }
  0x23   :  { %s9353_s25 = sld [smem:[%s10525_s0 + %s9195_s28]]   ;;  %s9199_s28 = smov 29  }
  0x24   :  { %s9363_s20 = sld [smem:[%s10525_s0 + %s9197_s15]]  }
  0x27   :  { %10541 = sst [smem:[#allocation41_spill]] %s9338_s17 }
  0x28   :  { %10542 = sst [smem:[#allocation42_spill]] %s9348_s21 }
  0x29   :  { %10543 = sst [smem:[#allocation43_spill]] %s9353_s25 }
  0x2a   :  { %s9358_s17 = sld [smem:[%s10525_s0 + %s9196_s7]]  }
  0x2b   :  { %s9368_s21 = sld [smem:[%s10525_s0 + %s9198_s22]]  }
  0x2c   :  { %s9373_s25 = sld [smem:[%s10525_s0 + %s9199_s28]]  }
  0x2d   :  { %65 = vsyncpa [#allocation4], 0 }
  0x2e   :  { %66 = vsyncpa [#allocation8], 0 }
  0x2f   :  { %67 = vsyncpa [#allocation11], 0 }
  0x30   :  { %68 = vsyncpa [#allocation14], 0 }
  0x31   :  { %69 = vsyncpa [#allocation17], 0 }
  0x32   :  { %70 = vsyncpa [#allocation20], 0 }
  0x33   :  { %71 = vsyncpa [#allocation6], 0 }
  0x34   :  { %72 = vsyncpa [#allocation5], 0  ;;  %s9200_s7 = smov [#allocation7]   ;;  %s9201_s11 = smov [#allocation10]  }
  0x35   :  { %s102_s10 = sshll.u32 %s9200_s7, 4  ;;  %s130_s15 = sshll.u32 %s9201_s11, 4  ;;  %s103_s10 = int_to_ptr.vmem [resolvable:$true] %s102_s10  ;;  %s131_s15 = int_to_ptr.vmem [resolvable:$true] %s130_s15 }
  0x36   :  { %s8915_s16 = scalar_lea.vmem %s103_s10, 512  ;;  %p8920_p1 = scmp.lt.s32.totalorder %s103_s10, %s103_s10 }
  0x37   :  { %p8916_p0 = scmp.ne.s32.totalorder %s103_s10, %s8915_s16  ;;  %p8921_p2 = scmp.lt.s32.totalorder %s8915_s16, %s8915_s16 }
  0x39   :  { %p8922_p3 = por %p8921_p2, %p8920_p1 }
  0x3b   :  { %p8923_p4 = pnand %p8922_p3, %p8916_p0 }
  0x3d   :  { %8926 = shalt.err (!%p8923_p4)
}
  0x3e   :  { %s9202_s0 = smov 128   ;;  %s9203_s18 = smov 8  }
  0x3f   :  { %108 = dma.hbm_to_vmem [thread:$0]  %s9263_s3, 512, %s103_s10, [#allocation8], %s9202_s0, %s9202_s0, %s9203_s18  }
  0x40   :  { %s8935_s22 = scalar_lea.vmem %s131_s15, 1536  ;;  %p8940_p6 = scmp.lt.s32.totalorder %s131_s15, %s131_s15 }
  0x41   :  { %p8936_p5 = scmp.ne.s32.totalorder %s131_s15, %s8935_s22  ;;  %p8941_p7 = scmp.lt.s32.totalorder %s8935_s22, %s8935_s22 }
  0x43   :  { %p8942_p8 = por %p8941_p7, %p8940_p6 }
  0x45   :  { %p8943_p9 = pnand %p8942_p8, %p8936_p5 }
  0x47   :  { %8946 = shalt.err (!%p8943_p9)
}
  0x48   :  { %136 = dma.hbm_to_vmem [thread:$0]  %s9288_s30, 1536, %s131_s15, [#allocation11], %s9202_s0, %s9202_s0, %s9203_s18  }
  0x49   :  { %s9204_s23 = smov [#allocation13]   ;;  %s9205_s28 = smov [#allocation16]  }
  0x4a   :  { %s158_s26 = sshll.u32 %s9204_s23, 4  ;;  %s184_s1 = sshll.u32 %s9205_s28, 4  ;;  %s159_s26 = int_to_ptr.vmem [resolvable:$true] %s158_s26  ;;  %s185_s1 = int_to_ptr.vmem [resolvable:$true] %s184_s1 }
  0x4b   :  { %s8955_s2 = scalar_lea.vmem %s159_s26, 512  ;;  %p8960_p11 = scmp.lt.s32.totalorder %s159_s26, %s159_s26 }
  0x4c   :  { %p8956_p10 = scmp.ne.s32.totalorder %s159_s26, %s8955_s2  ;;  %p8961_p12 = scmp.lt.s32.totalorder %s8955_s2, %s8955_s2 }
  0x4e   :  { %p8962_p13 = por %p8961_p12, %p8960_p11 }
  0x50   :  { %p8963_p0 = pnand %p8962_p13, %p8956_p10 }
  0x52   :  { %8966 = shalt.err (!%p8963_p0)
}
  0x53   :  { %164 = dma.hbm_to_vmem [thread:$0]  %s9308_s27, 512, %s159_s26, [#allocation14], %s9202_s0, %s9202_s0, %s9203_s18  }
  0x54   :  { %s8975_s3 = scalar_lea.vmem %s185_s1, 2048  ;;  %p8980_p2 = scmp.lt.s32.totalorder %s185_s1, %s185_s1 }
  0x55   :  { %p8976_p1 = scmp.ne.s32.totalorder %s185_s1, %s8975_s3  ;;  %p8981_p3 = scmp.lt.s32.totalorder %s8975_s3, %s8975_s3 }
  0x57   :  { %p8982_p4 = por %p8981_p3, %p8980_p2 }
  0x59   :  { %p8983_p5 = pnand %p8982_p4, %p8976_p1 }
  0x5b   :  { %8986 = shalt.err (!%p8983_p5)
}
  0x5c   :  { %190 = dma.hbm_to_vmem [thread:$0]  %s9323_s13, 2048, %s185_s1, [#allocation17], %s9202_s0, %s9202_s0, %s9203_s18  }
  0x5d   :  { %s9206_s30 = smov [#allocation19]   ;;  %s9207_s10 = smov [#allocation3]  }
  0x5e   :  { %s206_s7 = sshll.u32 %s9206_s30, 4  ;;  %s90_s11 = sshll.u32 %s9207_s10, 4  ;;  %s207_s7 = int_to_ptr.vmem [resolvable:$true] %s206_s7  ;;  %s91_s11 = int_to_ptr.vmem [resolvable:$true] %s90_s11 }
  0x5f   :  { %s8995_s15 = scalar_lea.vmem %s207_s7, 512  ;;  %p9000_p7 = scmp.lt.s32.totalorder %s207_s7, %s207_s7 }
  0x60   :  { %p8996_p6 = scmp.ne.s32.totalorder %s207_s7, %s8995_s15  ;;  %p9001_p8 = scmp.lt.s32.totalorder %s8995_s15, %s8995_s15 }
  0x62   :  { %p9002_p9 = por %p9001_p8, %p9000_p7 }
  0x64   :  { %p9003_p10 = pnand %p9002_p9, %p8996_p6 }
  0x66   :  { %9006 = shalt.err (!%p9003_p10)
}
  0x67   :  { %212 = dma.hbm_to_vmem [thread:$0]  %s9333_s9, 512, %s207_s7, [#allocation20], %s9202_s0, %s9202_s0, %s9203_s18  }
  0x68   :  { %s9015_s27 = scalar_lea.vmem %s91_s11, 512  ;;  %p9020_p12 = scmp.lt.s32.totalorder %s91_s11, %s91_s11 }
  0x69   :  { %p9016_p11 = scmp.ne.s32.totalorder %s91_s11, %s9015_s27  ;;  %p9021_p13 = scmp.lt.s32.totalorder %s9015_s27, %s9015_s27 }
  0x6b   :  { %p9022_p0 = por %p9021_p13, %p9020_p12 }
  0x6d   :  { %p9023_p1 = pnand %p9022_p0, %p9016_p11 }
  0x6f   :  { %9026 = shalt.err (!%p9023_p1)
}
  0x70   :  { %96 = dma.hbm_to_vmem [thread:$0]  %s9258_s29, 512, %s91_s11, [#allocation4], %s9202_s0, %s9202_s0, %s9203_s18  }
  0x71   :  { %s9208_s13 = smov [#allocation9]   ;;  %s9209_s22 = smov [#allocation12]  }
  0x72   :  { %s121_s16 = sshll.u32 %s9208_s13, 4  ;;  %s142_s23 = sshll.u32 %s9209_s22, 4  ;;  %s122_s16 = int_to_ptr.vmem [resolvable:$true] %s121_s16  ;;  %s143_s23 = int_to_ptr.vmem [resolvable:$true] %s142_s23 }
  0x73   :  { %s9035_s26 = scalar_lea.vmem %s122_s16, 32  ;;  %p9040_p3 = scmp.lt.s32.totalorder %s122_s16, %s122_s16 }
  0x74   :  { %p9036_p2 = scmp.ne.s32.totalorder %s122_s16, %s9035_s26  ;;  %p9041_p4 = scmp.lt.s32.totalorder %s9035_s26, %s9035_s26 }
  0x76   :  { %p9042_p5 = por %p9041_p4, %p9040_p3 }
  0x78   :  { %p9043_p6 = pnand %p9042_p5, %p9036_p2 }
  0x7a   :  { %9046 = shalt.err (!%p9043_p6)
}
  0x7b   :  { %124 = dma.hbm_to_vmem [thread:$0]  %s9283_s24, 32, %s122_s16, [#allocation8]  }
  0x7c   :  { %s9055_s9 = scalar_lea.vmem %s143_s23, 1536  ;;  %p9060_p8 = scmp.lt.s32.totalorder %s143_s23, %s143_s23 }
  0x7d   :  { %p9056_p7 = scmp.ne.s32.totalorder %s143_s23, %s9055_s9  ;;  %p9061_p9 = scmp.lt.s32.totalorder %s9055_s9, %s9055_s9 }
  0x7f   :  { %p9062_p10 = por %p9061_p9, %p9060_p8 }
  0x81   :  { %p9063_p11 = pnand %p9062_p10, %p9056_p7 }
  0x83   :  { %9066 = shalt.err (!%p9063_p11)
}
  0x84   :  { %148 = dma.hbm_to_vmem [thread:$0]  %s9293_s6, 1536, %s143_s23, [#allocation11], %s9202_s0, %s9202_s0, %s9203_s18  }
  0x85   :  { %s9210_s29 = smov [#allocation15]   ;;  %s9211_s1 = smov [#allocation18]  }
  0x86   :  { %s170_s28 = sshll.u32 %s9210_s29, 4  ;;  %s197_s2 = sshll.u32 %s9211_s1, 4  ;;  %s171_s28 = int_to_ptr.vmem [resolvable:$true] %s170_s28  ;;  %s198_s2 = int_to_ptr.vmem [resolvable:$true] %s197_s2 }
  0x87   :  { %s9075_s3 = scalar_lea.vmem %s171_s28, 512  ;;  %p9080_p13 = scmp.lt.s32.totalorder %s171_s28, %s171_s28 }
  0x88   :  { %p9076_p12 = scmp.ne.s32.totalorder %s171_s28, %s9075_s3  ;;  %p9081_p0 = scmp.lt.s32.totalorder %s9075_s3, %s9075_s3 }
  0x8a   :  { %p9082_p1 = por %p9081_p0, %p9080_p13 }
  0x8c   :  { %p9083_p2 = pnand %p9082_p1, %p9076_p12 }
  0x8e   :  { %9086 = shalt.err (!%p9083_p2)
}
  0x8f   :  { %176 = dma.hbm_to_vmem [thread:$0]  %s9313_s4, 512, %s171_s28, [#allocation14], %s9202_s0, %s9202_s0, %s9203_s18  }
  0x90   :  { %s9095_s24 = scalar_lea.vmem %s198_s2, 16  ;;  %s9099_s6 = scalar_lea.vmem %s198_s2, 32 }
  0x91   :  { %p9096_p3 = scmp.ne.s32.totalorder %s198_s2, %s9095_s24  ;;  %p9100_p4 = scmp.lt.s32.totalorder %s198_s2, %s198_s2 }
  0x92   :  { %p9101_p5 = scmp.lt.s32.totalorder %s9099_s6, %s9095_s24 }
  0x94   :  { %p9102_p6 = por %p9101_p5, %p9100_p4 }
  0x96   :  { %p9103_p7 = pnand %p9102_p6, %p9096_p3 }
  0x98   :  { %9106 = shalt.err (!%p9103_p7)
}
  0x99   :  { %200 = dma.hbm_to_vmem [thread:$0]  %s9328_s8, 16, %s198_s2, [#allocation17]  }
  0x9a   :  { %s9212_s30 = smov [#allocation21]  }
  0x9b   :  { %s221_s7 = sshll.u32 %s9212_s30, 4  ;;  %s222_s7 = int_to_ptr.vmem [resolvable:$true] %s221_s7 }
  0x9c   :  { %s9115_s10 = scalar_lea.vmem %s222_s7, 16  ;;  %s9119_s11 = scalar_lea.vmem %s222_s7, 32 }
  0x9d   :  { %p9116_p8 = scmp.ne.s32.totalorder %s222_s7, %s9115_s10  ;;  %p9120_p9 = scmp.lt.s32.totalorder %s222_s7, %s222_s7 }
  0x9e   :  { %p9121_p10 = scmp.lt.s32.totalorder %s9119_s11, %s9115_s10 }
  0xa0   :  { %p9122_p11 = por %p9121_p10, %p9120_p9 }
  0xa2   :  { %p9123_p12 = pnand %p9122_p11, %p9116_p8 }
  0xa4   :  { %9126 = shalt.err (!%p9123_p12)
}
  0xa5   :  { %224 = dma.hbm_to_vmem [thread:$0]  %s9343_s19, 16, %s222_s7, [#allocation20]  }
  0xa6   :  { %s9213_s4 = smov [#allocation22]  }
  0xa7   :  { %236 = dma.hbm_to_smem %s9358_s17, 16, %s9213_s4, [#allocation6]  }
  0xa8   :  { %9155 = dma.done.wait [#allocation4], 512  }
  0xa9   :  { %9156 = vsyncadd [#allocation4], 4294966784 }
  0xaa   :  { %9157 = dma.done.wait [#allocation8], 544  }
  0xab   :  { %9158 = vsyncadd [#allocation8], 4294966752 }
  0xac   :  { %9159 = dma.done.wait [#allocation11], 3072  }
  0xad   :  { %9160 = vsyncadd [#allocation11], 4294964224 }
  0xae   :  { %9161 = dma.done.wait [#allocation14], 1024  }
  0xaf   :  { %9162 = vsyncadd [#allocation14], 4294966272 }
  0xb0   :  { %9163 = dma.done.wait [#allocation17], 2064  }
  0xb1   :  { %9164 = vsyncadd [#allocation17], 4294965232 }
  0xb2   :  { %9165 = dma.done.wait [#allocation20], 528  }
  0xb3   :  { %9166 = vsyncadd [#allocation20], 4294966768 }
  0xb4   :  { %9167 = dma.done.wait [#allocation6], 16  }
  0xb5   :  { %9168 = vsyncadd [#allocation6], 4294967280 }
  0xb6   :  { %273 = sfence }
  0xb7   :  { %v276_v0 = vlaneseq  ;;  %vm309_vm0 = vcmask 1041408   ;;  %v9214_v1 = vmov 0.0   ;;  %v304_v2 = vld [vmem:[%s9273_s14 + $0x30] sm:$0x3]  ;;  %v303_v3 = vld [vmem:[%s9273_s14 + $0x28] sm:$0xff]  ;;  %v302_v6 = vld [vmem:[%s9273_s14 + $0x20] sm:$0xff] }
  0xb8   :  { %7889 = vmatprep.subr.mxu0 %v9214_v1  ;;  %7906 = vmatprep.subr.mxu1 %v9214_v1  ;;  %v275_v5 = vld [vmem:[%s9228_s5] sm:$0x3]  ;;  %v301_v9 = vld [vmem:[%s9273_s14 + $0x18] sm:$0xff]  ;;  %v300_v11 = vld [vmem:[%s9273_s14 + $0x10] sm:$0xff]  ;;  %vm9215_vm1 = vmmov 0   ;;  %vm305_vm2 = vcmask 408576  }
  0xb9   :  { %v9415_v4 = vshrl.u32 %v276_v0, 7  ;;  %7890 = vmatpush3.msk.msra.mxu0 %vm309_vm0, %v304_v2  ;;  %7907 = vmatpush3.msk.msra.mxu1 %vm309_vm0, %v304_v2  ;;  %v299_v13 = vld [vmem:[%s9273_s14 + $0x8] sm:$0xff]  ;;  %v298_v14 = vld [vmem:[%s9273_s14] sm:$0xff]  ;;  %v9451_v15 = vand.u32 127, %v276_v0  ;;  %v456_v23 = vld [vmem:[#allocation10] sm:$0xff]  ;;  %vm467_vm5 = vcmask 261120  }
  0xba   :  { %7891 = vmatprep.subr.mxu0 %v9214_v1  ;;  %7908 = vmatprep.subr.mxu1 %v9214_v1  ;;  %v459_v17 = vld [vmem:[#allocation10 + $0x18] sm:$0xff]  ;;  %v458_v19 = vld [vmem:[#allocation10 + $0x10] sm:$0xff]  ;;  %v457_v21 = vld [vmem:[#allocation10 + $0x8] sm:$0xff]  ;;  %s10544_s5 = sld [smem:[#allocation39_spill]]  ;;  %vm1228_vm6 = vcmask 253952   ;;  %vm1234_vm7 = vcmask 1041409  }
  0xbb   :  { %v9424_v7 = vsub.s32 0, %v9415_v4  ;;  %v9427_v8 = vsub.s32 1, %v9415_v4  ;;  %7892 = vmatpush3.msra.mxu0 %v303_v3  ;;  %7909 = vmatpush3.msra.mxu1 %v303_v3  ;;  %v618_v24 = vld [vmem:[#allocation10 + $0x38] sm:$0xff]  ;;  %v617_v26 = vld [vmem:[#allocation10 + $0x30] sm:$0xff]  ;;  %v616_v28 = vld [vmem:[#allocation10 + $0x28] sm:$0xff]  ;;  %vm1509_vm8 = vcmask 254977  }
  0xbc   :  { %7893 = vmatprep.subr.mxu0 %v9214_v1  ;;  %7910 = vmatprep.subr.mxu1 %v9214_v1  ;;  %v615_v30 = vld [vmem:[#allocation10 + $0x20] sm:$0xff]  ;;  %v771_v32 = vld [vmem:[#allocation10 + $0x58] sm:$0xff]  ;;  %v770_v33 = vld [vmem:[#allocation10 + $0x50] sm:$0xff]  ;;  %vm1793_vm9 = vcmask 256002   ;;  %vm2078_vm10 = vcmask 257027   ;;  %vm2363_vm11 = vcmask 258052  }
  0xbd   :  { %v281_v10 = vrot.slane %v275_v5, %v9424_v7  ;;  %7894 = vmatpush3.msra.mxu0 %v302_v6  ;;  %7911 = vmatpush3.msra.mxu1 %v302_v6  ;;  %v288_v12 = vrot.slane %v275_v5, %v9427_v8  ;;  %v769_v34 = vld [vmem:[#allocation10 + $0x48] sm:$0xff]  ;;  %v768_v35 = vld [vmem:[#allocation10 + $0x40] sm:$0xff]  ;;  %v9491_v36 = vld [vmem:[#allocation12 + $0x18] sm:$0xff]  ;;  %s10545_s17 = sld [smem:[#allocation36_spill]]  ;;  %vm2648_vm12 = vcmask 259077   ;;  %vm2933_vm13 = vcmask 260102  }
  0xbe   :  { %7895 = vmatprep.subr.mxu0 %v9214_v1  ;;  %7912 = vmatprep.subr.mxu1 %v9214_v1  ;;  %v9496_v37 = vld [vmem:[#allocation12 + $0x10] sm:$0xff]  ;;  %v9501_v38 = vld [vmem:[#allocation12 + $0x8] sm:$0xff]  ;;  %v9506_v39 = vld [vmem:[#allocation12 + $0x38] sm:$0xff]  ;;  %s10546_s8 = sld [smem:[#allocation35_spill]]  ;;  %s9219_s28 = smov [#allocation23]  }
  0xbf   :  { %283 = vbcast.lane.b32.xlu0 %v281_v10, 256  ;;  %7896 = vmatpush3.msra.mxu0 %v301_v9  ;;  %v9510_v40 = vld [vmem:[#allocation12] sm:$0xff]  ;;  %v9514_v41 = vld [vmem:[#allocation12 + $0x30] sm:$0xff]  ;;  %v9520_v42 = vld [vmem:[#allocation12 + $0x28] sm:$0xff]  ;;  %s10547_s14 = sld [smem:[#allocation38_spill]]  ;;  %s7296_s1 = sshll.u32 %s9219_s28, 4  ;;  %s7297_s1 = int_to_ptr.vmem [resolvable:$true] %s7296_s1 }
  0xc0   :  { %7897 = vmatprep.subr.mxu0 %v9214_v1  ;;  %7913 = vmatpush3.msra.mxu1 %v301_v9  ;;  %v9527_v43 = vld [vmem:[#allocation12 + $0x20] sm:$0xff]  ;;  %v9529_v44 = vld [vmem:[#allocation12 + $0x58] sm:$0xff]  ;;  %v9536_v45 = vld [vmem:[#allocation12 + $0x50] sm:$0xff]  ;;  %s3639_s19 = sld [smem:[#allocation22]]  ;;  %s9135_s2 = scalar_lea.vmem %s7297_s1, 32 }
  0xc1   :  { %7898 = vmatpush3.msra.mxu0 %v300_v11  ;;  %7914 = vmatprep.subr.mxu1 %v9214_v1  ;;  %v9542_v46 = vld [vmem:[#allocation12 + $0x48] sm:$0xff]  ;;  %v9548_v47 = vld [vmem:[#allocation12 + $0x40] sm:$0xff]  ;;  %s7442_s0 = sld [smem:[#allocation22 + $0x2]]  ;;  %p9136_p13 = scmp.ne.s32.totalorder %s7297_s1, %s9135_s2 }
  0xc2   :  { %7899 = vmatprep.subr.mxu0 %v9214_v1  ;;  %7903 = vmatprep.mubr.msk.f32.mxu0 %vm9215_vm1, %v9214_v1  ;;  %v7354_v59 = vld [vmem:[%s9298_s12] ss:$0 sm:$0xff]  ;;  %v7358_v62 = vld [vmem:[%s9298_s12 + $0x1] ss:$0 sm:$0xff]  ;;  %s7443_s18 = sld [smem:[#allocation22 + $0x3]]  ;;  %p9140_p0 = scmp.lt.s32.totalorder %s7297_s1, %s7297_s1 }
  0xc3   :  { %290 = vbcast.lane.b32.xlu0 %v288_v12, 256  ;;  %7900 = vmatpush3.msra.mxu0 %v299_v13  ;;  %v9581_v63 = vld [vmem:[%s10544_s5] ss:$0 sm:$0xff]  ;;  %s7444_s15 = sld [smem:[#allocation22 + $0x4]]  ;;  %p9141_p1 = scmp.lt.s32.totalorder %s9135_s2, %s9135_s2 }
  0xc4   :  { %7901 = vmatprep.subr.mxu0 %v9214_v1  ;;  %7915 = vmatpush3.msra.mxu1 %v300_v11  ;;  %s10548_s27 = sld [smem:[#allocation40_spill]] }
  0xc5   :  { %7902 = vmatpush3.msra.mxu0 %v298_v14  ;;  %7916 = vmatprep.subr.mxu1 %v9214_v1  ;;  %s10549_s13 = sld [smem:[#allocation32_spill]]  ;;  %p9142_p2 = por %p9141_p1, %p9140_p0 }
  0xc6   :  { %7917 = vmatpush3.msra.mxu1 %v299_v13  ;;  %7920 = vmatprep.mubr.msk.f32.mxu1 %vm9215_vm1, %v9214_v1  ;;  %s10550_s16 = sld [smem:[#allocation37_spill]] }
  0xc7   :  { %7918 = vmatprep.subr.mxu1 %v9214_v1  ;;  %7923 = vmatprep.subr.mxu0 %v9214_v1  ;;  %s10553_s22 = sld [smem:[#allocation33_spill]]  ;;  %p9143_p3 = pnand %p9142_p2, %p9136_p13 }
  0xc8   :  { %7919 = vmatpush3.msra.mxu1 %v298_v14  ;;  %s10554_s23 = sld [smem:[#allocation34_spill]] }
  0xc9   :  { %7934 = vmatprep.subr.mxu1 %v9214_v1  ;;  %s10557_s26 = sld [smem:[#allocation41_spill]] }
  0xca   :  { %s10558_s9 = sld [smem:[#allocation42_spill]] }
  0xcb   :  { %s10559_s29 = sld [smem:[#allocation43_spill]] }
 0x131   :  { %v284_v16 = vpop.permute.xlu0 %283 }
 0x132   :  { %vm292_vm3 = vcmp.eq.s32.totalorder %v9451_v15, %v284_v16 }
 0x133   :  { %v7348_v18 = vsel %vm292_vm3, 1.0, %v9214_v1 }
 0x134   :  { %7904 = vmatmul.mubr.msk.f32.vlgmr.msra.gmra.mxu0 %vm305_vm2, %v7348_v18 }
 0x135   :  { %v291_v20 = vpop.permute.xlu0 %290  ;;  %7924 = vmatpush3.msra.mxu0 %v459_v17  ;;  %7931 = vmatprep.mubr.msk.f32.mxu0 %vm9215_vm1, %v9214_v1 }
 0x136   :  { %vm293_vm4 = vcmp.eq.s32.totalorder %v9451_v15, %v291_v20  ;;  %7925 = vmatprep.subr.mxu0 %v9214_v1 }
 0x137   :  { %v7349_v22 = vsel %vm293_vm4, 1.0, %v9214_v1  ;;  %7926 = vmatpush3.msra.mxu0 %v458_v19 }
 0x138   :  { %7921 = vmatmul.mubr.msk.f32.vlgmr.msra.gmra.mxu1 %vm305_vm2, %v7349_v22  ;;  %7927 = vmatprep.subr.mxu0 %v9214_v1  ;;  %vm3302_vm2 = vcmask 15360  }
 0x139   :  { %7928 = vmatpush3.msra.mxu0 %v457_v21  ;;  %7935 = vmatpush3.msra.mxu1 %v459_v17 }
 0x13a   :  { %7929 = vmatprep.subr.mxu0 %v9214_v1  ;;  %7936 = vmatprep.subr.mxu1 %v9214_v1 }
 0x13b   :  { %7930 = vmatpush3.msra.mxu0 %v456_v23  ;;  %7937 = vmatpush3.msra.mxu1 %v458_v19  ;;  %v9595_v19 = vld [vmem:[%s10544_s5 + $0x1] ss:$0 sm:$0xff] }
 0x13c   :  { %7938 = vmatprep.subr.mxu1 %v9214_v1  ;;  %7945 = vmatprep.subr.mxu0 %v9214_v1 }
 0x13d   :  { %7939 = vmatpush3.msra.mxu1 %v457_v21  ;;  %7942 = vmatprep.mubr.msk.f32.mxu1 %vm9215_vm1, %v9214_v1 }
 0x13e   :  { %7940 = vmatprep.subr.mxu1 %v9214_v1 }
 0x13f   :  { %7941 = vmatpush3.msra.mxu1 %v456_v23 }
 0x140   :  { %7956 = vmatprep.subr.mxu1 %v9214_v1 }
 0x1f4   :  { %v379_v25 = vpop.f32.mrf.mxu0 }
 0x1f5   :  { %7932 = vmatmul.mubr.msk.f32.vlgmr.msra.gmra.mxu0 %vm467_vm5, %v379_v25 }
 0x1f6   :  { %7946 = vmatpush3.msra.mxu0 %v618_v24  ;;  %v7905_v27 = vpop.f32.mrf.mxu0  ;;  %7953 = vmatprep.mubr.msk.f32.mxu0 %vm9215_vm1, %v9214_v1 }
 0x1f7   :  { %7947 = vmatprep.subr.mxu0 %v9214_v1 }
 0x1f8   :  { %7948 = vmatpush3.msra.mxu0 %v617_v26  ;;  %v452_v29 = vpop.f32.mrf.mxu1 }
 0x1f9   :  { %7949 = vmatprep.subr.mxu0 %v9214_v1  ;;  %7943 = vmatmul.mubr.msk.f32.vlgmr.msra.gmra.mxu1 %vm467_vm5, %v452_v29 }
 0x1fa   :  { %7950 = vmatpush3.msra.mxu0 %v616_v28  ;;  %7957 = vmatpush3.msra.mxu1 %v618_v24  ;;  %v7922_v31 = vpop.f32.mrf.mxu1 }
 0x1fb   :  { %7951 = vmatprep.subr.mxu0 %v9214_v1  ;;  %7958 = vmatprep.subr.mxu1 %v9214_v1 }
 0x1fc   :  { %7952 = vmatpush3.msra.mxu0 %v615_v30  ;;  %7959 = vmatpush3.msra.mxu1 %v617_v26 }
 0x1fd   :  { %7954 = vmatmul.mubr.msk.f32.vlgmr.msra.gmra.mxu0 %vm467_vm5, %v379_v25  ;;  %7960 = vmatprep.subr.mxu1 %v9214_v1 }
 0x1fe   :  { %7967 = vmatprep.subr.mxu0 %v9214_v1  ;;  %7961 = vmatpush3.msra.mxu1 %v616_v28 }
 0x1ff   :  { %7968 = vmatpush3.msra.mxu0 %v771_v32  ;;  %7962 = vmatprep.subr.mxu1 %v9214_v1 }
 0x200   :  { %7969 = vmatprep.subr.mxu0 %v9214_v1  ;;  %7963 = vmatpush3.msra.mxu1 %v615_v30 }
 0x201   :  { %7970 = vmatpush3.msra.mxu0 %v770_v33  ;;  %7964 = vmatprep.mubr.msk.f32.mxu1 %vm9215_vm1, %v9214_v1 }
 0x202   :  { %7971 = vmatprep.subr.mxu0 %v9214_v1  ;;  %7978 = vmatprep.subr.mxu1 %v9214_v1 }
 0x203   :  { %7965 = vmatmul.mubr.msk.f32.vlgmr.msra.gmra.mxu1 %vm467_vm5, %v452_v29  ;;  %7972 = vmatpush3.msra.mxu0 %v769_v34 }
 0x204   :  { %7979 = vmatpush3.msra.mxu1 %v771_v32  ;;  %7973 = vmatprep.subr.mxu0 %v9214_v1 }
 0x205   :  { %7980 = vmatprep.subr.mxu1 %v9214_v1  ;;  %7974 = vmatpush3.msra.mxu0 %v768_v35 }
 0x206   :  { %7975 = vmatprep.mubr.msk.f32.mxu0 %vm9215_vm1, %v9214_v1  ;;  %7981 = vmatpush3.msra.mxu1 %v770_v33  ;;  %v9601_v33 = vld [vmem:[%s10544_s5 + $0x2] ss:$0 sm:$0xff] }
 0x207   :  { %7976 = vmatmul.mubr.msk.f32.vlgmr.msra.gmra.mxu0 %vm467_vm5, %v379_v25  ;;  %7982 = vmatprep.subr.mxu1 %v9214_v1 }
 0x208   :  { %7989 = vmatprep.subr.mxu0 %v9214_v1  ;;  %7983 = vmatpush3.msra.mxu1 %v769_v34 }
 0x209   :  { %7990 = vmatpush3.msra.mxu0 %v9491_v36  ;;  %7984 = vmatprep.subr.mxu1 %v9214_v1 }
 0x20a   :  { %7991 = vmatprep.subr.mxu0 %v9214_v1  ;;  %7985 = vmatpush3.msra.mxu1 %v768_v35 }
 0x20b   :  { %7986 = vmatprep.mubr.msk.f32.mxu1 %vm9215_vm1, %v9214_v1  ;;  %7992 = vmatpush3.msra.mxu0 %v9496_v37 }
 0x20c   :  { %7987 = vmatmul.mubr.msk.f32.vlgmr.msra.gmra.mxu1 %vm467_vm5, %v452_v29  ;;  %7993 = vmatprep.subr.mxu0 %v9214_v1 }
 0x20d   :  { %8000 = vmatprep.subr.mxu1 %v9214_v1  ;;  %7994 = vmatpush3.msra.mxu0 %v9501_v38 }
 0x20e   :  { %8001 = vmatpush3.msra.mxu1 %v9506_v39  ;;  %7995 = vmatprep.subr.mxu0 %v9214_v1 }
 0x20f   :  { %8002 = vmatprep.subr.mxu1 %v9214_v1  ;;  %7996 = vmatpush3.msra.mxu0 %v9510_v40 }
 0x210   :  { %7997 = vmatprep.mubr.msk.f32.mxu0 %vm9215_vm1, %v9214_v1  ;;  %8003 = vmatpush3.msra.mxu1 %v9514_v41 }
 0x211   :  { %7998 = vmatmul.mubr.f32.vlgmr.msra.gmra.mxu0 %v9214_v1  ;;  %8004 = vmatprep.subr.mxu1 %v9214_v1 }
 0x212   :  { %8005 = vmatpush3.msra.mxu1 %v9520_v42  ;;  %8008 = vmatprep.mubr.msk.f32.mxu1 %vm9215_vm1, %v9214_v1 }
 0x213   :  { %8006 = vmatprep.subr.mxu1 %v9214_v1  ;;  %8011 = vmatprep.subr.mxu0 %v9214_v1 }
 0x214   :  { %8007 = vmatpush3.msra.mxu1 %v9527_v43  ;;  %8012 = vmatpush3.msra.mxu0 %v9529_v44 }
 0x215   :  { %8009 = vmatmul.mubr.f32.vlgmr.msra.gmra.mxu1 %v9214_v1  ;;  %8013 = vmatprep.subr.mxu0 %v9214_v1 }
 0x216   :  { %8014 = vmatpush3.msra.mxu0 %v9536_v45  ;;  %8019 = vmatprep.mubr.msk.f32.mxu0 %vm9215_vm1, %v9214_v1 }
 0x217   :  { %8015 = vmatprep.subr.mxu0 %v9214_v1  ;;  %8022 = vmatprep.subr.mxu1 %v9214_v1 }
 0x218   :  { %8016 = vmatpush3.msra.mxu0 %v9542_v46  ;;  %8023 = vmatpush3.msra.mxu1 %v9491_v36 }
 0x219   :  { %8017 = vmatprep.subr.mxu0 %v9214_v1  ;;  %8024 = vmatprep.subr.mxu1 %v9214_v1 }
 0x21a   :  { %8018 = vmatpush3.msra.mxu0 %v9548_v47  ;;  %8025 = vmatpush3.msra.mxu1 %v9496_v37 }
 0x21b   :  { %8020 = vmatmul.mubr.f32.vlgmr.msra.gmra.mxu0 %v9214_v1  ;;  %8033 = vmatprep.subr.mxu0 %v9214_v1 }
 0x21c   :  { %8034 = vmatpush3.msra.mxu0 %v9506_v39  ;;  %8026 = vmatprep.subr.mxu1 %v9214_v1 }
 0x21d   :  { %8035 = vmatprep.subr.mxu0 %v9214_v1  ;;  %8027 = vmatpush3.msra.mxu1 %v9501_v38 }
 0x21e   :  { %8036 = vmatpush3.msra.mxu0 %v9514_v41  ;;  %8028 = vmatprep.subr.mxu1 %v9214_v1 }
 0x21f   :  { %8037 = vmatprep.subr.mxu0 %v9214_v1  ;;  %8029 = vmatpush3.msra.mxu1 %v9510_v40 }
 0x220   :  { %8038 = vmatpush3.msra.mxu0 %v9520_v42  ;;  %8030 = vmatprep.mubr.msk.f32.mxu1 %vm9215_vm1, %v9214_v1 }
 0x221   :  { %8039 = vmatprep.subr.mxu0 %v9214_v1  ;;  %8041 = vmatprep.mubr.msk.f32.mxu0 %vm9215_vm1, %v9214_v1 }
 0x222   :  { %8040 = vmatpush3.msra.mxu0 %v9527_v43  ;;  %8044 = vmatprep.subr.mxu1 %v9214_v1 }
 0x223   :  { %8055 = vmatprep.subr.mxu0 %v9214_v1 }
 0x2b5   :  { %v537_v48 = vpop.f32.mrf.mxu0 }
 0x2b6   :  { %v9577_v61 = vadd.f32 %v7354_v59, %v537_v48 }
 0x2b7   :  { %v7933_v49 = vpop.f32.mrf.mxu0 }
 0x2b9   :  { %v610_v50 = vpop.f32.mrf.mxu1 }
 0x2ba   :  { %v9583_v2 = vadd.f32 %v7354_v59, %v610_v50  ;;  %v7362_v50 = vld [vmem:[%s9298_s12 + $0x2] ss:$0 sm:$0xff]  ;;  %s7441_s12 = sld [smem:[#allocation22 + $0x1]] }
 0x2bb   :  { %v7944_v51 = vpop.f32.mrf.mxu1 }
 0x2bd   :  { %v693_v52 = vpop.f32.mrf.mxu0 }
 0x2be   :  { %v9586_v9 = vadd.f32 %v7358_v62, %v693_v52 }
 0x2bf   :  { %v7955_v53 = vpop.f32.mrf.mxu0 }
 0x2c3   :  { %v763_v54 = vpop.f32.mrf.mxu1 }
 0x2c4   :  { %v9590_v12 = vadd.f32 %v7358_v62, %v763_v54 }
 0x2c5   :  { %v7966_v55 = vpop.f32.mrf.mxu1 }
 0x2c7   :  { %v846_v56 = vpop.f32.mrf.mxu0 }
 0x2c8   :  { %v9605_v54 = vadd.f32 %v7362_v50, %v846_v56 }
 0x2c9   :  { %v7977_v57 = vpop.f32.mrf.mxu0 }
 0x2cc   :  { %v916_v58 = vpop.f32.mrf.mxu1 }
 0x2cd   :  { %v9607_v59 = vadd.f32 %v7362_v50, %v916_v58 }
 0x2ce   :  { %v7988_v60 = vpop.f32.mrf.mxu1 }
 0x2d1   :  { %v1026_v0 = vpop.f32.mrf.mxu0 }
 0x2d2   :  { %v1031_v3 = vrot.slane %v1026_v0, 1  ;;  %v1034_v5 = vadd.f32 %v1026_v0, %v9577_v61 }
 0x2d3   :  { %v7999_v6 = vpop.f32.mrf.mxu0 }
 0x2d4   :  { %v1035_v10 = vadd.f32 %v1031_v3, %v9583_v2  ;;  %v1036_v11 = vadd.f32 %v9581_v63, %v1034_v5 }
 0x2d5   :  { %v1116_v13 = vpop.f32.mrf.mxu1 }
 0x2d6   :  { %v1037_v14 = vadd.f32 %v9581_v63, %v1035_v10  ;;  %v7370_v16 = vmul.f32 -1.442695, %v1036_v11  ;;  %v1121_v17 = vrot.slane %v1116_v13, 1  ;;  %v1124_v18 = vadd.f32 %v1116_v13, %v9586_v9 }
 0x2d7   :  { %v8010_v20 = vpop.f32.mrf.mxu1 }
 0x2d8   :  { %8668 = vpow2.f32 %v7370_v16  ;;  %v7371_v21 = vmul.f32 -1.442695, %v1037_v14  ;;  %v1125_v22 = vadd.f32 %v1121_v17, %v9590_v12  ;;  %v1126_v23 = vadd.f32 %v9595_v19, %v1124_v18 }
 0x2da   :  { %8670 = vpow2.f32 %v7371_v21  ;;  %v1127_v25 = vadd.f32 %v9595_v19, %v1125_v22  ;;  %v7372_v27 = vmul.f32 -1.442695, %v1126_v23 }
 0x2db   :  { %v1206_v24 = vpop.f32.mrf.mxu0 }
 0x2dc   :  { %v7373_v28 = vmul.f32 -1.442695, %v1127_v25  ;;  %8672 = vpow2.f32 %v7372_v27  ;;  %v1207_v35 = vadd.f32 %v9601_v33, %v1206_v24 }
 0x2dd   :  { %v8021_v26 = vpop.f32.mrf.mxu0 }
 0x2de   :  { %8674 = vpow2.f32 %v7373_v28  ;;  %v1211_v52 = vrot.slane %v1207_v35, 1 }
 0x2e5   :  { %v8669_v29 = vpop.eup %8668 }
 0x2e6   :  { %v1044_v30 = vadd.f32 1.0, %v8669_v29 }
 0x2e7   :  { %v8671_v31 = vpop.eup %8670 }
 0x2e8   :  { %v1045_v32 = vadd.f32 1.0, %v8671_v31  ;;  %8676 = vrcp.f32 %v1044_v30 }
 0x2e9   :  { %v8673_v34 = vpop.eup %8672 }
 0x2ea   :  { %8678 = vrcp.f32 %v1045_v32  ;;  %v1134_v49 = vadd.f32 1.0, %v8673_v34 }
 0x2eb   :  { %v8675_v48 = vpop.eup %8674 }
 0x2ec   :  { %v1135_v51 = vadd.f32 1.0, %v8675_v48  ;;  %8680 = vrcp.f32 %v1134_v49 }
 0x2ee   :  { %8682 = vrcp.f32 %v1135_v51 }
 0x2f5   :  { %v8677_v53 = vpop.eup %8676 }
 0x2f6   :  { %v1214_v55 = vmul.f32 %v8677_v53, %v1207_v35 }
 0x2f7   :  { %v8679_v57 = vpop.eup %8678 }
 0x2f8   :  { %v1215_v60 = vmul.f32 %v8679_v57, %v1211_v52  ;;  %v1216_v62 = vadd.f32 %v1214_v55, %v9605_v54 }
 0x2f9   :  { %v8681_v3 = vpop.eup %8680 }
 0x2fa   :  { %v1217_v0 = vadd.f32 %v1215_v60, %v9607_v59  ;;  %8684 = vtanh.f32 %v1216_v62  ;;  %v1220_v6 = vsub.f32 1.0, %v8681_v3  ;;  %v1224_v13 = vmul.f32 0.0, %v8681_v3 }
 0x2fb   :  { %v8683_v5 = vpop.eup %8682 }
 0x2fc   :  { %8686 = vtanh.f32 %v1217_v0  ;;  %v1221_v11 = vsub.f32 1.0, %v8683_v5  ;;  %v1225_v58 = vmul.f32 0.0, %v8683_v5 }
 0x307   :  { %v8685_v10 = vpop.eup %8684 }
 0x308   :  { %v1222_v56 = vmul.f32 %v8685_v10, %v1220_v6 }
 0x309   :  { %v8687_v14 = vpop.eup %8686 }
 0x30a   :  { %v1223_v16 = vmul.f32 %v8687_v14, %v1221_v11  ;;  %v9611_v17 = vadd.f32 %v1224_v13, %v1222_v56 }
 0x30c   :  { %v9613_v18 = vadd.f32 %v1225_v58, %v1223_v16  ;;  %1229 = vst.msk [vmem:[#allocation2] sm:$0x1] %vm1228_vm6, %v9611_v17 }
 0x30e   :  { %1230 = vst.msk [vmem:[#allocation2 + $0x8] sm:$0x1] %vm1228_vm6, %v9613_v18  ;;  %v1233_v20 = vrot.slane %v9613_v18, 7 }
 0x310   :  { %v1235_v21 = vsel %vm1234_vm7, %v1233_v20, %v9611_v17 }
 0x311   :  { %8031 = vmatmul.mubr.msk.f32.vlgmr.msra.gmra.mxu1 %vm467_vm5, %v1235_v21  ;;  %8042 = vmatmul.mubr.msk.f32.vlgmr.msra.gmra.mxu0 %vm467_vm5, %v1235_v21 }
 0x312   :  { %8045 = vmatpush3.msra.mxu1 %v9529_v44  ;;  %8052 = vmatprep.mubr.msk.f32.mxu1 %vm9215_vm1, %v9214_v1 }
 0x313   :  { %8046 = vmatprep.subr.mxu1 %v9214_v1  ;;  %8056 = vmatpush3.msra.mxu0 %v9491_v36 }
 0x314   :  { %8047 = vmatpush3.msra.mxu1 %v9536_v45  ;;  %8057 = vmatprep.subr.mxu0 %v9214_v1 }
 0x315   :  { %8048 = vmatprep.subr.mxu1 %v9214_v1  ;;  %8058 = vmatpush3.msra.mxu0 %v9496_v37 }
 0x316   :  { %8049 = vmatpush3.msra.mxu1 %v9542_v46  ;;  %8059 = vmatprep.subr.mxu0 %v9214_v1 }
 0x317   :  { %8050 = vmatprep.subr.mxu1 %v9214_v1  ;;  %8060 = vmatpush3.msra.mxu0 %v9501_v38 }
 0x318   :  { %8051 = vmatpush3.msra.mxu1 %v9548_v47  ;;  %8061 = vmatprep.subr.mxu0 %v9214_v1 }
 0x319   :  { %8053 = vmatmul.mubr.msk.f32.vlgmr.msra.gmra.mxu1 %vm467_vm5, %v1235_v21  ;;  %8066 = vmatprep.subr.mxu1 %v9214_v1 }
 0x31a   :  { %8067 = vmatpush3.msra.mxu1 %v9506_v39  ;;  %8062 = vmatpush3.msra.mxu0 %v9510_v40 }
 0x31b   :  { %8068 = vmatprep.subr.mxu1 %v9214_v1  ;;  %8063 = vmatprep.mubr.msk.f32.mxu0 %vm9215_vm1, %v9214_v1 }
 0x31c   :  { %8069 = vmatpush3.msra.mxu1 %v9514_v41  ;;  %8074 = vmatprep.mubr.msk.f32.mxu1 %vm9215_vm1, %v9214_v1 }
 0x31d   :  { %8070 = vmatprep.subr.mxu1 %v9214_v1  ;;  %8077 = vmatprep.subr.mxu0 %v9214_v1 }
 0x31e   :  { %8071 = vmatpush3.msra.mxu1 %v9520_v42 }
 0x31f   :  { %8072 = vmatprep.subr.mxu1 %v9214_v1 }
 0x320   :  { %8073 = vmatpush3.msra.mxu1 %v9527_v43 }
 0x321   :  { %8088 = vmatprep.subr.mxu1 %v9214_v1 }
 0x3d1   :  { %v1304_v22 = vpop.f32.mrf.mxu1  ;;  %v1394_v23 = vpop.f32.mrf.mxu0 }
 0x3d2   :  { %v1309_v24 = vrot.slane %v1304_v22, 7  ;;  %v1313_v25 = vadd.f32 %v1304_v22, %v9583_v2  ;;  %v1399_v30 = vrot.slane %v1394_v23, 7  ;;  %v1403_v34 = vadd.f32 %v1394_v23, %v9590_v12 }
 0x3d3   :  { %v8032_v26 = vpop.f32.mrf.mxu1  ;;  %v8043_v27 = vpop.f32.mrf.mxu0 }
 0x3d4   :  { %v1312_v28 = vadd.f32 %v1309_v24, %v9577_v61  ;;  %v1315_v29 = vadd.f32 %v9581_v63, %v1313_v25  ;;  %v1402_v48 = vadd.f32 %v1399_v30, %v9586_v9  ;;  %v1405_v50 = vadd.f32 %v9595_v19, %v1403_v34 }
 0x3d5   :  { %v1502_v27 = vrot.slane %v9611_v17, 7 }
 0x3d6   :  { %v1314_v31 = vadd.f32 %v9581_v63, %v1312_v28  ;;  %v7376_v32 = vmul.f32 -1.442695, %v1315_v29  ;;  %v1404_v52 = vadd.f32 %v9595_v19, %v1402_v48  ;;  %v7379_v53 = vmul.f32 -1.442695, %v1405_v50 }
 0x3d8   :  { %v7375_v35 = vmul.f32 -1.442695, %v1314_v31  ;;  %8688 = vpow2.f32 %v7376_v32  ;;  %v7378_v55 = vmul.f32 -1.442695, %v1404_v52 }
 0x3d9   :  { %v1484_v49 = vpop.f32.mrf.mxu1 }
 0x3da   :  { %8690 = vpow2.f32 %v7375_v35  ;;  %v1485_v10 = vadd.f32 %v9601_v33, %v1484_v49 }
 0x3db   :  { %v8054_v51 = vpop.f32.mrf.mxu1  ;;  %8692 = vpow2.f32 %v7379_v53 }
 0x3dc   :  { %8694 = vpow2.f32 %v7378_v55  ;;  %v1489_v13 = vrot.slane %v1485_v10, 7 }
 0x3e5   :  { %v8689_v57 = vpop.eup %8688 }
 0x3e6   :  { %v1323_v60 = vadd.f32 1.0, %v8689_v57 }
 0x3e7   :  { %v8691_v62 = vpop.eup %8690 }
 0x3e8   :  { %v1322_v0 = vadd.f32 1.0, %v8691_v62  ;;  %8696 = vrcp.f32 %v1323_v60  ;;  %v8693_v3 = vpop.eup %8692 }
 0x3e9   :  { %v8695_v5 = vpop.eup %8694  ;;  %v1413_v6 = vadd.f32 1.0, %v8693_v3 }
 0x3ea   :  { %8698 = vrcp.f32 %v1322_v0  ;;  %v1412_v11 = vadd.f32 1.0, %v8695_v5 }
 0x3eb   :  { %8700 = vrcp.f32 %v1413_v6 }
 0x3ec   :  { %8702 = vrcp.f32 %v1412_v11 }
 0x3f5   :  { %v8697_v56 = vpop.eup %8696 }
 0x3f6   :  { %v1493_v14 = vmul.f32 %v8697_v56, %v1485_v10 }
 0x3f7   :  { %v8699_v16 = vpop.eup %8698 }
 0x3f8   :  { %v1492_v58 = vmul.f32 %v8699_v16, %v1489_v13  ;;  %v1495_v21 = vadd.f32 %v1493_v14, %v9607_v59  ;;  %v8701_v23 = vpop.eup %8700 }
 0x3f9   :  { %v8703_v24 = vpop.eup %8702  ;;  %v1499_v25 = vsub.f32 1.0, %v8701_v23  ;;  %v1506_v30 = vmul.f32 %v8701_v23, %v1233_v20 }
 0x3fa   :  { %v1494_v22 = vadd.f32 %v1492_v58, %v9605_v54  ;;  %8704 = vtanh.f32 %v1495_v21  ;;  %v1498_v28 = vsub.f32 1.0, %v8703_v24  ;;  %v1505_v34 = vmul.f32 %v8703_v24, %v1502_v27 }
 0x3fc   :  { %8706 = vtanh.f32 %v1494_v22 }
 0x407   :  { %v8705_v26 = vpop.eup %8704 }
 0x408   :  { %v1501_v29 = vmul.f32 %v8705_v26, %v1499_v25 }
 0x409   :  { %v8707_v31 = vpop.eup %8706 }
 0x40a   :  { %v1500_v32 = vmul.f32 %v8707_v31, %v1498_v28  ;;  %v9669_v35 = vadd.f32 %v1506_v30, %v1501_v29 }
 0x40c   :  { %v9671_v48 = vadd.f32 %v1505_v34, %v1500_v32  ;;  %1511 = vst.msk [vmem:[#allocation2 + $0x8] sm:$0x2] %vm1509_vm8, %v9669_v35 }
 0x40e   :  { %1510 = vst.msk [vmem:[#allocation2] sm:$0x2] %vm1509_vm8, %v9671_v48  ;;  %v1514_v49 = vrot.slane %v9671_v48, 1 }
 0x410   :  { %v1515_v17 = vsel %vm1234_vm7, %v9669_v35, %v1514_v49 }
 0x411   :  { %8064 = vmatmul.mubr.msk.f32.vlgmr.msra.gmra.mxu0 %vm467_vm5, %v1515_v17  ;;  %8075 = vmatmul.mubr.msk.f32.vlgmr.msra.gmra.mxu1 %vm467_vm5, %v1515_v17 }
 0x412   :  { %8078 = vmatpush3.msra.mxu0 %v9529_v44  ;;  %8085 = vmatprep.mubr.msk.f32.mxu0 %vm9215_vm1, %v9214_v1 }
 0x413   :  { %8079 = vmatprep.subr.mxu0 %v9214_v1  ;;  %8089 = vmatpush3.msra.mxu1 %v9491_v36 }
 0x414   :  { %8080 = vmatpush3.msra.mxu0 %v9536_v45  ;;  %8090 = vmatprep.subr.mxu1 %v9214_v1 }
 0x415   :  { %8081 = vmatprep.subr.mxu0 %v9214_v1  ;;  %8091 = vmatpush3.msra.mxu1 %v9496_v37 }
 0x416   :  { %8082 = vmatpush3.msra.mxu0 %v9542_v46  ;;  %8092 = vmatprep.subr.mxu1 %v9214_v1 }
 0x417   :  { %8083 = vmatprep.subr.mxu0 %v9214_v1  ;;  %8093 = vmatpush3.msra.mxu1 %v9501_v38 }
 0x418   :  { %8084 = vmatpush3.msra.mxu0 %v9548_v47  ;;  %8094 = vmatprep.subr.mxu1 %v9214_v1 }
 0x419   :  { %8086 = vmatmul.mubr.msk.f32.vlgmr.msra.gmra.mxu0 %vm467_vm5, %v1515_v17  ;;  %8099 = vmatprep.subr.mxu0 %v9214_v1 }
 0x41a   :  { %8100 = vmatpush3.msra.mxu0 %v9506_v39  ;;  %8095 = vmatpush3.msra.mxu1 %v9510_v40 }
 0x41b   :  { %8101 = vmatprep.subr.mxu0 %v9214_v1  ;;  %8096 = vmatprep.mubr.msk.f32.mxu1 %vm9215_vm1, %v9214_v1 }
 0x41c   :  { %8102 = vmatpush3.msra.mxu0 %v9514_v41  ;;  %8107 = vmatprep.mubr.msk.f32.mxu0 %vm9215_vm1, %v9214_v1 }
 0x41d   :  { %8103 = vmatprep.subr.mxu0 %v9214_v1  ;;  %8110 = vmatprep.subr.mxu1 %v9214_v1 }
 0x41e   :  { %8104 = vmatpush3.msra.mxu0 %v9520_v42 }
 0x41f   :  { %8105 = vmatprep.subr.mxu0 %v9214_v1 }
 0x420   :  { %8106 = vmatpush3.msra.mxu0 %v9527_v43 }
 0x421   :  { %8121 = vmatprep.subr.mxu0 %v9214_v1 }
 0x4d1   :  { %v1584_v18 = vpop.f32.mrf.mxu0  ;;  %v1675_v20 = vpop.f32.mrf.mxu1 }
 0x4d2   :  { %v1589_v50 = vrot.slane %v1584_v18, 6  ;;  %v1590_v51 = vrot.slane %v1584_v18, 7  ;;  %v1680_v60 = vrot.slane %v1675_v20, 6  ;;  %v1681_v62 = vrot.slane %v1675_v20, 7 }
 0x4d3   :  { %v8065_v52 = vpop.f32.mrf.mxu0  ;;  %v8076_v53 = vpop.f32.mrf.mxu1 }
 0x4d4   :  { %v1593_v55 = vadd.f32 %v1589_v50, %v9577_v61  ;;  %v1594_v57 = vadd.f32 %v1590_v51, %v9583_v2  ;;  %v1684_v10 = vadd.f32 %v1680_v60, %v9586_v9  ;;  %v1685_v11 = vadd.f32 %v1681_v62, %v9590_v12 }
 0x4d5   :  { %v1786_v60 = vrot.slane %v9669_v35, 7 }
 0x4d6   :  { %v1595_v0 = vadd.f32 %v9581_v63, %v1593_v55  ;;  %v1596_v3 = vadd.f32 %v9581_v63, %v1594_v57  ;;  %v1686_v14 = vadd.f32 %v9595_v19, %v1684_v10  ;;  %v1687_v16 = vadd.f32 %v9595_v19, %v1685_v11 }
 0x4d7   :  { %v1785_v55 = vrot.slane %v9671_v48, 7 }
 0x4d8   :  { %v7382_v5 = vmul.f32 -1.442695, %v1595_v0  ;;  %v7383_v6 = vmul.f32 -1.442695, %v1596_v3  ;;  %v7385_v58 = vmul.f32 -1.442695, %v1686_v14 }
 0x4d9   :  { %v1766_v56 = vpop.f32.mrf.mxu0  ;;  %v7386_v21 = vmul.f32 -1.442695, %v1687_v16 }
 0x4da   :  { %8708 = vpow2.f32 %v7382_v5  ;;  %v1767_v28 = vadd.f32 %v9601_v33, %v1766_v56 }
 0x4db   :  { %8710 = vpow2.f32 %v7383_v6  ;;  %v8087_v13 = vpop.f32.mrf.mxu0 }
 0x4dc   :  { %8712 = vpow2.f32 %v7385_v58  ;;  %v1771_v31 = vrot.slane %v1767_v28, 6  ;;  %v1772_v34 = vrot.slane %v1767_v28, 7 }
 0x4dd   :  { %8714 = vpow2.f32 %v7386_v21 }
 0x4e7   :  { %v8709_v22 = vpop.eup %8708 }
 0x4e8   :  { %v8711_v23 = vpop.eup %8710  ;;  %v1603_v24 = vadd.f32 1.0, %v8709_v22 }
 0x4e9   :  { %v1604_v25 = vadd.f32 1.0, %v8711_v23  ;;  %v8713_v26 = vpop.eup %8712 }
 0x4ea   :  { %8716 = vrcp.f32 %v1603_v24  ;;  %v8715_v27 = vpop.eup %8714  ;;  %v1694_v29 = vadd.f32 1.0, %v8713_v26 }
 0x4eb   :  { %8718 = vrcp.f32 %v1604_v25  ;;  %v1695_v30 = vadd.f32 1.0, %v8715_v27 }
 0x4ec   :  { %8720 = vrcp.f32 %v1694_v29 }
 0x4ed   :  { %8722 = vrcp.f32 %v1695_v30 }
 0x4f7   :  { %v8717_v32 = vpop.eup %8716 }
 0x4f8   :  { %v8719_v49 = vpop.eup %8718  ;;  %v1775_v17 = vmul.f32 %v8717_v32, %v1771_v31 }
 0x4f9   :  { %v1776_v18 = vmul.f32 %v8719_v49, %v1772_v34  ;;  %v8721_v51 = vpop.eup %8720 }
 0x4fa   :  { %v1777_v20 = vadd.f32 %v1775_v17, %v9605_v54  ;;  %v8723_v52 = vpop.eup %8722  ;;  %v1781_v53 = vsub.f32 1.0, %v8721_v51  ;;  %v1789_v5 = vmul.f32 %v8721_v51, %v1785_v55 }
 0x4fb   :  { %v1778_v50 = vadd.f32 %v1776_v18, %v9607_v59  ;;  %v1782_v62 = vsub.f32 1.0, %v8723_v52  ;;  %v1790_v10 = vmul.f32 %v8723_v52, %v1786_v60 }
 0x4fc   :  { %8724 = vtanh.f32 %v1777_v20 }
 0x4fd   :  { %8726 = vtanh.f32 %v1778_v50 }
 0x509   :  { %v8725_v57 = vpop.eup %8724 }
 0x50a   :  { %v8727_v0 = vpop.eup %8726  ;;  %v1783_v3 = vmul.f32 %v8725_v57, %v1781_v53 }
 0x50b   :  { %v1784_v6 = vmul.f32 %v8727_v0, %v1782_v62 }
 0x50c   :  { %v9724_v11 = vadd.f32 %v1789_v5, %v1783_v3 }
 0x50d   :  { %v9726_v56 = vadd.f32 %v1790_v10, %v1784_v6 }
 0x50e   :  { %1794 = vst.msk [vmem:[#allocation2] sm:$0x4] %vm1793_vm9, %v9724_v11  ;;  %v1798_v13 = vrot.slane %v9724_v11, 2 }
 0x50f   :  { %1795 = vst.msk [vmem:[#allocation2 + $0x8] sm:$0x4] %vm1793_vm9, %v9726_v56  ;;  %v1799_v48 = vrot.slane %v9726_v56, 1 }
 0x511   :  { %v1800_v35 = vsel %vm1234_vm7, %v1799_v48, %v1798_v13 }
 0x512   :  { %8097 = vmatmul.mubr.msk.f32.vlgmr.msra.gmra.mxu1 %vm467_vm5, %v1800_v35  ;;  %8108 = vmatmul.mubr.msk.f32.vlgmr.msra.gmra.mxu0 %vm467_vm5, %v1800_v35 }
 0x513   :  { %8111 = vmatpush3.msra.mxu1 %v9529_v44  ;;  %8118 = vmatprep.mubr.msk.f32.mxu1 %vm9215_vm1, %v9214_v1 }
 0x514   :  { %8112 = vmatprep.subr.mxu1 %v9214_v1  ;;  %8122 = vmatpush3.msra.mxu0 %v9491_v36 }
 0x515   :  { %8113 = vmatpush3.msra.mxu1 %v9536_v45  ;;  %8123 = vmatprep.subr.mxu0 %v9214_v1 }
 0x516   :  { %8114 = vmatprep.subr.mxu1 %v9214_v1  ;;  %8124 = vmatpush3.msra.mxu0 %v9496_v37 }
 0x517   :  { %8115 = vmatpush3.msra.mxu1 %v9542_v46  ;;  %8125 = vmatprep.subr.mxu0 %v9214_v1 }
 0x518   :  { %8116 = vmatprep.subr.mxu1 %v9214_v1  ;;  %8126 = vmatpush3.msra.mxu0 %v9501_v38 }
 0x519   :  { %8117 = vmatpush3.msra.mxu1 %v9548_v47  ;;  %8127 = vmatprep.subr.mxu0 %v9214_v1 }
 0x51a   :  { %8119 = vmatmul.mubr.msk.f32.vlgmr.msra.gmra.mxu1 %vm467_vm5, %v1800_v35  ;;  %8132 = vmatprep.subr.mxu1 %v9214_v1 }
 0x51b   :  { %8133 = vmatpush3.msra.mxu1 %v9506_v39  ;;  %8128 = vmatpush3.msra.mxu0 %v9510_v40 }
 0x51c   :  { %8134 = vmatprep.subr.mxu1 %v9214_v1  ;;  %8129 = vmatprep.mubr.msk.f32.mxu0 %vm9215_vm1, %v9214_v1 }
 0x51d   :  { %8135 = vmatpush3.msra.mxu1 %v9514_v41  ;;  %8140 = vmatprep.mubr.msk.f32.mxu1 %vm9215_vm1, %v9214_v1 }
 0x51e   :  { %8136 = vmatprep.subr.mxu1 %v9214_v1  ;;  %8143 = vmatprep.subr.mxu0 %v9214_v1 }
 0x51f   :  { %8137 = vmatpush3.msra.mxu1 %v9520_v42 }
 0x520   :  { %8138 = vmatprep.subr.mxu1 %v9214_v1 }
 0x521   :  { %8139 = vmatpush3.msra.mxu1 %v9527_v43 }
 0x522   :  { %8154 = vmatprep.subr.mxu1 %v9214_v1 }
 0x5d2   :  { %v1869_v14 = vpop.f32.mrf.mxu1  ;;  %v1960_v16 = vpop.f32.mrf.mxu0 }
 0x5d3   :  { %v1874_v58 = vrot.slane %v1869_v14, 5  ;;  %v1875_v21 = vrot.slane %v1869_v14, 6  ;;  %v1965_v26 = vrot.slane %v1960_v16, 5  ;;  %v1966_v27 = vrot.slane %v1960_v16, 6 }
 0x5d4   :  { %v8098_v22 = vpop.f32.mrf.mxu1  ;;  %v8109_v23 = vpop.f32.mrf.mxu0 }
 0x5d5   :  { %v1878_v24 = vadd.f32 %v1874_v58, %v9577_v61  ;;  %v1879_v25 = vadd.f32 %v1875_v21, %v9583_v2  ;;  %v1969_v32 = vadd.f32 %v1965_v26, %v9586_v9  ;;  %v1970_v34 = vadd.f32 %v1966_v27, %v9590_v12 }
 0x5d6   :  { %v2071_v27 = vrot.slane %v9726_v56, 7 }
 0x5d7   :  { %v1880_v28 = vadd.f32 %v9581_v63, %v1878_v24  ;;  %v1881_v29 = vadd.f32 %v9581_v63, %v1879_v25  ;;  %v1971_v18 = vadd.f32 %v9595_v19, %v1969_v32  ;;  %v1972_v20 = vadd.f32 %v9595_v19, %v1970_v34 }
 0x5d8   :  { %v2070_v24 = vrot.slane %v9724_v11, 7 }
 0x5d9   :  { %v7389_v30 = vmul.f32 -1.442695, %v1880_v28  ;;  %v7390_v31 = vmul.f32 -1.442695, %v1881_v29  ;;  %v7392_v50 = vmul.f32 -1.442695, %v1971_v18 }
 0x5da   :  { %v2051_v49 = vpop.f32.mrf.mxu1  ;;  %v7393_v51 = vmul.f32 -1.442695, %v1972_v20 }
 0x5db   :  { %8728 = vpow2.f32 %v7389_v30  ;;  %v2052_v0 = vadd.f32 %v9601_v33, %v2051_v49 }
 0x5dc   :  { %8730 = vpow2.f32 %v7390_v31  ;;  %v8120_v17 = vpop.f32.mrf.mxu1 }
 0x5dd   :  { %8732 = vpow2.f32 %v7392_v50  ;;  %v2056_v6 = vrot.slane %v2052_v0, 5  ;;  %v2057_v13 = vrot.slane %v2052_v0, 6 }
 0x5de   :  { %8734 = vpow2.f32 %v7393_v51 }
 0x5e8   :  { %v8729_v52 = vpop.eup %8728 }
 0x5e9   :  { %v8731_v53 = vpop.eup %8730  ;;  %v1888_v55 = vadd.f32 1.0, %v8729_v52 }
 0x5ea   :  { %v1889_v57 = vadd.f32 1.0, %v8731_v53  ;;  %v8733_v60 = vpop.eup %8732 }
 0x5eb   :  { %8736 = vrcp.f32 %v1888_v55  ;;  %v8735_v62 = vpop.eup %8734  ;;  %v1979_v3 = vadd.f32 1.0, %v8733_v60 }
 0x5ec   :  { %8738 = vrcp.f32 %v1889_v57  ;;  %v1980_v5 = vadd.f32 1.0, %v8735_v62 }
 0x5ed   :  { %8740 = vrcp.f32 %v1979_v3 }
 0x5ee   :  { %8742 = vrcp.f32 %v1980_v5 }
 0x5f8   :  { %v8737_v10 = vpop.eup %8736 }
 0x5f9   :  { %v8739_v48 = vpop.eup %8738  ;;  %v2060_v35 = vmul.f32 %v8737_v10, %v2056_v6 }
 0x5fa   :  { %v2061_v14 = vmul.f32 %v8739_v48, %v2057_v13  ;;  %v8741_v21 = vpop.eup %8740 }
 0x5fb   :  { %v2062_v16 = vadd.f32 %v2060_v35, %v9605_v54  ;;  %v8743_v22 = vpop.eup %8742  ;;  %v2066_v23 = vsub.f32 1.0, %v8741_v21  ;;  %v2074_v30 = vmul.f32 %v8741_v21, %v2070_v24 }
 0x5fc   :  { %v2063_v58 = vadd.f32 %v2061_v14, %v9607_v59  ;;  %v2067_v26 = vsub.f32 1.0, %v8743_v22  ;;  %v2075_v32 = vmul.f32 %v8743_v22, %v2071_v27 }
 0x5fd   :  { %8744 = vtanh.f32 %v2062_v16 }
 0x5fe   :  { %8746 = vtanh.f32 %v2063_v58 }
 0x60a   :  { %v8745_v25 = vpop.eup %8744 }
 0x60b   :  { %v8747_v28 = vpop.eup %8746  ;;  %v2068_v29 = vmul.f32 %v8745_v25, %v2066_v23 }
 0x60c   :  { %v2069_v31 = vmul.f32 %v8747_v28, %v2067_v26 }
 0x60d   :  { %v9779_v34 = vadd.f32 %v2074_v30, %v2068_v29 }
 0x60e   :  { %v9781_v49 = vadd.f32 %v2075_v32, %v2069_v31 }
 0x60f   :  { %2079 = vst.msk [vmem:[#allocation2] sm:$0x8] %vm2078_vm10, %v9779_v34  ;;  %v2083_v17 = vrot.slane %v9779_v34, 3  ;;  %v2355_v28 = vrot.slane %v9779_v34, 7 }
 0x610   :  { %2080 = vst.msk [vmem:[#allocation2 + $0x8] sm:$0x8] %vm2078_vm10, %v9781_v49  ;;  %v2084_v11 = vrot.slane %v9781_v49, 2  ;;  %v2356_v31 = vrot.slane %v9781_v49, 7  ;;  %vm3468_vm10 = vcmask 523264  }
 0x612   :  { %v2085_v56 = vsel %vm1234_vm7, %v2084_v11, %v2083_v17 }
 0x613   :  { %8130 = vmatmul.mubr.msk.f32.vlgmr.msra.gmra.mxu0 %vm467_vm5, %v2085_v56  ;;  %8141 = vmatmul.mubr.msk.f32.vlgmr.msra.gmra.mxu1 %vm467_vm5, %v2085_v56 }
 0x614   :  { %8144 = vmatpush3.msra.mxu0 %v9529_v44  ;;  %8151 = vmatprep.mubr.msk.f32.mxu0 %vm9215_vm1, %v9214_v1 }
 0x615   :  { %8145 = vmatprep.subr.mxu0 %v9214_v1  ;;  %8155 = vmatpush3.msra.mxu1 %v9491_v36 }
 0x616   :  { %8146 = vmatpush3.msra.mxu0 %v9536_v45  ;;  %8156 = vmatprep.subr.mxu1 %v9214_v1 }
 0x617   :  { %8147 = vmatprep.subr.mxu0 %v9214_v1  ;;  %8157 = vmatpush3.msra.mxu1 %v9496_v37 }
 0x618   :  { %8148 = vmatpush3.msra.mxu0 %v9542_v46  ;;  %8158 = vmatprep.subr.mxu1 %v9214_v1 }
 0x619   :  { %8149 = vmatprep.subr.mxu0 %v9214_v1  ;;  %8159 = vmatpush3.msra.mxu1 %v9501_v38 }
 0x61a   :  { %8150 = vmatpush3.msra.mxu0 %v9548_v47  ;;  %8160 = vmatprep.subr.mxu1 %v9214_v1 }
 0x61b   :  { %8152 = vmatmul.mubr.msk.f32.vlgmr.msra.gmra.mxu0 %vm467_vm5, %v2085_v56  ;;  %8165 = vmatprep.subr.mxu0 %v9214_v1 }
 0x61c   :  { %8166 = vmatpush3.msra.mxu0 %v9506_v39  ;;  %8161 = vmatpush3.msra.mxu1 %v9510_v40 }
 0x61d   :  { %8167 = vmatprep.subr.mxu0 %v9214_v1  ;;  %8162 = vmatprep.mubr.msk.f32.mxu1 %vm9215_vm1, %v9214_v1 }
 0x61e   :  { %8168 = vmatpush3.msra.mxu0 %v9514_v41  ;;  %8173 = vmatprep.mubr.msk.f32.mxu0 %vm9215_vm1, %v9214_v1 }
 0x61f   :  { %8169 = vmatprep.subr.mxu0 %v9214_v1  ;;  %8176 = vmatprep.subr.mxu1 %v9214_v1 }
 0x620   :  { %8170 = vmatpush3.msra.mxu0 %v9520_v42 }
 0x621   :  { %8171 = vmatprep.subr.mxu0 %v9214_v1 }
 0x622   :  { %8172 = vmatpush3.msra.mxu0 %v9527_v43 }
 0x623   :  { %8187 = vmatprep.subr.mxu0 %v9214_v1 }
 0x6d3   :  { %v2154_v36 = vpop.f32.mrf.mxu0  ;;  %v2245_v37 = vpop.f32.mrf.mxu1 }
 0x6d4   :  { %v2159_v38 = vrot.slane %v2154_v36, 4  ;;  %v2160_v39 = vrot.slane %v2154_v36, 5  ;;  %v2250_v46 = vrot.slane %v2245_v37, 4  ;;  %v2251_v47 = vrot.slane %v2245_v37, 5 }
 0x6d5   :  { %v8131_v40 = vpop.f32.mrf.mxu0  ;;  %v8142_v41 = vpop.f32.mrf.mxu1 }
 0x6d6   :  { %v2163_v44 = vadd.f32 %v2159_v38, %v9577_v61  ;;  %v2164_v45 = vadd.f32 %v2160_v39, %v9583_v2  ;;  %v2254_v50 = vadd.f32 %v2250_v46, %v9586_v9  ;;  %v2255_v51 = vadd.f32 %v2251_v47, %v9590_v12  ;;  %v9845_v40 = vld [vmem:[#allocation12 + $0x58] sm:$0xff]  ;;  %v9862_v46 = vld [vmem:[#allocation12 + $0x48] sm:$0xff] }
 0x6d7   :  { %v9851_v41 = vld [vmem:[#allocation12 + $0x18] sm:$0xff]  ;;  %v9867_v47 = vld [vmem:[#allocation12 + $0x8] sm:$0xff] }
 0x6d8   :  { %v2165_v42 = vadd.f32 %v9581_v63, %v2163_v44  ;;  %v2166_v18 = vadd.f32 %v9581_v63, %v2164_v45  ;;  %v2256_v55 = vadd.f32 %v9595_v19, %v2254_v50  ;;  %v2257_v57 = vadd.f32 %v9595_v19, %v2255_v51  ;;  %v9854_v44 = vld [vmem:[#allocation12 + $0x50] sm:$0xff]  ;;  %v9892_v50 = vld [vmem:[#allocation12 + $0x28] sm:$0xff]  ;;  %v9896_v51 = vld [vmem:[#allocation12 + $0x20] sm:$0xff] }
 0x6d9   :  { %v9859_v45 = vld [vmem:[#allocation12 + $0x10] sm:$0xff] }
 0x6da   :  { %v7396_v20 = vmul.f32 -1.442695, %v2165_v42  ;;  %v7397_v43 = vmul.f32 -1.442695, %v2166_v18  ;;  %v7399_v60 = vmul.f32 -1.442695, %v2256_v55 }
 0x6db   :  { %v2336_v52 = vpop.f32.mrf.mxu0  ;;  %v7400_v62 = vmul.f32 -1.442695, %v2257_v57  ;;  %v9870_v42 = vld [vmem:[#allocation12 + $0x40] sm:$0xff]  ;;  %v9876_v18 = vld [vmem:[#allocation12 + $0x38] sm:$0xff] }
 0x6dc   :  { %8748 = vpow2.f32 %v7396_v20  ;;  %v2337_v13 = vadd.f32 %v9601_v33, %v2336_v52  ;;  %v9879_v20 = vld [vmem:[#allocation12] sm:$0xff]  ;;  %v3266_v52 = vld [vmem:[%s10545_s17] sm:$0x3] }
 0x6dd   :  { %8750 = vpow2.f32 %v7397_v43  ;;  %v8153_v53 = vpop.f32.mrf.mxu0  ;;  %v9885_v43 = vld [vmem:[#allocation12 + $0x30] sm:$0xff]  ;;  %v3270_v55 = vrot.slane %v3266_v52, %v9424_v7  ;;  %v3281_v57 = vrot.slane %v3266_v52, %v9427_v8 }
 0x6de   :  { %8752 = vpow2.f32 %v7399_v60  ;;  %v2341_v14 = vrot.slane %v2337_v13, 4  ;;  %v2342_v58 = vrot.slane %v2337_v13, 5  ;;  %v3223_v53 = vld [vmem:[%s10546_s8] sm:$0x3] }
 0x6df   :  { %8754 = vpow2.f32 %v7400_v62  ;;  %3272 = vbcast.lane.b32.xlu1 %v3270_v55, 256  ;;  %3283 = vbcast.lane.b32.xlu0 %v3281_v57, 256  ;;  %v3227_v60 = vrot.slane %v3223_v53, %v9424_v7  ;;  %v3238_v62 = vrot.slane %v3223_v53, %v9427_v8 }
 0x6e3   :  { %3276 = vbcast.lane.b32.xlu1 %v3270_v55, 264  ;;  %3229 = vbcast.lane.b32.xlu0 %v3227_v60, 256 }
 0x6e7   :  { %3287 = vbcast.lane.b32.xlu1 %v3281_v57, 264  ;;  %3240 = vbcast.lane.b32.xlu0 %v3238_v62, 256 }
 0x6e9   :  { %v8749_v0 = vpop.eup %8748 }
 0x6ea   :  { %v8751_v63 = vpop.eup %8750  ;;  %v2173_v3 = vadd.f32 1.0, %v8749_v0 }
 0x6eb   :  { %v2174_v5 = vadd.f32 1.0, %v8751_v63  ;;  %v8753_v6 = vpop.eup %8752  ;;  %3233 = vbcast.lane.b32.xlu1 %v3227_v60, 264 }
 0x6ec   :  { %8756 = vrcp.f32 %v2173_v3  ;;  %v8755_v10 = vpop.eup %8754  ;;  %v2264_v48 = vadd.f32 1.0, %v8753_v6 }
 0x6ed   :  { %8758 = vrcp.f32 %v2174_v5  ;;  %v2265_v35 = vadd.f32 1.0, %v8755_v10 }
 0x6ee   :  { %8760 = vrcp.f32 %v2264_v48 }
 0x6ef   :  { %8762 = vrcp.f32 %v2265_v35  ;;  %3244 = vbcast.lane.b32.xlu1 %v3238_v62, 264 }
 0x6f9   :  { %v8757_v16 = vpop.eup %8756 }
 0x6fa   :  { %v8759_v19 = vpop.eup %8758  ;;  %v2345_v21 = vmul.f32 %v8757_v16, %v2341_v14  ;;  %v9909_v16 = vld [vmem:[%s10544_s5] ss:$0 sm:$0xff] }
 0x6fb   :  { %v2346_v22 = vmul.f32 %v8759_v19, %v2342_v58  ;;  %v8761_v25 = vpop.eup %8760 }
 0x6fc   :  { %v2347_v23 = vadd.f32 %v2345_v21, %v9605_v54  ;;  %v8763_v26 = vpop.eup %8762  ;;  %v2351_v27 = vsub.f32 1.0, %v8761_v25  ;;  %v2359_v11 = vmul.f32 %v8761_v25, %v2355_v28 }
 0x6fd   :  { %v2348_v24 = vadd.f32 %v2346_v22, %v9607_v59  ;;  %v2352_v30 = vsub.f32 1.0, %v8763_v26  ;;  %v2360_v36 = vmul.f32 %v8763_v26, %v2356_v31 }
 0x6fe   :  { %8764 = vtanh.f32 %v2347_v23 }
 0x6ff   :  { %8766 = vtanh.f32 %v2348_v24 }
 0x70b   :  { %v8765_v29 = vpop.eup %8764 }
 0x70c   :  { %v8767_v32 = vpop.eup %8766  ;;  %v2353_v17 = vmul.f32 %v8765_v29, %v2351_v27  ;;  %v9916_v27 = vld [vmem:[%s10544_s5 + $0x1] ss:$0 sm:$0xff] }
 0x70d   :  { %v2354_v56 = vmul.f32 %v8767_v32, %v2352_v30 }
 0x70e   :  { %v9834_v37 = vadd.f32 %v2359_v11, %v2353_v17 }
 0x70f   :  { %v9836_v38 = vadd.f32 %v2360_v36, %v2354_v56 }
 0x710   :  { %2364 = vst.msk [vmem:[#allocation2] sm:$0x10] %vm2363_vm11, %v9834_v37  ;;  %v2368_v39 = vrot.slane %v9834_v37, 4 }
 0x711   :  { %2365 = vst.msk [vmem:[#allocation2 + $0x8] sm:$0x10] %vm2363_vm11, %v9836_v38  ;;  %v2369_v34 = vrot.slane %v9836_v38, 3 }
 0x713   :  { %v2370_v49 = vsel %vm1234_vm7, %v2369_v34, %v2368_v39 }
 0x714   :  { %8163 = vmatmul.mubr.msk.f32.vlgmr.msra.gmra.mxu1 %vm467_vm5, %v2370_v49  ;;  %8174 = vmatmul.mubr.msk.f32.vlgmr.msra.gmra.mxu0 %vm467_vm5, %v2370_v49 }
 0x715   :  { %8177 = vmatpush3.msra.mxu1 %v9845_v40  ;;  %8184 = vmatprep.mubr.msk.f32.mxu1 %vm9215_vm1, %v9214_v1 }
 0x716   :  { %8178 = vmatprep.subr.mxu1 %v9214_v1  ;;  %8188 = vmatpush3.msra.mxu0 %v9851_v41 }
 0x717   :  { %8179 = vmatpush3.msra.mxu1 %v9854_v44  ;;  %8189 = vmatprep.subr.mxu0 %v9214_v1 }
 0x718   :  { %8180 = vmatprep.subr.mxu1 %v9214_v1  ;;  %8190 = vmatpush3.msra.mxu0 %v9859_v45 }
 0x719   :  { %8181 = vmatpush3.msra.mxu1 %v9862_v46  ;;  %8191 = vmatprep.subr.mxu0 %v9214_v1 }
 0x71a   :  { %8182 = vmatprep.subr.mxu1 %v9214_v1  ;;  %8192 = vmatpush3.msra.mxu0 %v9867_v47 }
 0x71b   :  { %8183 = vmatpush3.msra.mxu1 %v9870_v42  ;;  %8193 = vmatprep.subr.mxu0 %v9214_v1 }
 0x71c   :  { %8185 = vmatmul.mubr.msk.f32.vlgmr.msra.gmra.mxu1 %vm467_vm5, %v2370_v49  ;;  %8198 = vmatprep.subr.mxu1 %v9214_v1 }
 0x71d   :  { %8199 = vmatpush3.msra.mxu1 %v9876_v18  ;;  %8194 = vmatpush3.msra.mxu0 %v9879_v20 }
 0x71e   :  { %8200 = vmatprep.subr.mxu1 %v9214_v1  ;;  %8195 = vmatprep.mubr.msk.f32.mxu0 %vm9215_vm1, %v9214_v1 }
 0x71f   :  { %8201 = vmatpush3.msra.mxu1 %v9885_v43  ;;  %8206 = vmatprep.mubr.msk.f32.mxu1 %vm9215_vm1, %v9214_v1 }
 0x720   :  { %8202 = vmatprep.subr.mxu1 %v9214_v1  ;;  %8209 = vmatprep.subr.mxu0 %v9214_v1 }
 0x721   :  { %8203 = vmatpush3.msra.mxu1 %v9892_v50 }
 0x722   :  { %8204 = vmatprep.subr.mxu1 %v9214_v1 }
 0x723   :  { %8205 = vmatpush3.msra.mxu1 %v9896_v51 }
 0x724   :  { %8220 = vmatprep.subr.mxu1 %v9214_v1 }
 0x7d4   :  { %v2439_v0 = vpop.f32.mrf.mxu1  ;;  %v2530_v63 = vpop.f32.mrf.mxu0 }
 0x7d5   :  { %v2444_v3 = vrot.slane %v2439_v0, 3  ;;  %v2445_v5 = vrot.slane %v2439_v0, 4  ;;  %v2535_v35 = vrot.slane %v2530_v63, 3  ;;  %v2536_v14 = vrot.slane %v2530_v63, 4 }
 0x7d6   :  { %v8164_v6 = vpop.f32.mrf.mxu1  ;;  %v8175_v10 = vpop.f32.mrf.mxu0 }
 0x7d7   :  { %v2448_v13 = vadd.f32 %v2444_v3, %v9577_v61  ;;  %v2449_v48 = vadd.f32 %v2445_v5, %v9583_v2  ;;  %v2539_v23 = vadd.f32 %v2535_v35, %v9586_v9  ;;  %v2540_v24 = vadd.f32 %v2536_v14, %v9590_v12 }
 0x7d8   :  { %v2641_v35 = vrot.slane %v9836_v38, 7 }
 0x7d9   :  { %v2450_v58 = vadd.f32 %v9909_v16, %v2448_v13  ;;  %v2451_v19 = vadd.f32 %v9909_v16, %v2449_v48  ;;  %v2541_v28 = vadd.f32 %v9916_v27, %v2539_v23  ;;  %v2542_v29 = vadd.f32 %v9916_v27, %v2540_v24 }
 0x7db   :  { %v7403_v21 = vmul.f32 -1.442695, %v2450_v58  ;;  %v7404_v22 = vmul.f32 -1.442695, %v2451_v19  ;;  %v7406_v30 = vmul.f32 -1.442695, %v2541_v28 }
 0x7dc   :  { %v2621_v25 = vpop.f32.mrf.mxu1  ;;  %v7407_v31 = vmul.f32 -1.442695, %v2542_v29 }
 0x7dd   :  { %8768 = vpow2.f32 %v7403_v21  ;;  %v2622_v34 = vadd.f32 %v9601_v33, %v2621_v25  ;;  %v2640_v33 = vrot.slane %v9834_v37, 7 }
 0x7de   :  { %8770 = vpow2.f32 %v7404_v22  ;;  %v8186_v26 = vpop.f32.mrf.mxu1 }
 0x7df   :  { %8772 = vpow2.f32 %v7406_v30  ;;  %v2626_v53 = vrot.slane %v2622_v34, 3  ;;  %v2627_v57 = vrot.slane %v2622_v34, 4 }
 0x7e0   :  { %8774 = vpow2.f32 %v7407_v31 }
 0x7ea   :  { %v8769_v32 = vpop.eup %8768 }
 0x7eb   :  { %v8771_v17 = vpop.eup %8770  ;;  %v2458_v11 = vadd.f32 1.0, %v8769_v32 }
 0x7ec   :  { %v2459_v56 = vadd.f32 1.0, %v8771_v17  ;;  %v8773_v36 = vpop.eup %8772 }
 0x7ed   :  { %8776 = vrcp.f32 %v2458_v11  ;;  %v8775_v39 = vpop.eup %8774  ;;  %v2549_v49 = vadd.f32 1.0, %v8773_v36 }
 0x7ee   :  { %8778 = vrcp.f32 %v2459_v56  ;;  %v2550_v52 = vadd.f32 1.0, %v8775_v39 }
 0x7ef   :  { %8780 = vrcp.f32 %v2549_v49 }
 0x7f0   :  { %8782 = vrcp.f32 %v2550_v52 }
 0x7fa   :  { %v8777_v55 = vpop.eup %8776 }
 0x7fb   :  { %v8779_v60 = vpop.eup %8778  ;;  %v2630_v62 = vmul.f32 %v8777_v55, %v2626_v53 }
 0x7fc   :  { %v2631_v0 = vmul.f32 %v8779_v60, %v2627_v57  ;;  %v8781_v5 = vpop.eup %8780 }
 0x7fd   :  { %v2632_v63 = vadd.f32 %v2630_v62, %v9605_v54  ;;  %v8783_v6 = vpop.eup %8782  ;;  %v2636_v10 = vsub.f32 1.0, %v8781_v5  ;;  %v2644_v19 = vmul.f32 %v8781_v5, %v2640_v33 }
 0x7fe   :  { %v2633_v3 = vadd.f32 %v2631_v0, %v9607_v59  ;;  %v2637_v48 = vsub.f32 1.0, %v8783_v6  ;;  %v2645_v22 = vmul.f32 %v8783_v6, %v2641_v35 }
 0x7ff   :  { %8784 = vtanh.f32 %v2632_v63 }
 0x800   :  { %8786 = vtanh.f32 %v2633_v3  ;;  %v9979_v3 = vld [vmem:[%s10544_s5 + $0x2] ss:$0 sm:$0xff] }
 0x80c   :  { %v8785_v13 = vpop.eup %8784 }
 0x80d   :  { %v8787_v14 = vpop.eup %8786  ;;  %v2638_v58 = vmul.f32 %v8785_v13, %v2636_v10 }
 0x80e   :  { %v2639_v21 = vmul.f32 %v8787_v14, %v2637_v48 }
 0x80f   :  { %v9925_v23 = vadd.f32 %v2644_v19, %v2638_v58 }
 0x810   :  { %v9927_v24 = vadd.f32 %v2645_v22, %v2639_v21 }
 0x811   :  { %2649 = vst.msk [vmem:[#allocation2] sm:$0x20] %vm2648_vm12, %v9925_v23  ;;  %v2653_v25 = vrot.slane %v9925_v23, 5 }
 0x812   :  { %2650 = vst.msk [vmem:[#allocation2 + $0x8] sm:$0x20] %vm2648_vm12, %v9927_v24  ;;  %v2654_v37 = vrot.slane %v9927_v24, 4  ;;  %vm3218_vm12 = vcmask 261127  }
 0x814   :  { %v2655_v38 = vsel %vm1234_vm7, %v2654_v37, %v2653_v25  ;;  %v3273_v37 = vpop.permute.xlu1 %3272 }
 0x815   :  { %8196 = vmatmul.mubr.msk.f32.vlgmr.msra.gmra.mxu0 %vm467_vm5, %v2655_v38  ;;  %8207 = vmatmul.mubr.msk.f32.vlgmr.msra.gmra.mxu1 %vm467_vm5, %v2655_v38  ;;  %vm3289_vm14 = vcmp.eq.s32.totalorder %v9451_v15, %v3273_v37 }
 0x816   :  { %8210 = vmatpush3.msra.mxu0 %v9845_v40  ;;  %8217 = vmatprep.mubr.msk.f32.mxu0 %vm9215_vm1, %v9214_v1 }
 0x817   :  { %8211 = vmatprep.subr.mxu0 %v9214_v1  ;;  %8221 = vmatpush3.msra.mxu1 %v9851_v41  ;;  %v9966_v41 = vld [vmem:[#allocation9] sm:$0x3] }
 0x818   :  { %8212 = vmatpush3.msra.mxu0 %v9854_v44  ;;  %8222 = vmatprep.subr.mxu1 %v9214_v1 }
 0x819   :  { %8213 = vmatprep.subr.mxu0 %v9214_v1  ;;  %8223 = vmatpush3.msra.mxu1 %v9859_v45 }
 0x81a   :  { %8214 = vmatpush3.msra.mxu0 %v9862_v46  ;;  %8224 = vmatprep.subr.mxu1 %v9214_v1 }
 0x81b   :  { %8215 = vmatprep.subr.mxu0 %v9214_v1  ;;  %8225 = vmatpush3.msra.mxu1 %v9867_v47 }
 0x81c   :  { %8216 = vmatpush3.msra.mxu0 %v9870_v42  ;;  %8226 = vmatprep.subr.mxu1 %v9214_v1 }
 0x81d   :  { %8218 = vmatmul.mubr.msk.f32.vlgmr.msra.gmra.mxu0 %vm467_vm5, %v2655_v38  ;;  %8231 = vmatprep.subr.mxu0 %v9214_v1 }
 0x81e   :  { %8232 = vmatpush3.msra.mxu0 %v9876_v18  ;;  %8227 = vmatpush3.msra.mxu1 %v9879_v20 }
 0x81f   :  { %8233 = vmatprep.subr.mxu0 %v9214_v1  ;;  %8228 = vmatprep.mubr.msk.f32.mxu1 %vm9215_vm1, %v9214_v1 }
 0x820   :  { %8234 = vmatpush3.msra.mxu0 %v9885_v43  ;;  %8239 = vmatprep.mubr.msk.f32.mxu0 %vm9215_vm1, %v9214_v1 }
 0x821   :  { %8235 = vmatprep.subr.mxu0 %v9214_v1  ;;  %8242 = vmatprep.subr.mxu1 %v9214_v1 }
 0x822   :  { %8236 = vmatpush3.msra.mxu0 %v9892_v50 }
 0x823   :  { %8237 = vmatprep.subr.mxu0 %v9214_v1 }
 0x824   :  { %8238 = vmatpush3.msra.mxu0 %v9896_v51 }
 0x825   :  { %8253 = vmatprep.subr.msk.mxu0 %vm309_vm0, %v9966_v41 }
 0x8d5   :  { %v2724_v45 = vpop.f32.mrf.mxu0  ;;  %v2815_v47 = vpop.f32.mrf.mxu1 }
 0x8d6   :  { %v2729_v18 = vrot.slane %v2724_v45, 2  ;;  %v2730_v20 = vrot.slane %v2724_v45, 3  ;;  %v2820_v50 = vrot.slane %v2815_v47, 2  ;;  %v2821_v30 = vrot.slane %v2815_v47, 3 }
 0x8d7   :  { %v8197_v43 = vpop.f32.mrf.mxu0  ;;  %v8208_v26 = vpop.f32.mrf.mxu1  ;;  %v2925_v45 = vrot.slane %v9925_v23, 7 }
 0x8d8   :  { %v2733_v28 = vadd.f32 %v2729_v18, %v9577_v61  ;;  %v2734_v29 = vadd.f32 %v2730_v20, %v9583_v2  ;;  %v2824_v11 = vadd.f32 %v2820_v50, %v9586_v9  ;;  %v2825_v56 = vadd.f32 %v2821_v30, %v9590_v12 }
 0x8d9   :  { %v2926_v20 = vrot.slane %v9927_v24, 7 }
 0x8da   :  { %v2735_v31 = vadd.f32 %v9909_v16, %v2733_v28  ;;  %v2736_v51 = vadd.f32 %v9909_v16, %v2734_v29  ;;  %v2826_v34 = vadd.f32 %v9916_v27, %v2824_v11  ;;  %v2827_v49 = vadd.f32 %v9916_v27, %v2825_v56  ;;  %v3265_v11 = vld [vmem:[%s10547_s14 + $0x38] sm:$0xff] }
 0x8dc   :  { %v7410_v32 = vmul.f32 -1.442695, %v2735_v31  ;;  %v7411_v17 = vmul.f32 -1.442695, %v2736_v51  ;;  %v7413_v52 = vmul.f32 -1.442695, %v2826_v34  ;;  %v3277_v51 = vpop.permute.xlu1 %3276 }
 0x8dd   :  { %v2906_v36 = vpop.f32.mrf.mxu0  ;;  %v7414_v53 = vmul.f32 -1.442695, %v2827_v49  ;;  %vm3290_vm15 = vcmp.eq.s32.totalorder %v9451_v15, %v3277_v51  ;;  %v3263_v34 = vld [vmem:[%s10547_s14 + $0x28] sm:$0xff] }
 0x8de   :  { %8788 = vpow2.f32 %v7410_v32  ;;  %v2907_v5 = vadd.f32 %v9979_v3, %v2906_v36  ;;  %v7427_v32 = vsel %vm3289_vm14, 1.0, %v9214_v1  ;;  %v7428_v56 = vsel %vm3290_vm15, 1.0, %v9214_v1  ;;  %v3284_v36 = vpop.permute.xlu0 %3283 }
 0x8df   :  { %8790 = vpow2.f32 %v7411_v17  ;;  %v8219_v39 = vpop.f32.mrf.mxu0  ;;  %vm3291_vm3 = vcmp.eq.s32.totalorder %v9451_v15, %v3284_v36 }
 0x8e0   :  { %8792 = vpow2.f32 %v7413_v52  ;;  %v2911_v33 = vrot.slane %v2907_v5, 2  ;;  %v2912_v48 = vrot.slane %v2907_v5, 3  ;;  %v3264_v39 = vld [vmem:[%s10547_s14 + $0x30] sm:$0xff] }
 0x8e1   :  { %8794 = vpow2.f32 %v7414_v53  ;;  %v3260_v53 = vld [vmem:[%s10547_s14 + $0x10] sm:$0xff] }
 0x8e2   :  { %v3230_v52 = vpop.permute.xlu0 %3229 }
 0x8e3   :  { %vm3246_vm6 = vcmp.eq.s32.totalorder %v9451_v15, %v3230_v52  ;;  %v3717_v52 = vld [vmem:[#allocation15] sm:$0xff] }
 0x8eb   :  { %v8789_v55 = vpop.eup %8788 }
 0x8ec   :  { %v8791_v57 = vpop.eup %8790  ;;  %v2743_v60 = vadd.f32 1.0, %v8789_v55 }
 0x8ed   :  { %v2744_v62 = vadd.f32 1.0, %v8791_v57  ;;  %v8793_v0 = vpop.eup %8792  ;;  %v3259_v57 = vld [vmem:[%s10547_s14 + $0x8] sm:$0xff] }
 0x8ee   :  { %8796 = vrcp.f32 %v2743_v60  ;;  %v8795_v63 = vpop.eup %8794  ;;  %v2834_v6 = vadd.f32 1.0, %v8793_v0  ;;  %v3241_v60 = vpop.permute.xlu0 %3240 }
 0x8ef   :  { %8798 = vrcp.f32 %v2744_v62  ;;  %v2835_v10 = vadd.f32 1.0, %v8795_v63  ;;  %vm3248_vm9 = vcmp.eq.s32.totalorder %v9451_v15, %v3241_v60  ;;  %v7423_v62 = vsel %vm3246_vm6, 1.0, %v9214_v1 }
 0x8f0   :  { %8800 = vrcp.f32 %v2834_v6  ;;  %v7425_v63 = vsel %vm3248_vm9, 1.0, %v9214_v1 }
 0x8f1   :  { %8802 = vrcp.f32 %v2835_v10  ;;  %v3716_v10 = vld [vmem:[#allocation13 + $0x18] sm:$0xff] }
 0x8fb   :  { %v8797_v13 = vpop.eup %8796 }
 0x8fc   :  { %v8799_v35 = vpop.eup %8798  ;;  %v2915_v14 = vmul.f32 %v8797_v13, %v2911_v33  ;;  %v3715_v33 = vld [vmem:[#allocation13 + $0x10] sm:$0xff]  ;;  %v3714_v13 = vld [vmem:[#allocation13 + $0x8] sm:$0xff] }
 0x8fd   :  { %v2916_v58 = vmul.f32 %v8799_v35, %v2912_v48  ;;  %v8801_v22 = vpop.eup %8800  ;;  %v3713_v48 = vld [vmem:[#allocation13] sm:$0xff]  ;;  %v10045_v35 = vld [vmem:[#allocation15 + $0x18] sm:$0xff] }
 0x8fe   :  { %v2917_v19 = vadd.f32 %v2915_v14, %v9605_v54  ;;  %v8803_v25 = vpop.eup %8802  ;;  %v2921_v38 = vsub.f32 1.0, %v8801_v22  ;;  %v2929_v28 = vmul.f32 %v8801_v22, %v2925_v45 }
 0x8ff   :  { %v2918_v21 = vadd.f32 %v2916_v58, %v9607_v59  ;;  %v2922_v18 = vsub.f32 1.0, %v8803_v25  ;;  %v2930_v50 = vmul.f32 %v8803_v25, %v2926_v20 }
 0x900   :  { %8804 = vtanh.f32 %v2917_v19 }
 0x901   :  { %8806 = vtanh.f32 %v2918_v21 }
 0x90d   :  { %v8805_v47 = vpop.eup %8804 }
 0x90e   :  { %v8807_v43 = vpop.eup %8806  ;;  %v2923_v26 = vmul.f32 %v8805_v47, %v2921_v38 }
 0x90f   :  { %v2924_v29 = vmul.f32 %v8807_v43, %v2922_v18 }
 0x910   :  { %v9986_v30 = vadd.f32 %v2929_v28, %v2923_v26 }
 0x911   :  { %v9988_v31 = vadd.f32 %v2930_v50, %v2924_v29 }
 0x912   :  { %2934 = vst.msk [vmem:[#allocation2] sm:$0x40] %vm2933_vm13, %v9986_v30  ;;  %v2938_v23 = vrot.slane %v9986_v30, 6 }
 0x913   :  { %2935 = vst.msk [vmem:[#allocation2 + $0x8] sm:$0x40] %vm2933_vm13, %v9988_v31  ;;  %v2939_v24 = vrot.slane %v9988_v31, 5 }
 0x915   :  { %v2940_v17 = vsel %vm1234_vm7, %v2939_v24, %v2938_v23 }
 0x916   :  { %8229 = vmatmul.mubr.msk.f32.vlgmr.msra.gmra.mxu1 %vm467_vm5, %v2940_v17  ;;  %8240 = vmatmul.mubr.msk.f32.vlgmr.msra.gmra.mxu0 %vm467_vm5, %v2940_v17 }
 0x917   :  { %8243 = vmatpush3.msra.mxu1 %v9845_v40  ;;  %8254 = vmatpush3.msk.msra.mxu0 %vm309_vm0, %v9966_v41  ;;  %v3288_v40 = vpop.permute.xlu1 %3287 }
 0x918   :  { %8244 = vmatprep.subr.mxu1 %v9214_v1  ;;  %8255 = vmatprep.mubr.msk.f32.mxu0 %vm3302_vm2, %v7427_v32  ;;  %vm3292_vm4 = vcmp.eq.s32.totalorder %v9451_v15, %v3288_v40 }
 0x919   :  { %8245 = vmatpush3.msra.mxu1 %v9854_v44  ;;  %8263 = vmatprep.subr.mxu0 %v3265_v11  ;;  %v7429_v44 = vsel %vm3291_vm3, 1.0, %v9214_v1  ;;  %v7430_v49 = vsel %vm3292_vm4, 1.0, %v9214_v1 }
 0x91a   :  { %8246 = vmatprep.subr.mxu1 %v9214_v1  ;;  %8256 = vmatmul.mubr.msk.f32.vlgmr.msra.gmra.mxu0 %vm3302_vm2, %v7428_v56 }
 0x91b   :  { %8247 = vmatpush3.msra.mxu1 %v9862_v46  ;;  %8264 = vmatpush3.msra.mxu0 %v3265_v11  ;;  %v3262_v46 = vld [vmem:[%s10547_s14 + $0x20] sm:$0xff]  ;;  %v3234_v55 = vpop.permute.xlu1 %3233 }
 0x91c   :  { %8248 = vmatprep.subr.mxu1 %v9214_v1  ;;  %8265 = vmatprep.subr.mxu0 %v3264_v39  ;;  %vm3247_vm8 = vcmp.eq.s32.totalorder %v9451_v15, %v3234_v55 }
 0x91d   :  { %8249 = vmatpush3.msra.mxu1 %v9870_v42  ;;  %8250 = vmatprep.mubr.msk.f32.mxu1 %vm9215_vm1, %v9214_v1  ;;  %v3261_v42 = vld [vmem:[%s10547_s14 + $0x18] sm:$0xff]  ;;  %v7424_v0 = vsel %vm3247_vm8, 1.0, %v9214_v1 }
 0x91e   :  { %8266 = vmatpush3.msra.mxu0 %v3264_v39  ;;  %8251 = vmatmul.mubr.msk.f32.vlgmr.msra.gmra.mxu1 %vm467_vm5, %v2940_v17 }
 0x91f   :  { %8258 = vmatprep.subr.msk.mxu1 %vm309_vm0, %v9966_v41  ;;  %8267 = vmatprep.subr.mxu0 %v3263_v34  ;;  %v3245_v5 = vpop.permute.xlu1 %3244 }
 0x920   :  { %8259 = vmatpush3.msk.msra.mxu1 %vm309_vm0, %v9966_v41  ;;  %8268 = vmatpush3.msra.mxu0 %v3263_v34  ;;  %v3258_v41 = vld [vmem:[%s10547_s14] sm:$0xff]  ;;  %vm3249_vm11 = vcmp.eq.s32.totalorder %v9451_v15, %v3245_v5 }
 0x921   :  { %8269 = vmatprep.subr.mxu0 %v3262_v46  ;;  %8260 = vmatprep.mubr.msk.f32.mxu1 %vm3302_vm2, %v7429_v44  ;;  %v7426_v6 = vsel %vm3249_vm11, 1.0, %v9214_v1  ;;  %v3719_v44 = vld [vmem:[#allocation15 + $0x10] sm:$0xff] }
 0x922   :  { %8270 = vmatpush3.msra.mxu0 %v3262_v46  ;;  %8282 = vmatprep.subr.mxu1 %v3265_v11 }
 0x923   :  { %8261 = vmatmul.mubr.msk.f32.vlgmr.msra.gmra.mxu1 %vm3302_vm2, %v7430_v49  ;;  %8271 = vmatprep.subr.mxu0 %v3261_v42  ;;  %v3718_v49 = vld [vmem:[#allocation15 + $0x8] sm:$0xff] }
 0x924   :  { %8283 = vmatpush3.msra.mxu1 %v3265_v11  ;;  %8272 = vmatpush3.msra.mxu0 %v3261_v42 }
 0x925   :  { %8284 = vmatprep.subr.mxu1 %v3264_v39  ;;  %8273 = vmatprep.subr.mxu0 %v3260_v53 }
 0x926   :  { %8285 = vmatpush3.msra.mxu1 %v3264_v39  ;;  %8274 = vmatpush3.msra.mxu0 %v3260_v53 }
 0x927   :  { %8286 = vmatprep.subr.mxu1 %v3263_v34  ;;  %8275 = vmatprep.subr.mxu0 %v3259_v57 }
 0x928   :  { %8287 = vmatpush3.msra.mxu1 %v3263_v34  ;;  %8276 = vmatpush3.msra.mxu0 %v3259_v57 }
 0x929   :  { %8288 = vmatprep.subr.mxu1 %v3262_v46  ;;  %8277 = vmatprep.subr.mxu0 %v3258_v41 }
 0x92a   :  { %8289 = vmatpush3.msra.mxu1 %v3262_v46  ;;  %8278 = vmatpush3.msra.mxu0 %v3258_v41 }
 0x92b   :  { %8279 = vmatprep.mubr.msk.f32.mxu0 %vm3468_vm10, %v7423_v62  ;;  %8290 = vmatprep.subr.mxu1 %v3261_v42 }
 0x92c   :  { %8280 = vmatmul.mubr.msk.f32.vlgmr.msra.gmra.mxu0 %vm3468_vm10, %v7424_v0  ;;  %8291 = vmatpush3.msra.mxu1 %v3261_v42 }
 0x92d   :  { %8292 = vmatprep.subr.mxu1 %v3260_v53  ;;  %8298 = vmatprep.mubr.msk.f32.mxu1 %vm3468_vm10, %v7425_v63 }
 0x92e   :  { %8293 = vmatpush3.msra.mxu1 %v3260_v53  ;;  %8301 = vmatprep.subr.mxu0 %v3716_v10 }
 0x92f   :  { %8294 = vmatprep.subr.mxu1 %v3259_v57  ;;  %8302 = vmatpush3.msra.mxu0 %v3716_v10 }
 0x930   :  { %8295 = vmatpush3.msra.mxu1 %v3259_v57  ;;  %8303 = vmatprep.subr.mxu0 %v3715_v33 }
 0x931   :  { %8296 = vmatprep.subr.mxu1 %v3258_v41  ;;  %8304 = vmatpush3.msra.mxu0 %v3715_v33 }
 0x932   :  { %8297 = vmatpush3.msra.mxu1 %v3258_v41  ;;  %8305 = vmatprep.subr.mxu0 %v3714_v13 }
 0x933   :  { %8299 = vmatmul.mubr.msk.f32.vlgmr.msra.gmra.mxu1 %vm3468_vm10, %v7426_v6  ;;  %8312 = vmatprep.subr.mxu1 %v3716_v10 }
 0x934   :  { %8313 = vmatpush3.msra.mxu1 %v3716_v10  ;;  %8306 = vmatpush3.msra.mxu0 %v3714_v13 }
 0x935   :  { %8314 = vmatprep.subr.mxu1 %v3715_v33  ;;  %8307 = vmatprep.subr.mxu0 %v3713_v48 }
 0x936   :  { %8315 = vmatpush3.msra.mxu1 %v3715_v33  ;;  %8308 = vmatpush3.msra.mxu0 %v3713_v48 }
 0x937   :  { %8316 = vmatprep.subr.mxu1 %v3714_v13  ;;  %8323 = vmatprep.subr.mxu0 %v10045_v35 }
 0x938   :  { %8317 = vmatpush3.msra.mxu1 %v3714_v13 }
 0x939   :  { %8318 = vmatprep.subr.mxu1 %v3713_v48 }
 0x93a   :  { %8319 = vmatpush3.msra.mxu1 %v3713_v48 }
 0x93b   :  { %8334 = vmatprep.subr.mxu1 %v10045_v35 }
 0x9d6   :  { %v3009_v14 = vpop.f32.mrf.mxu1  ;;  %v3100_v58 = vpop.f32.mrf.mxu0 }
 0x9d7   :  { %v3014_v19 = vrot.slane %v3009_v14, 1  ;;  %v3015_v21 = vrot.slane %v3009_v14, 2  ;;  %v3105_v45 = vrot.slane %v3100_v58, 1  ;;  %v3106_v47 = vrot.slane %v3100_v58, 2 }
 0x9d8   :  { %v8230_v22 = vpop.f32.mrf.mxu1  ;;  %v8241_v25 = vpop.f32.mrf.mxu0 }
 0x9d9   :  { %v3018_v37 = vadd.f32 %v3014_v19, %v9577_v61  ;;  %v3019_v38 = vadd.f32 %v3015_v21, %v9583_v2  ;;  %v3109_v28 = vadd.f32 %v3105_v45, %v9586_v9  ;;  %v3110_v29 = vadd.f32 %v3106_v47, %v9590_v12 }
 0x9da   :  { %v8257_v32 = vpop.f32.mrf.mxu0  ;;  %v3211_v19 = vrot.slane %v9988_v31, 7 }
 0x9db   :  { %v3020_v18 = vadd.f32 %v9909_v16, %v3018_v37  ;;  %v3021_v20 = vadd.f32 %v9909_v16, %v3019_v38  ;;  %v3111_v61 = vadd.f32 %v9916_v27, %v3109_v28  ;;  %v3112_v2 = vadd.f32 %v9916_v27, %v3110_v29 }
 0x9dc   :  { %v3378_v16 = vpop.f32.mrf.mxu0 }
 0x9dd   :  { %v7417_v43 = vmul.f32 -1.442695, %v3020_v18  ;;  %v7418_v26 = vmul.f32 -1.442695, %v3021_v20  ;;  %v7420_v23 = vmul.f32 -1.442695, %v3111_v61 }
 0x9de   :  { %v3191_v50 = vpop.f32.mrf.mxu1  ;;  %v7421_v24 = vmul.f32 -1.442695, %v3112_v2  ;;  %v3631_v61 = vld [vmem:[#allocation3] sm:$0xff]  ;;  %v3640_v2 = vstv %s3639_s19 }
 0x9df   :  { %8808 = vpow2.f32 %v7417_v43  ;;  %v3192_v60 = vadd.f32 %v9979_v3, %v3191_v50  ;;  %vm3635_vm15 = vcmp.eq.s32.totalorder %v3631_v61, 0  ;;  %vm3649_vm2 = vcmp.eq.s32.totalorder %v3631_v61, 1 }
 0x9e0   :  { %8810 = vpow2.f32 %v7418_v26  ;;  %v8252_v51 = vpop.f32.mrf.mxu1  ;;  %vm3663_vm4 = vcmp.eq.s32.totalorder %v3631_v61, 2 }
 0x9e1   :  { %8812 = vpow2.f32 %v7420_v23  ;;  %v3196_v63 = vrot.slane %v3192_v60, 1  ;;  %v3197_v5 = vrot.slane %v3192_v60, 2  ;;  %v3632_v51 = vld [vmem:[#allocation3 + $0x8] sm:$0xff]  ;;  %v3654_v23 = vstv %s7441_s12 }
 0x9e2   :  { %8814 = vpow2.f32 %v7421_v24  ;;  %vm3636_vm13 = vcmp.eq.s32.totalorder %v3632_v51, 0  ;;  %vm3650_vm14 = vcmp.eq.s32.totalorder %v3632_v51, 1  ;;  %vm3664_vm3 = vcmp.eq.s32.totalorder %v3632_v51, 2 }
 0x9e3   :  { %v8262_v36 = vpop.f32.mrf.mxu1  ;;  %v3642_v24 = vsel %vm3636_vm13, %v3640_v2, 0.0  ;;  %vm3678_vm6 = vcmp.eq.s32.totalorder %v3632_v51, 3  ;;  %vm3692_vm13 = vcmp.eq.s32.totalorder %v3632_v51, 4  ;;  %v3707_v51 = vld [vmem:[#allocation7 + $0x10] sm:$0xff] }
 0x9e5   :  { %v3459_v27 = vpop.f32.mrf.mxu1 }
 0x9ec   :  { %v8809_v17 = vpop.eup %8808  ;;  %v8281_v11 = vpop.f32.mrf.mxu0 }
 0x9ed   :  { %v8811_v56 = vpop.eup %8810  ;;  %v3028_v9 = vadd.f32 1.0, %v8809_v17  ;;  %v10059_v34 = vadd.f32 %v8281_v11, %v8257_v32  ;;  %v3656_v32 = vsel %vm3650_vm14, %v3654_v23, 0.0  ;;  %v3641_v17 = vsel %vm3635_vm15, %v3640_v2, 0.0 }
 0x9ee   :  { %v3029_v12 = vadd.f32 1.0, %v8811_v56  ;;  %v3541_v39 = vpop.f32.mrf.mxu0  ;;  %v8813_v53 = vpop.eup %8812  ;;  %v3655_v11 = vsel %vm3649_vm2, %v3654_v23, 0.0  ;;  %v3660_v56 = vadd.f32 %v3656_v32, %v3642_v24  ;;  %vm3691_vm2 = vcmp.eq.s32.totalorder %v3631_v61, 4 }
 0x9ef   :  { %8816 = vrcp.f32 %v3028_v9  ;;  %v10057_v40 = vadd.f32 %v3541_v39, %v3378_v16  ;;  %v8815_v57 = vpop.eup %8814  ;;  %v3119_v62 = vadd.f32 1.0, %v8813_v53  ;;  %v3668_v16 = vstv %s7442_s0  ;;  %v3634_v9 = vld [vmem:[#allocation3 + $0x18] sm:$0xff] }
 0x9f0   :  { %8818 = vrcp.f32 %v3029_v12  ;;  %v3120_v0 = vadd.f32 1.0, %v8815_v57  ;;  %v3670_v12 = vsel %vm3664_vm3, %v3668_v16, 0.0  ;;  %v3659_v39 = vadd.f32 %v3655_v11, %v3641_v17 }
 0x9f1   :  { %8309 = vmatprep.mubr.msk.f32.mxu0 %vm467_vm5, %v10057_v40  ;;  %8820 = vrcp.f32 %v3119_v62  ;;  %vm3638_vm8 = vcmp.eq.s32.totalorder %v3634_v9, 0  ;;  %vm3652_vm9 = vcmp.eq.s32.totalorder %v3634_v9, 1  ;;  %vm3666_vm14 = vcmp.eq.s32.totalorder %v3634_v9, 2 }
 0x9f2   :  { %8310 = vmatmul.mubr.msk.f32.vlgmr.msra.gmra.mxu0 %vm467_vm5, %v10059_v34  ;;  %8822 = vrcp.f32 %v3120_v0  ;;  %v3644_v53 = vsel %vm3638_vm8, %v3640_v2, 0.0  ;;  %v3658_v57 = vsel %vm3652_vm9, %v3654_v23, 0.0  ;;  %vm3680_vm3 = vcmp.eq.s32.totalorder %v3634_v9, 3 }
 0x9f3   :  { %8324 = vmatpush3.msra.mxu0 %v10045_v35  ;;  %v8300_v46 = vpop.f32.mrf.mxu1  ;;  %8331 = vmatprep.mubr.msk.f32.mxu0 %vm467_vm5, %v10057_v40  ;;  %vm3694_vm8 = vcmp.eq.s32.totalorder %v3634_v9, 4 }
 0x9f4   :  { %8325 = vmatprep.subr.mxu0 %v3719_v44  ;;  %v10071_v41 = vadd.f32 %v8300_v46, %v8262_v36  ;;  %v3633_v36 = vld [vmem:[#allocation3 + $0x10] sm:$0xff]  ;;  %v3674_v46 = vadd.f32 %v3670_v12, %v3660_v56 }
 0x9f5   :  { %8326 = vmatpush3.msra.mxu0 %v3719_v44  ;;  %v3622_v42 = vpop.f32.mrf.mxu1  ;;  %vm3637_vm10 = vcmp.eq.s32.totalorder %v3633_v36, 0  ;;  %vm3651_vm11 = vcmp.eq.s32.totalorder %v3633_v36, 1  ;;  %vm3665_vm15 = vcmp.eq.s32.totalorder %v3633_v36, 2  ;;  %vm3693_vm9 = vcmp.eq.s32.totalorder %v3633_v36, 4 }
 0x9f6   :  { %v10068_v55 = vadd.f32 %v3622_v42, %v3459_v27  ;;  %8327 = vmatprep.subr.mxu0 %v3718_v49  ;;  %v3682_v27 = vstv %s7443_s18  ;;  %v3696_v42 = vstv %s7444_s15  ;;  %v3643_v60 = vsel %vm3637_vm10, %v3640_v2, 0.0  ;;  %v3708_v2 = vld [vmem:[#allocation7 + $0x18] sm:$0xff] }
 0x9f7   :  { %8328 = vmatpush3.msra.mxu0 %v3718_v49  ;;  %v3657_v62 = vsel %vm3651_vm11, %v3654_v23, 0.0  ;;  %vm4199_vm10 = vcmask 130048  }
 0x9f8   :  { %8329 = vmatprep.subr.mxu0 %v3717_v52  ;;  %8320 = vmatprep.mubr.msk.f32.mxu1 %vm467_vm5, %v10068_v55 }
 0x9f9   :  { %8330 = vmatpush3.msra.mxu0 %v3717_v52  ;;  %8321 = vmatmul.mubr.msk.f32.vlgmr.msra.gmra.mxu1 %vm467_vm5, %v10071_v41 }
 0x9fa   :  { %8332 = vmatmul.mubr.msk.f32.vlgmr.msra.gmra.mxu0 %vm467_vm5, %v10059_v34  ;;  %8335 = vmatpush3.msra.mxu1 %v10045_v35  ;;  %v3210_v35 = vrot.slane %v9986_v30, 7 }
 0x9fb   :  { %8345 = vmatprep.subr.msk.mxu0 %vm467_vm5, %v10059_v34  ;;  %8336 = vmatprep.subr.mxu1 %v3719_v44 }
 0x9fc   :  { %v8817_v3 = vpop.eup %8816  ;;  %8342 = vmatprep.mubr.msk.f32.mxu1 %vm467_vm5, %v10068_v55  ;;  %8346 = vmatpush3.xpose.msk.msra.mxu0 %vm467_vm5, %v10059_v34 }
 0x9fd   :  { %v8819_v6 = vpop.eup %8818  ;;  %v3200_v10 = vmul.f32 %v8817_v3, %v3196_v63  ;;  %8337 = vmatpush3.msra.mxu1 %v3719_v44  ;;  %8347 = vmatprep.subr.msk.mxu0 %vm467_vm5, %v10057_v40  ;;  %v3669_v44 = vsel %vm3663_vm4, %v3668_v16, 0.0  ;;  %v3698_v3 = vsel %vm3692_vm13, %v3696_v42, 0.0  ;;  %vm3679_vm4 = vcmp.eq.s32.totalorder %v3633_v36, 3 }
 0x9fe   :  { %v3201_v33 = vmul.f32 %v8819_v6, %v3197_v5  ;;  %8338 = vmatprep.subr.mxu1 %v3718_v49  ;;  %v3662_v5 = vadd.f32 %v3658_v57, %v3644_v53  ;;  %v3661_v6 = vadd.f32 %v3657_v62, %v3643_v60  ;;  %vm3712_vm13 = vcmp.gt.f32.partialorder %v3708_v2, 0.5 }
 0x9ff   :  { %v3202_v13 = vadd.f32 %v3200_v10, %v9605_v54  ;;  %8339 = vmatpush3.msra.mxu1 %v3718_v49  ;;  %v8821_v54 = vpop.eup %8820  ;;  %v3684_v49 = vsel %vm3678_vm6, %v3682_v27, 0.0 }
 0xa00   :  { %v3203_v48 = vadd.f32 %v3201_v33, %v9607_v59  ;;  %8340 = vmatprep.subr.mxu1 %v3717_v52  ;;  %8348 = vmatpush3.xpose.msk.msra.mxu0 %vm467_vm5, %v10057_v40  ;;  %v8823_v59 = vpop.eup %8822  ;;  %v3206_v14 = vsub.f32 1.0, %v8821_v54  ;;  %v3214_v25 = vmul.f32 %v8821_v54, %v3210_v35  ;;  %v3688_v63 = vadd.f32 %v3684_v49, %v3674_v46 }
 0xa01   :  { %8824 = vtanh.f32 %v3202_v13  ;;  %8341 = vmatpush3.msra.mxu1 %v3717_v52  ;;  %v3207_v21 = vsub.f32 1.0, %v8823_v59  ;;  %v3215_v38 = vmul.f32 %v8823_v59, %v3211_v19  ;;  %v3673_v52 = vadd.f32 %v3669_v44, %v3659_v39  ;;  %v3706_v59 = vld [vmem:[#allocation7 + $0x8] sm:$0xff]  ;;  %v3705_v19 = vld [vmem:[#allocation7] sm:$0xff] }
 0xa02   :  { %8826 = vtanh.f32 %v3203_v48  ;;  %8343 = vmatmul.mubr.msk.f32.vlgmr.msra.gmra.mxu1 %vm467_vm5, %v10071_v41  ;;  %8352 = vmatprep.subr.msk.mxu1 %vm467_vm5, %v10071_v41  ;;  %v3672_v33 = vsel %vm3666_vm14, %v3668_v16, 0.0  ;;  %v3671_v13 = vsel %vm3665_vm15, %v3668_v16, 0.0  ;;  %v3697_v48 = vsel %vm3691_vm2, %v3696_v42, 0.0 }
 0xa03   :  { %8353 = vmatpush3.xpose.msk.msra.mxu1 %vm467_vm5, %v10071_v41  ;;  %v3702_v54 = vadd.f32 %v3698_v3, %v3688_v63  ;;  %v3676_v35 = vadd.f32 %v3672_v33, %v3662_v5  ;;  %vm3710_vm6 = vcmp.gt.f32.partialorder %v3706_v59, 0.5  ;;  %vm3709_vm11 = vcmp.gt.f32.partialorder %v3705_v19, 0.5 }
 0xa04   :  { %8354 = vmatprep.subr.msk.mxu1 %vm467_vm5, %v10068_v55  ;;  %vm4701_vm15 = vcmask 122880  }
 0xa07   :  { %8355 = vmatpush3.xpose.msk.msra.mxu1 %vm467_vm5, %v10068_v55 }
 0xa0e   :  { %v8825_v58 = vpop.eup %8824 }
 0xa0f   :  { %v8827_v22 = vpop.eup %8826  ;;  %v3208_v37 = vmul.f32 %v8825_v58, %v3206_v14  ;;  %v3675_v14 = vadd.f32 %v3671_v13, %v3661_v6 }
 0xa10   :  { %v3209_v45 = vmul.f32 %v8827_v22, %v3207_v21  ;;  %v3686_v21 = vsel %vm3680_vm3, %v3682_v27, 0.0  ;;  %v3685_v22 = vsel %vm3679_vm4, %v3682_v27, 0.0  ;;  %vm5124_vm3 = vcmask 57344  }
 0xa11   :  { %v3216_v47 = vadd.f32 %v3214_v25, %v3208_v37  ;;  %vm5151_vm4 = vcmask 64512  }
 0xa12   :  { %v3217_v18 = vadd.f32 %v3215_v38, %v3209_v45  ;;  %v3690_v45 = vadd.f32 %v3686_v21, %v3676_v35 }
 0xa13   :  { %3219 = vst.msk [vmem:[#allocation2] sm:$0x80] %vm3218_vm12, %v3216_v47  ;;  %v3689_v47 = vadd.f32 %v3685_v22, %v3675_v14 }
 0xa14   :  { %3220 = vst.msk [vmem:[#allocation2 + $0x8] sm:$0x80] %vm3218_vm12, %v3217_v18  ;;  %vm3677_vm12 = vcmp.eq.s32.totalorder %v3631_v61, 3 }
 0xa15   :  { %v3683_v0 = vsel %vm3677_vm12, %v3682_v27, 0.0  ;;  %vm3711_vm12 = vcmp.gt.f32.partialorder %v3707_v51, 0.5  ;;  %v9216_v51 = vmov 1966171168  }
 0xa16   :  { %v3687_v10 = vadd.f32 %v3683_v0, %v3673_v52 }
 0xa18   :  { %v3701_v58 = vadd.f32 %v3697_v48, %v3687_v10 }
 0xab2   :  { %v8311_v20 = vpop.f32.mrf.mxu0 }
 0xab4   :  { %v3793_v43 = vpop.f32.mrf.mxu0 }
 0xab5   :  { %8349 = vmatprep.mubr.msk.f32.mxu0 %vm467_vm5, %v3793_v43  ;;  %v3700_v43 = vsel %vm3694_vm8, %v3696_v42, 0.0 }
 0xab6   :  { %8350 = vmatmul.mubr.msk.f32.vlgmr.msra.gmra.mxu0 %vm467_vm5, %v8311_v20 }
 0xab9   :  { %v8322_v30 = vpop.f32.mrf.mxu1 }
 0xaba   :  { %v8333_v26 = vpop.f32.mrf.mxu0 }
 0xabb   :  { %8359 = vmatprep.subr.mxu0 %v8333_v26  ;;  %v3874_v31 = vpop.f32.mrf.mxu1 }
 0xabc   :  { %v3949_v28 = vpop.f32.mrf.mxu0  ;;  %8360 = vmatpush3.msra.mxu0 %v8333_v26  ;;  %8356 = vmatprep.mubr.msk.f32.mxu1 %vm467_vm5, %v3874_v31 }
 0xabd   :  { %8361 = vmatprep.subr.mxu0 %v3949_v28  ;;  %8357 = vmatmul.mubr.msk.f32.vlgmr.msra.gmra.mxu1 %vm467_vm5, %v8322_v30  ;;  %v3699_v30 = vsel %vm3693_vm9, %v3696_v42, 0.0 }
 0xabe   :  { %8362 = vmatpush3.msra.mxu0 %v3949_v28 }
 0xabf   :  { %8373 = vmatprep.subr.mxu0 %v9214_v1 }
 0xac2   :  { %v8344_v29 = vpop.f32.mrf.mxu1 }
 0xac3   :  { %8366 = vmatprep.subr.mxu1 %v8344_v29 }
 0xac4   :  { %v4024_v50 = vpop.f32.mrf.mxu1  ;;  %8367 = vmatpush3.msra.mxu1 %v8344_v29  ;;  %v3704_v29 = vadd.f32 %v3700_v43, %v3690_v45  ;;  %v7466_v43 = vld [vmem:[%s10548_s27 + $0x48] sm:$0xff] }
 0xac5   :  { %8368 = vmatprep.subr.mxu1 %v4024_v50 }
 0xac6   :  { %8369 = vmatpush3.msra.mxu1 %v4024_v50  ;;  %v3703_v50 = vadd.f32 %v3699_v30, %v3689_v47 }
 0xac7   :  { %8384 = vmatprep.subr.mxu1 %v9214_v1 }
 0xb76   :  { %v8351_v25 = vpop.f32.mrf.mxu0 }
 0xb77   :  { %v4111_v37 = vadd.f32 %v8351_v25, %v3702_v54 }
 0xb78   :  { %v4105_v38 = vpop.f32.mrf.mxu0 }
 0xb79   :  { %v4106_v18 = vadd.f32 %v4105_v38, %v3701_v58  ;;  %v4196_v20 = vsel %vm3710_vm6, %v4111_v37, -1e+09 }
 0xb7a   :  { %v4203_v26 = vsel %vm4199_vm10, %v4196_v20, -inf }
 0xb7b   :  { %4204 = vmax.xlane.f32.xlu1 %v4203_v26  ;;  %v4195_v31 = vsel %vm3709_vm11, %v4106_v18, -1e+09  ;;  %v7468_v18 = vld [vmem:[%s10548_s27 + $0x58] sm:$0xff] }
 0xb7c   :  { %v4200_v28 = vsel %vm4199_vm10, %v4195_v31, -inf }
 0xb7d   :  { %4201 = vmax.xlane.f32.xlu0 %v4200_v28  ;;  %v8358_v61 = vpop.f32.mrf.mxu1  ;;  %v10137_v28 = vld [vmem:[%s10549_s13] sm:$0x3] }
 0xb7e   :  { %v4192_v24 = vadd.f32 %v8358_v61, %v3704_v29  ;;  %v4495_v61 = vunpack.c.l.s4 %v9216_v51 }
 0xb7f   :  { %v4186_v23 = vpop.f32.mrf.mxu1 }
 0xb80   :  { %v4187_v32 = vadd.f32 %v4186_v23, %v3703_v50  ;;  %v4198_v11 = vsel %vm3712_vm13, %v4192_v24, -1e+09  ;;  %v4496_v23 = vunpack.c.0.s8 %v4495_v61 }
 0xb81   :  { %v4209_v56 = vsel %vm4199_vm10, %v4198_v11, -inf }
 0xb82   :  { %v4197_v16 = vsel %vm3711_vm12, %v4187_v32, -1e+09 }
 0xb83   :  { %v4206_v17 = vsel %vm4199_vm10, %v4197_v16, -inf }
 0xb84   :  { %4207 = vmax.xlane.f32.xlu0 %v4206_v17 }
 0xb88   :  { %4210 = vmax.xlane.f32.xlu0 %v4209_v56 }
 0xc04   :  { %v4205_v9 = vpop.xlane.xlu1 %4204 }
 0xc05   :  { %v4213_v36 = vsub.f32 %v4196_v20, %v4205_v9  ;;  %v7467_v20 = vld [vmem:[%s10548_s27 + $0x50] sm:$0xff] }
 0xc06   :  { %v4202_v12 = vpop.xlane.xlu0 %4201 }
 0xc07   :  { %v4218_v39 = vmul.f32 1.442695, %v4213_v36  ;;  %v4212_v27 = vsub.f32 %v4195_v31, %v4202_v12  ;;  %v7465_v31 = vld [vmem:[%s10548_s27 + $0x40] sm:$0xff] }
 0xc09   :  { %8828 = vpow2.f32 %v4218_v39  ;;  %v4216_v44 = vmul.f32 1.442695, %v4212_v27 }
 0xc0b   :  { %8830 = vpow2.f32 %v4216_v44  ;;  %v4877_v44 = vld [vmem:[%s10548_s27 + $0x18] sm:$0xff] }
 0xc0d   :  { %v4208_v46 = vpop.xlane.xlu0 %4207 }
 0xc0e   :  { %v4214_v49 = vsub.f32 %v4197_v16, %v4208_v46  ;;  %v10153_v16 = vsub.s32 %v4496_v23, %v9415_v4  ;;  %v4875_v46 = vld [vmem:[%s10548_s27 + $0x8] sm:$0xff] }
 0xc0f   :  { %v10230_v23 = vld [vmem:[#allocation2 + $0x8] sm:$0xff] }
 0xc10   :  { %v4220_v42 = vmul.f32 1.442695, %v4214_v49  ;;  %v4874_v49 = vld [vmem:[%s10548_s27] sm:$0xff] }
 0xc11   :  { %v4211_v52 = vpop.xlane.xlu0 %4210 }
 0xc12   :  { %8832 = vpow2.f32 %v4220_v42  ;;  %v4215_v53 = vsub.f32 %v4198_v11, %v4211_v52  ;;  %v10191_v42 = vld [vmem:[#allocation2] sm:$0xff] }
 0xc13   :  { %v7476_v52 = vld.sshfl [vmem:[%s10550_s16] sm:$0x11 pattern:$0x75316420] }
 0xc14   :  { %v4222_v57 = vmul.f32 1.442695, %v4215_v53  ;;  %v4687_v53 = vrot.slane %v7476_v52, %v10153_v16 }
 0xc16   :  { %v8829_v60 = vpop.eup %8828  ;;  %8834 = vpow2.f32 %v4222_v57  ;;  %v4680_v57 = vcombine.high %v7476_v52, %v7476_v52  ;;  %vm10199_vm14 = vcmp.gt.f32.partialorder %v4687_v53, 0.5 }
 0xc17   :  { %v4225_v62 = vsel %vm3710_vm6, %v8829_v60, 0.0 }
 0xc18   :  { %v8831_v0 = vpop.eup %8830  ;;  %v4231_v63 = vsel %vm4199_vm10, %v4225_v62, 0.0 }
 0xc19   :  { %4232 = vadd.xlane.f32.xlu0 %v4231_v63  ;;  %v4224_v3 = vsel %vm3709_vm11, %v8831_v0, 0.0  ;;  %v4694_v63 = vrot.slane %v4680_v57, %v10153_v16 }
 0xc1a   :  { %v4228_v5 = vsel %vm4199_vm10, %v4224_v3, 0.0 }
 0xc1b   :  { %4229 = vadd.xlane.f32.xlu1 %v4228_v5  ;;  %vm4698_vm2 = vcmp.gt.f32.partialorder %v4694_v63, 0.5 }
 0xc1f   :  { %v8833_v6 = vpop.eup %8832 }
 0xc20   :  { %v4226_v10 = vsel %vm3711_vm12, %v8833_v6, 0.0 }
 0xc21   :  { %v4234_v33 = vsel %vm4199_vm10, %v4226_v10, 0.0 }
 0xc22   :  { %4235 = vadd.xlane.f32.xlu1 %v4234_v33 }
 0xc23   :  { %v8835_v13 = vpop.eup %8834 }
 0xc24   :  { %v4227_v48 = vsel %vm3712_vm13, %v8835_v13, 0.0 }
 0xc25   :  { %v4237_v54 = vsel %vm4199_vm10, %v4227_v48, 0.0 }
 0xc26   :  { %4238 = vadd.xlane.f32.xlu0 %v4237_v54 }
 0xca2   :  { %v4233_v59 = vpop.xlane.xlu0 %4232 }
 0xca3   :  { %v4241_v35 = vadd.f32 1e-09, %v4233_v59 }
 0xca4   :  { %v4230_v14 = vpop.xlane.xlu1 %4229 }
 0xca5   :  { %v4240_v58 = vadd.f32 1e-09, %v4230_v14  ;;  %8836 = vrcp.f32 %v4241_v35 }
 0xca7   :  { %8838 = vrcp.f32 %v4240_v58 }
 0xcab   :  { %v4236_v19 = vpop.xlane.xlu1 %4235 }
 0xcac   :  { %v4242_v21 = vadd.f32 1e-09, %v4236_v19 }
 0xcae   :  { %8840 = vrcp.f32 %v4242_v21 }
 0xcaf   :  { %v4239_v22 = vpop.xlane.xlu0 %4238 }
 0xcb0   :  { %v4243_v25 = vadd.f32 1e-09, %v4239_v22 }
 0xcb2   :  { %8842 = vrcp.f32 %v4243_v25  ;;  %v8837_v37 = vpop.eup %8836 }
 0xcb3   :  { %v4249_v47 = vmul.f32 %v8837_v37, %v4225_v62 }
 0xcb4   :  { %v8839_v38 = vpop.eup %8838 }
 0xcb5   :  { %v4248_v45 = vmul.f32 %v8839_v38, %v4224_v3 }
 0xcb7   :  { %8363 = vmatprep.mubr.msk.f32.mxu0 %vm4199_vm10, %v4248_v45 }
 0xcb8   :  { %8364 = vmatmul.mubr.msk.f32.vlgmr.msra.gmra.mxu0 %vm4199_vm10, %v4249_v47 }
 0xcb9   :  { %8374 = vmatpush3.msra.mxu0 %v7468_v18  ;;  %8381 = vmatprep.mubr.msk.f32.mxu0 %vm9215_vm1, %v9214_v1 }
 0xcba   :  { %8375 = vmatprep.subr.mxu0 %v9214_v1 }
 0xcbb   :  { %v8841_v30 = vpop.eup %8840  ;;  %8376 = vmatpush3.msra.mxu0 %v7467_v20 }
 0xcbc   :  { %8377 = vmatprep.subr.mxu0 %v9214_v1  ;;  %v4250_v26 = vmul.f32 %v8841_v30, %v4226_v10 }
 0xcbd   :  { %8378 = vmatpush3.msra.mxu0 %v7466_v43 }
 0xcbe   :  { %8379 = vmatprep.subr.mxu0 %v9214_v1  ;;  %8370 = vmatprep.mubr.msk.f32.mxu1 %vm4199_vm10, %v4250_v26 }
 0xcbf   :  { %v8843_v29 = vpop.eup %8842  ;;  %8380 = vmatpush3.msra.mxu0 %v7465_v31 }
 0xcc0   :  { %8382 = vmatmul.mubr.msk.f32.vlgmr.msra.gmra.mxu0 %vm467_vm5, %v10137_v28  ;;  %v4251_v50 = vmul.f32 %v8843_v29, %v4227_v48  ;;  %8391 = vmatprep.subr.mxu0 %v9214_v1 }
 0xcc1   :  { %8395 = vmatprep.mubr.msk.f32.mxu0 %vm9215_vm1, %v9214_v1 }
 0xcc2   :  { %8371 = vmatmul.mubr.msk.f32.vlgmr.msra.gmra.mxu1 %vm4199_vm10, %v4251_v50 }
 0xcc3   :  { %8388 = vmatprep.mubr.msk.f32.mxu1 %vm9215_vm1, %v9214_v1 }
 0xd78   :  { %v8365_v2 = vpop.f32.mrf.mxu0 }
 0xd79   :  { %v4330_v24 = vadd.f32 %v8365_v2, %v10059_v34 }
 0xd7a   :  { %v4324_v32 = vpop.f32.mrf.mxu0 }
 0xd7b   :  { %8385 = vmatpush3.xpose.msk.msra.mxu1 %vm467_vm5, %v4330_v24  ;;  %v4325_v17 = vadd.f32 %v4324_v32, %v10057_v40 }
 0xd7c   :  { %8386 = vmatprep.subr.mxu1 %v9214_v1 }
 0xd7f   :  { %8387 = vmatpush3.xpose.msk.msra.mxu1 %vm467_vm5, %v4325_v17 }
 0xd80   :  { %v4489_v11 = vpop.f32.mrf.mxu0  ;;  %8398 = vmatprep.subr.mxu1 %v9214_v1 }
 0xd81   :  { %v4500_v56 = vrot.slane %v4489_v11, %v10153_v16 }
 0xd82   :  { %v8372_v9 = vpop.f32.mrf.mxu1  ;;  %v8383_v36 = vpop.f32.mrf.mxu0 }
 0xd83   :  { %v4508_v34 = vrot.slane %v4500_v56, %v10153_v16  ;;  %v10161_v12 = vadd.f32 %v8372_v9, %v10071_v41  ;;  %v4501_v40 = vcombine.high %v4500_v56, %v4500_v56 }
 0xd84   :  { %v4405_v39 = vpop.f32.mrf.mxu1 }
 0xd85   :  { %8389 = vmatmul.mubr.msk.f32.vlgmr.msra.gmra.mxu1 %vm467_vm5, %v4508_v34  ;;  %8392 = vmatpush3.xpose.msk.msra.mxu0 %vm467_vm5, %v10161_v12  ;;  %v10168_v27 = vadd.f32 %v4405_v39, %v10068_v55  ;;  %v4515_v41 = vrot.slane %v4501_v40, %v10153_v16  ;;  %v4876_v55 = vld [vmem:[%s10548_s27 + $0x10] sm:$0xff] }
 0xd86   :  { %8399 = vmatpush3.msra.mxu1 %v4330_v24  ;;  %8393 = vmatprep.subr.mxu0 %v9214_v1 }
 0xd87   :  { %8400 = vmatprep.subr.mxu1 %v9214_v1  ;;  %8402 = vmatprep.mubr.msk.f32.mxu1 %vm9215_vm1, %v9214_v1 }
 0xd88   :  { %8401 = vmatpush3.msra.mxu1 %v4325_v17 }
 0xd89   :  { %8394 = vmatpush3.xpose.msk.msra.mxu0 %vm467_vm5, %v10168_v27  ;;  %8405 = vmatprep.subr.mxu1 %v9214_v1 }
 0xd8a   :  { %8412 = vmatprep.subr.mxu0 %v9214_v1 }
 0xd8c   :  { %8396 = vmatmul.mubr.msk.f32.vlgmr.msra.gmra.mxu0 %vm467_vm5, %v4515_v41 }
 0xd8d   :  { %8413 = vmatpush3.msra.mxu0 %v4877_v44  ;;  %8420 = vmatprep.mubr.msk.f32.mxu0 %vm9215_vm1, %v9214_v1 }
 0xd8e   :  { %8414 = vmatprep.subr.mxu0 %v9214_v1 }
 0xd8f   :  { %8415 = vmatpush3.msra.mxu0 %v4876_v55 }
 0xd90   :  { %8416 = vmatprep.subr.mxu0 %v9214_v1 }
 0xd91   :  { %8417 = vmatpush3.msra.mxu0 %v4875_v46 }
 0xd92   :  { %8418 = vmatprep.subr.mxu0 %v9214_v1 }
 0xd93   :  { %8419 = vmatpush3.msra.mxu0 %v4874_v49 }
 0xd94   :  { %8433 = vmatprep.subr.mxu0 %v9214_v1  ;;  %8421 = vmatmul.mubr.msk.f32.vlgmr.msra.gmra.mxu0 %vm467_vm5, %v10137_v28 }
 0xd95   :  { %8434 = vmatpush3.msra.mxu0 %v10191_v42  ;;  %8435 = vmatprep.mubr.msk.f32.mxu0 %vm9215_vm1, %v9214_v1 }
 0xd96   :  { %8443 = vmatprep.subr.mxu0 %v9214_v1 }
 0xe45   :  { %v4590_v62 = vpop.f32.mrf.mxu1 }
 0xe46   :  { %v4699_v0 = vsel %vm10199_vm14, %v4590_v62, -1e+09 }
 0xe47   :  { %v4702_v3 = vsel %vm4701_vm15, %v4699_v0, -inf  ;;  %v8390_v5 = vpop.f32.mrf.mxu1 }
 0xe48   :  { %4703 = vmax.xlane.f32.xlu1 %v4702_v3 }
 0xe4c   :  { %v4668_v6 = vpop.f32.mrf.mxu0 }
 0xe4d   :  { %v4700_v10 = vsel %vm4698_vm2, %v4668_v6, -1e+09 }
 0xe4e   :  { %v8397_v33 = vpop.f32.mrf.mxu0  ;;  %v4705_v13 = vsel %vm4701_vm15, %v4700_v10, -inf }
 0xe4f   :  { %4706 = vmax.xlane.f32.xlu0 %v4705_v13  ;;  %v7490_v13 = vld [vmem:[%s10548_s27 + $0x38] sm:$0xff] }
 0xe54   :  { %v4944_v45 = vpop.f32.mrf.mxu0 }
 0xe55   :  { %v4955_v29 = vrot.slane %v4944_v45, %v10153_v16 }
 0xe56   :  { %v8422_v47 = vpop.f32.mrf.mxu0 }
 0xe57   :  { %v4963_v61 = vrot.slane %v4955_v29, %v10153_v16  ;;  %v4956_v2 = vcombine.high %v4955_v29, %v4955_v29 }
 0xe59   :  { %v4970_v24 = vrot.slane %v4956_v2, %v10153_v16 }
 0xed1   :  { %v4704_v48 = vpop.xlane.xlu1 %4703 }
 0xed2   :  { %v4708_v54 = vsub.f32 %v4699_v0, %v4704_v48  ;;  %v7489_v48 = vld [vmem:[%s10548_s27 + $0x30] sm:$0xff] }
 0xed4   :  { %v4710_v59 = vmul.f32 1.442695, %v4708_v54 }
 0xed6   :  { %8844 = vpow2.f32 %v4710_v59 }
 0xed8   :  { %v4707_v35 = vpop.xlane.xlu0 %4706 }
 0xed9   :  { %v4709_v14 = vsub.f32 %v4700_v10, %v4707_v35  ;;  %v7488_v35 = vld [vmem:[%s10548_s27 + $0x28] sm:$0xff] }
 0xedb   :  { %v4712_v58 = vmul.f32 1.442695, %v4709_v14  ;;  %v7487_v14 = vld [vmem:[%s10548_s27 + $0x20] sm:$0xff] }
 0xedd   :  { %8846 = vpow2.f32 %v4712_v58  ;;  %v5310_v58 = vld [vmem:[%s10553_s22] sm:$0xff] }
 0xee3   :  { %v8845_v19 = vpop.eup %8844 }
 0xee4   :  { %v4714_v21 = vsel %vm10199_vm14, %v8845_v19, 0.0  ;;  %v5298_v19 = vld [vmem:[%s10554_s23] sm:$0x3] }
 0xee5   :  { %v4716_v22 = vsel %vm4701_vm15, %v4714_v21, 0.0 }
 0xee6   :  { %4717 = vadd.xlane.f32.xlu1 %v4716_v22 }
 0xeea   :  { %v8847_v25 = vpop.eup %8846 }
 0xeeb   :  { %v4715_v37 = vsel %vm4698_vm2, %v8847_v25, 0.0 }
 0xeec   :  { %v4719_v38 = vsel %vm4701_vm15, %v4715_v37, 0.0 }
 0xeed   :  { %4720 = vadd.xlane.f32.xlu0 %v4719_v38 }
 0xf6f   :  { %v4718_v18 = vpop.xlane.xlu1 %4717 }
 0xf70   :  { %v4722_v20 = vadd.f32 1e-09, %v4718_v18 }
 0xf72   :  { %8848 = vrcp.f32 %v4722_v20 }
 0xf76   :  { %v4721_v43 = vpop.xlane.xlu0 %4720 }
 0xf77   :  { %v4723_v30 = vadd.f32 1e-09, %v4721_v43 }
 0xf79   :  { %8850 = vrcp.f32 %v4723_v30 }
 0xf7f   :  { %v8849_v26 = vpop.eup %8848 }
 0xf80   :  { %v4726_v31 = vmul.f32 %v8849_v26, %v4714_v21  ;;  %v9217_v21 = vmov 0  }
 0xf81   :  { %8666 = vset.pattern.permute.xlu1 %v9217_v21  ;;  %8667 = vset.pattern.permute.xlu0 %v9217_v21  ;;  %v5756_v21 = vld [vmem:[#allocation16] sm:$0xff] }
 0xf82   :  { %8403 = vmatmul.mubr.msk.f32.vlgmr.msra.gmra.mxu1 %vm4199_vm10, %v4726_v31  ;;  %v5311_v31 = vld [vmem:[%s10553_s22 + $0x8] sm:$0xff] }
 0xf83   :  { %8406 = vmatpush3.msra.mxu1 %v10161_v12  ;;  %8409 = vmatprep.mubr.msk.f32.mxu1 %vm9215_vm1, %v9214_v1 }
 0xf84   :  { %8407 = vmatprep.subr.mxu1 %v9214_v1 }
 0xf85   :  { %8408 = vmatpush3.msra.mxu1 %v10168_v27 }
 0xf86   :  { %v8851_v50 = vpop.eup %8850  ;;  %8423 = vmatprep.subr.mxu1 %v9214_v1 }
 0xf87   :  { %v4727_v51 = vmul.f32 %v8851_v50, %v4715_v37 }
 0xf89   :  { %8410 = vmatmul.mubr.msk.f32.vlgmr.msra.gmra.mxu1 %vm4199_vm10, %v4727_v51 }
 0xf8a   :  { %8424 = vmatpush3.xpose.msk.msra.mxu1 %vm467_vm5, %v10191_v42  ;;  %8425 = vmatprep.mubr.msk.f32.mxu1 %vm9215_vm1, %v9214_v1 }
 0xf8b   :  { %8428 = vmatprep.subr.mxu1 %v9214_v1 }
 0xf8d   :  { %8426 = vmatmul.mubr.msk.f32.vlgmr.msra.gmra.mxu1 %vm467_vm5, %v4963_v61 }
 0xf8e   :  { %8429 = vmatpush3.xpose.msk.msra.mxu1 %vm467_vm5, %v10230_v23  ;;  %8430 = vmatprep.mubr.msk.f32.mxu1 %vm9215_vm1, %v9214_v1 }
 0xf8f   :  { %8438 = vmatprep.subr.mxu1 %v9214_v1 }
 0xf91   :  { %8431 = vmatmul.mubr.msk.f32.vlgmr.msra.gmra.mxu1 %vm467_vm5, %v4970_v24 }
 0xf92   :  { %8439 = vmatpush3.msra.mxu1 %v10230_v23  ;;  %8440 = vmatprep.mubr.msk.f32.mxu1 %vm9215_vm1, %v9214_v1 }
 0xf93   :  { %8454 = vmatprep.subr.mxu1 %v9214_v1 }
0x1042   :  { %v4797_v32 = vpop.f32.mrf.mxu1 }
0x1044   :  { %v8404_v17 = vpop.f32.mrf.mxu1 }
0x1049   :  { %v4870_v11 = vpop.f32.mrf.mxu1 }
0x104a   :  { %v6000_v56 = vrot.slane %v4870_v11, 7 }
0x104b   :  { %v8411_v9 = vpop.f32.mrf.mxu1 }
0x104c   :  { %v10244_v36 = vsel %vm1234_vm7, %v6000_v56, %v4797_v32 }
0x104d   :  { %v5042_v34 = vpop.f32.mrf.mxu1 }
0x104e   :  { %v5125_v12 = vsel %vm5124_vm3, %v5042_v34, -inf }
0x104f   :  { %5126 = vmax.xlane.f32.xlu1 %v5125_v12  ;;  %v8427_v39 = vpop.f32.mrf.mxu1 }
0x1051   :  { %v5117_v40 = vpop.f32.mrf.mxu1 }
0x1052   :  { %v5128_v27 = vsel %vm5124_vm3, %v5117_v40, -inf }
0x1053   :  { %5129 = vmax.xlane.f32.xlu1 %v5128_v27  ;;  %v8432_v41 = vpop.f32.mrf.mxu1 }
0x1064   :  { %5300 = vperm.xlu1 %8666, %v5298_v19   ;;  %v5763_v19 = vld [vmem:[#allocation16 + $0x30] sm:$0xff] }
0x10d8   :  { %v5127_v44 = vpop.xlane.xlu1 %5126 }
0x10d9   :  { %v5131_v55 = vsub.f32 %v5042_v34, %v5127_v44 }
0x10db   :  { %v5133_v46 = vmul.f32 1.442695, %v5131_v55 }
0x10dc   :  { %v5130_v49 = vpop.xlane.xlu1 %5129 }
0x10dd   :  { %8852 = vpow2.f32 %v5133_v46  ;;  %v5132_v52 = vsub.f32 %v5117_v40, %v5130_v49 }
0x10df   :  { %v5135_v53 = vmul.f32 1.442695, %v5132_v52 }
0x10e0   :  { %v5301_v50 = vpop.permute.xlu1 %5300 }
0x10e1   :  { %8854 = vpow2.f32 %v5135_v53  ;;  %vm5302_vm6 = vcmp.lt.s32.totalorder %v9451_v15, %v5301_v50 }
0x10e2   :  { %v7486_v51 = vsel %vm5302_vm6, 1.0, %v9214_v1 }
0x10e3   :  { %v5562_v61 = vrot.slane %v7486_v51, %v10153_v16 }
0x10e5   :  { %v5563_v2 = vcombine.high %v5562_v61, %v5562_v61  ;;  %v5570_v17 = vrot.slane %v5562_v61, %v10153_v16 }
0x10e7   :  { %v5577_v24 = vrot.slane %v5563_v2, %v10153_v16  ;;  %vm10294_vm9 = vcmp.gt.f32.partialorder %v5570_v17, 0.5 }
0x10e9   :  { %vm5581_vm8 = vcmp.gt.f32.partialorder %v5577_v24, 0.5 }
0x10ea   :  { %v8853_v57 = vpop.eup %8852 }
0x10eb   :  { %v5139_v60 = vsel %vm5124_vm3, %v8853_v57, 0.0 }
0x10ec   :  { %5140 = vadd.xlane.f32.xlu0 %v5139_v60 }
0x10ee   :  { %v8855_v62 = vpop.eup %8854 }
0x10ef   :  { %v5142_v0 = vsel %vm5124_vm3, %v8855_v62, 0.0 }
0x10f0   :  { %5143 = vadd.xlane.f32.xlu0 %v5142_v0 }
0x1175   :  { %v5141_v63 = vpop.xlane.xlu0 %5140 }
0x1176   :  { %v5145_v3 = vadd.f32 1e-09, %v5141_v63 }
0x1178   :  { %8856 = vrcp.f32 %v5145_v3 }
0x1179   :  { %v5144_v5 = vpop.xlane.xlu0 %5143 }
0x117a   :  { %v5146_v6 = vadd.f32 1e-09, %v5144_v5 }
0x117c   :  { %8858 = vrcp.f32 %v5146_v6 }
0x1185   :  { %v8857_v10 = vpop.eup %8856 }
0x1186   :  { %v5149_v33 = vmul.f32 %v8857_v10, %v8853_v57 }
0x1188   :  { %8436 = vmatmul.mubr.msk.f32.vlgmr.msra.gmra.mxu0 %vm5151_vm4, %v5149_v33 }
0x1189   :  { %v8859_v54 = vpop.eup %8858  ;;  %8444 = vmatpush3.msra.mxu0 %v7490_v13  ;;  %8451 = vmatprep.mubr.msk.f32.mxu0 %vm9215_vm1, %v9214_v1 }
0x118a   :  { %8445 = vmatprep.subr.mxu0 %v9214_v1  ;;  %v5150_v59 = vmul.f32 %v8859_v54, %v8855_v62  ;;  %v5758_v54 = vld [vmem:[#allocation16 + $0x10] sm:$0xff] }
0x118b   :  { %8446 = vmatpush3.msra.mxu0 %v7489_v48  ;;  %v5759_v48 = vld [vmem:[#allocation16 + $0x18] sm:$0xff] }
0x118c   :  { %8447 = vmatprep.subr.mxu0 %v9214_v1  ;;  %8441 = vmatmul.mubr.msk.f32.vlgmr.msra.gmra.mxu1 %vm5151_vm4, %v5150_v59 }
0x118d   :  { %8448 = vmatpush3.msra.mxu0 %v7488_v35  ;;  %8456 = vmatprep.mubr.msk.f32.mxu1 %vm9215_vm1, %v9214_v1 }
0x118e   :  { %8449 = vmatprep.subr.mxu0 %v9214_v1  ;;  %8455 = vmatpush3.xpose.msk.msra.mxu1 %vm467_vm5, %v5310_v58 }
0x118f   :  { %8450 = vmatpush3.msra.mxu0 %v7487_v14  ;;  %8459 = vmatprep.subr.mxu1 %v9214_v1  ;;  %v5764_v14 = vld [vmem:[#allocation16 + $0x38] sm:$0xff] }
0x1190   :  { %8452 = vmatmul.mubr.msk.f32.vlgmr.msra.gmra.mxu0 %vm467_vm5, %v10137_v28  ;;  %8464 = vmatprep.subr.mxu0 %v9214_v1 }
0x1191   :  { %8466 = vmatprep.mubr.msk.f32.mxu0 %vm9215_vm1, %v9214_v1  ;;  %8465 = vmatpush3.msra.mxu0 %v5310_v58  ;;  %v5757_v58 = vld [vmem:[#allocation16 + $0x8] sm:$0xff] }
0x1192   :  { %8474 = vmatprep.subr.mxu0 %v9214_v1 }
0x1248   :  { %v5221_v22 = vpop.f32.mrf.mxu0 }
0x124a   :  { %v8437_v25 = vpop.f32.mrf.mxu0 }
0x124b   :  { %v5997_v25 = vld [vmem:[#allocation16 + $0x78] sm:$0xff] }
0x124c   :  { %v5294_v37 = vpop.f32.mrf.mxu1 }
0x124d   :  { %v5767_v38 = vrot.slane %v5294_v37, 7  ;;  %v5761_v37 = vld [vmem:[#allocation16 + $0x20] sm:$0xff] }
0x124e   :  { %v8442_v45 = vpop.f32.mrf.mxu1 }
0x124f   :  { %v10274_v47 = vsel %vm1234_vm7, %v5767_v38, %v5221_v22  ;;  %v5762_v22 = vld [vmem:[#allocation16 + $0x28] sm:$0xff]  ;;  %v5996_v38 = vld [vmem:[#allocation16 + $0x70] sm:$0xff] }
0x1250   :  { %v5378_v18 = vpop.f32.mrf.mxu0  ;;  %v5995_v45 = vld [vmem:[#allocation16 + $0x68] sm:$0xff] }
0x1251   :  { %v5389_v20 = vrot.slane %v5378_v18, %v10153_v16  ;;  %v5994_v18 = vld [vmem:[#allocation16 + $0x60] sm:$0xff] }
0x1252   :  { %v8453_v43 = vpop.f32.mrf.mxu0 }
0x1253   :  { %v5390_v30 = vcombine.high %v5389_v20, %v5389_v20  ;;  %v5397_v26 = vrot.slane %v5389_v20, %v10153_v16  ;;  %v5915_v20 = vld [vmem:[#allocation16 + $0x58] sm:$0xff]  ;;  %v5913_v43 = vld [vmem:[#allocation16 + $0x48] sm:$0xff] }
0x1255   :  { %8457 = vmatmul.mubr.msk.f32.vlgmr.msra.gmra.mxu1 %vm467_vm5, %v5397_v26  ;;  %v5404_v29 = vrot.slane %v5390_v30, %v10153_v16  ;;  %v5912_v30 = vld [vmem:[#allocation16 + $0x40] sm:$0xff] }
0x1256   :  { %8460 = vmatpush3.xpose.msk.msra.mxu1 %vm467_vm5, %v5311_v31  ;;  %8461 = vmatprep.mubr.msk.f32.mxu1 %vm9215_vm1, %v9214_v1 }
0x1257   :  { %8469 = vmatprep.subr.mxu1 %v9214_v1 }
0x1259   :  { %8462 = vmatmul.mubr.msk.f32.vlgmr.msra.gmra.mxu1 %vm467_vm5, %v5404_v29 }
0x125a   :  { %8470 = vmatpush3.msra.mxu1 %v5311_v31  ;;  %8471 = vmatprep.mubr.msk.f32.mxu1 %vm9215_vm1, %v9214_v1 }
0x125b   :  { %8485 = vmatprep.subr.mxu1 %v9214_v1 }
0x1315   :  { %v5476_v32 = vpop.f32.mrf.mxu1 }
0x1316   :  { %v5582_v40 = vsel %vm10294_vm9, %v5476_v32, -1e+09 }
0x1317   :  { %v8458_v11 = vpop.f32.mrf.mxu1  ;;  %v5584_v27 = vsel %vm5124_vm3, %v5582_v40, -inf }
0x1319   :  { %v5551_v9 = vpop.f32.mrf.mxu1 }
0x131a   :  { %v5583_v34 = vsel %vm5581_vm8, %v5551_v9, -1e+09 }
0x131b   :  { %v8463_v12 = vpop.f32.mrf.mxu1  ;;  %v5587_v39 = vsel %vm5124_vm3, %v5583_v34, -inf }
0x131c   :  { %5588 = vmax.xlane.f32.xlu0 %v5587_v39  ;;  %v7502_v12 = vld [vmem:[#allocation18] ss:$0 sm:$0xff] }
0x1320   :  { %5585 = vmax.xlane.f32.xlu0 %v5584_v27 }
0x13a5   :  { %v5589_v41 = vpop.xlane.xlu0 %5588 }
0x13a6   :  { %v5591_v44 = vsub.f32 %v5583_v34, %v5589_v41 }
0x13a8   :  { %v5594_v55 = vmul.f32 1.442695, %v5591_v44 }
0x13a9   :  { %v5586_v46 = vpop.xlane.xlu0 %5585 }
0x13aa   :  { %8860 = vpow2.f32 %v5594_v55  ;;  %v5590_v49 = vsub.f32 %v5582_v40, %v5586_v46 }
0x13ac   :  { %v5592_v52 = vmul.f32 1.442695, %v5590_v49 }
0x13ae   :  { %8862 = vpow2.f32 %v5592_v52 }
0x13b7   :  { %v8861_v53 = vpop.eup %8860 }
0x13b8   :  { %v5597_v57 = vsel %vm5581_vm8, %v8861_v53, 0.0  ;;  %v6134_v53 = vld [vmem:[%s10557_s26 + $0x78] sm:$0xff] }
0x13b9   :  { %v5601_v60 = vsel %vm5124_vm3, %v5597_v57, 0.0 }
0x13ba   :  { %5602 = vadd.xlane.f32.xlu0 %v5601_v60  ;;  %v6132_v60 = vld [vmem:[%s10557_s26 + $0x68] sm:$0xff] }
0x13bb   :  { %v8863_v62 = vpop.eup %8862 }
0x13bc   :  { %v5596_v0 = vsel %vm10294_vm9, %v8863_v62, 0.0  ;;  %v6131_v62 = vld [vmem:[%s10557_s26 + $0x60] sm:$0xff] }
0x13bd   :  { %v5598_v63 = vsel %vm5124_vm3, %v5596_v0, 0.0 }
0x13be   :  { %5599 = vadd.xlane.f32.xlu0 %v5598_v63  ;;  %v6117_v63 = vld [vmem:[#allocation19 + $0x10] sm:$0xff] }
0x1443   :  { %v5603_v3 = vpop.xlane.xlu0 %5602 }
0x1444   :  { %v5605_v5 = vadd.f32 1e-09, %v5603_v3  ;;  %v6130_v3 = vld [vmem:[%s10557_s26 + $0x58] sm:$0xff] }
0x1446   :  { %8864 = vrcp.f32 %v5605_v5  ;;  %v6129_v5 = vld [vmem:[%s10557_s26 + $0x50] sm:$0xff] }
0x1447   :  { %v5600_v6 = vpop.xlane.xlu0 %5599 }
0x1448   :  { %v5604_v10 = vadd.f32 1e-09, %v5600_v6  ;;  %v6128_v6 = vld [vmem:[%s10557_s26 + $0x48] sm:$0xff] }
0x144a   :  { %8866 = vrcp.f32 %v5604_v10  ;;  %v6127_v10 = vld [vmem:[%s10557_s26 + $0x40] sm:$0xff] }
0x1453   :  { %v8865_v33 = vpop.eup %8864 }
0x1454   :  { %v5609_v13 = vmul.f32 %v8865_v33, %v5597_v57  ;;  %v6133_v57 = vld [vmem:[%s10557_s26 + $0x70] sm:$0xff]  ;;  %v6126_v33 = vld [vmem:[%s10557_s26 + $0x38] sm:$0xff] }
0x1456   :  { %8472 = vmatmul.mubr.msk.f32.vlgmr.msra.gmra.mxu1 %vm5151_vm4, %v5609_v13  ;;  %v6125_v13 = vld [vmem:[%s10557_s26 + $0x30] sm:$0xff] }
0x1457   :  { %v8867_v59 = vpop.eup %8866  ;;  %8486 = vmatpush3.msra.mxu1 %v5759_v48  ;;  %8493 = vmatprep.mubr.msk.f32.mxu1 %vm9215_vm1, %v9214_v1  ;;  %v6124_v48 = vld [vmem:[%s10557_s26 + $0x28] sm:$0xff] }
0x1458   :  { %8487 = vmatprep.subr.mxu1 %v9214_v1  ;;  %v5608_v35 = vmul.f32 %v8867_v59, %v5596_v0  ;;  %v6118_v0 = vld [vmem:[#allocation19 + $0x18] sm:$0xff]  ;;  %v6122_v59 = vld [vmem:[%s10557_s26 + $0x18] sm:$0xff] }
0x1459   :  { %8488 = vmatpush3.msra.mxu1 %v5758_v54  ;;  %v6123_v54 = vld [vmem:[%s10557_s26 + $0x20] sm:$0xff] }
0x145a   :  { %8489 = vmatprep.subr.mxu1 %v9214_v1  ;;  %8467 = vmatmul.mubr.msk.f32.vlgmr.msra.gmra.mxu0 %vm5151_vm4, %v5608_v35 }
0x145b   :  { %8475 = vmatpush3.msra.mxu0 %v5764_v14  ;;  %8490 = vmatpush3.msra.mxu1 %v5757_v58 }
0x145c   :  { %8476 = vmatprep.subr.mxu0 %v9214_v1  ;;  %8491 = vmatprep.subr.mxu1 %v9214_v1 }
0x145d   :  { %8477 = vmatpush3.msra.mxu0 %v5763_v19  ;;  %8492 = vmatpush3.msra.mxu1 %v5756_v21  ;;  %v6121_v21 = vld [vmem:[%s10557_s26 + $0x10] sm:$0xff] }
0x145e   :  { %8478 = vmatprep.subr.mxu0 %v9214_v1  ;;  %8507 = vmatprep.subr.mxu1 %v9214_v1 }
0x145f   :  { %8479 = vmatpush3.msra.mxu0 %v5762_v22  ;;  %8494 = vmatmul.mubr.msk.f32.vlgmr.msra.gmra.mxu1 %vm467_vm5, %v10137_v28  ;;  %v6116_v22 = vld [vmem:[#allocation19 + $0x8] sm:$0xff] }
0x1460   :  { %8508 = vmatpush3.msra.mxu1 %v5997_v25  ;;  %8480 = vmatprep.subr.mxu0 %v9214_v1  ;;  %v6120_v25 = vld [vmem:[%s10557_s26 + $0x8] sm:$0xff] }
0x1461   :  { %8509 = vmatprep.subr.mxu1 %v9214_v1  ;;  %8481 = vmatpush3.msra.mxu0 %v5761_v37  ;;  %v6115_v37 = vld [vmem:[#allocation19] sm:$0xff] }
0x1462   :  { %8482 = vmatprep.mubr.msk.f32.mxu0 %vm9215_vm1, %v9214_v1  ;;  %8510 = vmatpush3.msra.mxu1 %v5996_v38  ;;  %v6119_v38 = vld [vmem:[%s10557_s26] sm:$0xff] }
0x1463   :  { %8483 = vmatmul.mubr.msk.f32.vlgmr.msra.gmra.mxu0 %vm467_vm5, %v10274_v47  ;;  %8511 = vmatprep.subr.mxu1 %v9214_v1  ;;  %v5914_v47 = vld [vmem:[#allocation16 + $0x50] sm:$0xff] }
0x1464   :  { %8512 = vmatpush3.msra.mxu1 %v5995_v45  ;;  %8515 = vmatprep.mubr.msk.f32.mxu1 %vm9215_vm1, %v9214_v1  ;;  %v7510_v45 = vld [vmem:[%s10548_s27 + $0x78] sm:$0xff] }
0x1465   :  { %8513 = vmatprep.subr.mxu1 %v9214_v1  ;;  %8496 = vmatprep.subr.mxu0 %v9214_v1 }
0x1466   :  { %8514 = vmatpush3.msra.mxu1 %v5994_v18  ;;  %8497 = vmatpush3.msra.mxu0 %v5915_v20  ;;  %v7509_v18 = vld [vmem:[%s10548_s27 + $0x70] sm:$0xff] }
0x1467   :  { %8516 = vmatmul.mubr.msk.f32.vlgmr.msra.gmra.mxu1 %vm467_vm5, %v10244_v36  ;;  %8498 = vmatprep.subr.mxu0 %v9214_v1 }
0x1468   :  { %8504 = vmatprep.mubr.msk.f32.mxu0 %vm9215_vm1, %v9214_v1  ;;  %8553 = vmatprep.subr.mxu1 %v9214_v1 }
0x1469   :  { %8561 = vmatprep.mubr.msk.f32.mxu1 %vm9215_vm1, %v9214_v1  ;;  %8499 = vmatpush3.msra.mxu0 %v5914_v47 }
0x146a   :  { %8500 = vmatprep.subr.mxu0 %v9214_v1  ;;  %8554 = vmatpush3.msra.mxu1 %v6118_v0 }
0x146b   :  { %8501 = vmatpush3.msra.mxu0 %v5913_v43  ;;  %8555 = vmatprep.subr.mxu1 %v9214_v1 }
0x146c   :  { %8502 = vmatprep.subr.mxu0 %v9214_v1  ;;  %8556 = vmatpush3.msra.mxu1 %v6117_v63 }
0x146d   :  { %8503 = vmatpush3.msra.mxu0 %v5912_v30  ;;  %8557 = vmatprep.subr.mxu1 %v9214_v1 }
0x146e   :  { %8518 = vmatprep.subr.mxu0 %v9214_v1  ;;  %8558 = vmatpush3.msra.mxu1 %v6116_v22  ;;  %v7526_v22 = vld [vmem:[%s10558_s9 + $0xa0] sm:$0xff] }
0x146f   :  { %8559 = vmatprep.subr.mxu1 %v9214_v1 }
0x1470   :  { %8560 = vmatpush3.msra.mxu1 %v6115_v37  ;;  %v7521_v37 = vld [vmem:[%s10558_s9 + $0x78] sm:$0xff] }
0x1471   :  { %8562 = vmatmul.mubr.msk.f32.vlgmr.msra.gmra.mxu1 %vm467_vm5, %v10137_v28  ;;  %8564 = vmatprep.subr.mxu1 %v9214_v1 }
0x1472   :  { %8565 = vmatpush3.msra.mxu1 %v7510_v45  ;;  %8572 = vmatprep.mubr.msk.f32.mxu1 %vm9215_vm1, %v9214_v1  ;;  %v7519_v45 = vld [vmem:[%s10558_s9 + $0x68] sm:$0xff] }
0x1473   :  { %8566 = vmatprep.subr.mxu1 %v9214_v1 }
0x1474   :  { %8567 = vmatpush3.msra.mxu1 %v7509_v18  ;;  %v7518_v18 = vld [vmem:[%s10558_s9 + $0x60] sm:$0xff] }
0x1475   :  { %8568 = vmatprep.subr.mxu1 %v9214_v1 }
0x1516   :  { %v5752_v36 = vpop.f32.mrf.mxu1 }
0x1517   :  { %v5918_v31 = vrot.slane %v5752_v36, 7  ;;  %v9218_v36 = vmov 1.0  }
0x1518   :  { %v8473_v26 = vpop.f32.mrf.mxu1 }
0x151a   :  { %v5679_v29 = vpop.f32.mrf.mxu0 }
0x151b   :  { %v5919_v50 = vsel %vm1234_vm7, %v5918_v31, %v5679_v29  ;;  %v7508_v29 = vld [vmem:[%s10548_s27 + $0x68] sm:$0xff] }
0x151c   :  { %v8468_v51 = vpop.f32.mrf.mxu0  ;;  %8505 = vmatmul.mubr.msk.f32.vlgmr.msra.gmra.mxu0 %vm467_vm5, %v5919_v50  ;;  %8569 = vmatpush3.msra.mxu1 %v7508_v29  ;;  %v7507_v50 = vld [vmem:[%s10548_s27 + $0x60] sm:$0xff]  ;;  %v6713_v29 = vld [vmem:[%s10558_s9 + $0x58] sm:$0xff] }
0x151d   :  { %8550 = vmatprep.mubr.msk.f32.mxu0 %vm9215_vm1, %v9214_v1  ;;  %8519 = vmatpush3.msra.mxu0 %v6134_v53 }
0x151e   :  { %8520 = vmatprep.subr.mxu0 %v9214_v1  ;;  %8570 = vmatprep.subr.mxu1 %v9214_v1 }
0x151f   :  { %v5907_v61 = vpop.f32.mrf.mxu1  ;;  %8521 = vmatpush3.msra.mxu0 %v6133_v57  ;;  %8571 = vmatpush3.msra.mxu1 %v7507_v50 }
0x1520   :  { %8522 = vmatprep.subr.mxu0 %v9214_v1  ;;  %8575 = vmatprep.subr.mxu1 %v9214_v1 }
0x1521   :  { %v8495_v2 = vpop.f32.mrf.mxu1  ;;  %8523 = vmatpush3.msra.mxu0 %v6132_v60 }
0x1522   :  { %8524 = vmatprep.subr.mxu0 %v9214_v1 }
0x1523   :  { %v5837_v24 = vpop.f32.mrf.mxu0  ;;  %8525 = vmatpush3.msra.mxu0 %v6131_v62 }
0x1524   :  { %v5908_v32 = vadd.f32 %v5907_v61, %v5837_v24  ;;  %8526 = vmatprep.subr.mxu0 %v9214_v1  ;;  %v7506_v61 = vld [vmem:[#allocation21] ss:$0 sm:$0xff] }
0x1525   :  { %v8484_v17 = vpop.f32.mrf.mxu0  ;;  %8527 = vmatpush3.msra.mxu0 %v6130_v3 }
0x1526   :  { %8528 = vmatprep.subr.mxu0 %v9214_v1 }
0x1527   :  { %v6070_v11 = vpop.f32.mrf.mxu1  ;;  %8529 = vmatpush3.msra.mxu0 %v6129_v5 }
0x1528   :  { %8530 = vmatprep.subr.mxu0 %v9214_v1 }
0x1529   :  { %v8517_v56 = vpop.f32.mrf.mxu1  ;;  %8531 = vmatpush3.msra.mxu0 %v6128_v6  ;;  %v7528_v6 = vld [vmem:[%s10558_s9 + $0xb0] sm:$0xff] }
0x152a   :  { %8532 = vmatprep.subr.mxu0 %v9214_v1 }
0x152b   :  { %8533 = vmatpush3.msra.mxu0 %v6127_v10 }
0x152c   :  { %8534 = vmatprep.subr.mxu0 %v9214_v1 }
0x152d   :  { %8535 = vmatpush3.msra.mxu0 %v6126_v33 }
0x152e   :  { %8536 = vmatprep.subr.mxu0 %v9214_v1 }
0x152f   :  { %8537 = vmatpush3.msra.mxu0 %v6125_v13 }
0x1530   :  { %8538 = vmatprep.subr.mxu0 %v9214_v1 }
0x1531   :  { %8539 = vmatpush3.msra.mxu0 %v6124_v48  ;;  %v6271_v26 = vpop.f32.mrf.mxu1 }
0x1532   :  { %8540 = vmatprep.subr.mxu0 %v9214_v1 }
0x1533   :  { %8541 = vmatpush3.msra.mxu0 %v6123_v54  ;;  %v8563_v31 = vpop.f32.mrf.mxu1 }
0x1534   :  { %8542 = vmatprep.subr.mxu0 %v9214_v1  ;;  %v6711_v31 = vld [vmem:[%s10558_s9 + $0x48] sm:$0xff] }
0x1535   :  { %8543 = vmatpush3.msra.mxu0 %v6122_v59 }
0x1536   :  { %8544 = vmatprep.subr.mxu0 %v9214_v1 }
0x1537   :  { %8545 = vmatpush3.msra.mxu0 %v6121_v21  ;;  %v7525_v21 = vld [vmem:[%s10558_s9 + $0x98] sm:$0xff] }
0x1538   :  { %8546 = vmatprep.subr.mxu0 %v9214_v1 }
0x1539   :  { %8547 = vmatpush3.msra.mxu0 %v6120_v25  ;;  %v7522_v25 = vld [vmem:[%s10558_s9 + $0x80] sm:$0xff] }
0x153a   :  { %8548 = vmatprep.subr.mxu0 %v9214_v1 }
0x153b   :  { %8549 = vmatpush3.msra.mxu0 %v6119_v38  ;;  %v7523_v38 = vld [vmem:[%s10558_s9 + $0x88] sm:$0xff] }
0x153c   :  { %6757 = vmatprep.subr.mxu0 %v7528_v6 }
0x15dc   :  { %v5988_v9 = vpop.f32.mrf.mxu0 }
0x15dd   :  { %v5992_v34 = vadd.f32 %v5988_v9, %v5908_v32 }
0x15de   :  { %v8506_v39 = vpop.f32.mrf.mxu0 }
0x15df   :  { %v6074_v40 = vadd.f32 %v6070_v11, %v5992_v34 }
0x15e1   :  { %v10346_v27 = vadd.f32 %v7502_v12, %v6074_v40 }
0x15e3   :  { %v6083_v41 = vsel %vm309_vm0, %v10346_v27, -inf }
0x15e4   :  { %6084 = vmax.xlane.f32.xlu1 %v6083_v41 }
0x166d   :  { %v10350_v44 = vpop.xlane.xlu1 %6084 }
0x166e   :  { %vm6095_vm10 = vcmp.ge.f32.partialorder %v10346_v27, %v10350_v44 }
0x166f   :  { %v6096_v55 = vsel %vm6095_vm10, %v9451_v15, 128 }
0x1670   :  { %v6097_v46 = vsel %vm309_vm0, %v6096_v55, 2147483647 }
0x1671   :  { %v6099_v49 = vshra.s32 %v6097_v46, 16  ;;  %v6098_v35 = vand.u32 65535, %v6097_v46 }
0x1673   :  { %v6101_v52 = vcvt.s32.f32 %v6099_v49  ;;  %v6100_v58 = vcvt.s32.f32 %v6098_v35 }
0x1675   :  { %6102 = vmin.xlane.f32.xlu0 %v6101_v52 }
0x16fe   :  { %v6103_v14 = vpop.xlane.xlu0 %6102 }
0x16ff   :  { %vm6104_vm11 = vcmp.eq.f32.partialorder %v6101_v52, %v6103_v14  ;;  %v6109_v20 = vcvt.f32.s32 %v6103_v14 }
0x1700   :  { %v6105_v19 = vsel %vm6104_vm11, %v6100_v58, inf  ;;  %v7527_v58 = vld [vmem:[%s10558_s9 + $0xa8] sm:$0xff] }
0x1701   :  { %6106 = vmin.xlane.f32.xlu0 %v6105_v19  ;;  %v6110_v43 = vshll.u32 %v6109_v20, 16  ;;  %v7529_v19 = vld [vmem:[%s10558_s9 + $0xb8] sm:$0xff]  ;;  %v7520_v20 = vld [vmem:[%s10558_s9 + $0x70] sm:$0xff] }
0x178a   :  { %v6107_v47 = vpop.xlane.xlu0 %6106 }
0x178b   :  { %v6108_v28 = vcvt.f32.s32 %v6107_v47  ;;  %v6712_v47 = vld [vmem:[%s10558_s9 + $0x50] sm:$0xff] }
0x178d   :  { %v6111_v30 = vadd.s32 %v6110_v43, %v6108_v28 }
0x178f   :  { %vm6112_vm12 = vcmp.eq.s32.totalorder %v9451_v15, %v6111_v30 }
0x1790   :  { %8551 = vmatmul.mubr.msk.f32.vlgmr.msra.gmra.mxu0 %vm6112_vm12, %v9218_v36 }
0x1791   :  { %6797 = vmatprep.mubr.f32.mxu0 %v9214_v1  ;;  %6758 = vmatpush1.msra.mxu0 %v7527_v58 }
0x1792   :  { %6759 = vmatprep.subr.mxu0 %v7525_v21 }
0x1850   :  { %v6201_v51 = vpop.f32.mrf.mxu0 }
0x1851   :  { %v6272_v2 = vadd.f32 %v6271_v26, %v6201_v51  ;;  %v6709_v51 = vld [vmem:[%s10558_s9 + $0x38] sm:$0xff] }
0x1852   :  { %v8552_v24 = vpop.f32.mrf.mxu0 }
0x1853   :  { %v10405_v32 = vadd.f32 %v7506_v61, %v6272_v2  ;;  %v6708_v61 = vld [vmem:[%s10558_s9 + $0x30] sm:$0xff]  ;;  %v6710_v2 = vld [vmem:[%s10558_s9 + $0x40] sm:$0xff] }
0x1854   :  { %v6706_v24 = vld [vmem:[%s10558_s9 + $0x20] sm:$0xff] }
0x1855   :  { %8573 = vmatmul.mubr.msk.f32.vlgmr.msra.gmra.mxu1 %vm467_vm5, %v10405_v32 }
0x1856   :  { %8576 = vmatpush3.xpose.msk.msra.mxu1 %vm467_vm5, %v10191_v42  ;;  %8577 = vmatprep.mubr.msk.f32.mxu1 %vm9215_vm1, %v9214_v1 }
0x1857   :  { %8580 = vmatprep.subr.mxu1 %v9214_v1 }
0x1915   :  { %v6357_v17 = vpop.f32.mrf.mxu1 }
0x1916   :  { %v6368_v11 = vrot.slane %v6357_v17, %v10153_v16  ;;  %v6705_v17 = vld [vmem:[%s10558_s9 + $0x18] sm:$0xff] }
0x1917   :  { %v8574_v56 = vpop.f32.mrf.mxu1 }
0x1918   :  { %v6369_v9 = vcombine.high %v6368_v11, %v6368_v11  ;;  %v6376_v34 = vrot.slane %v6368_v11, %v10153_v16  ;;  %v6707_v11 = vld [vmem:[%s10558_s9 + $0x28] sm:$0xff] }
0x1919   :  { %v6703_v56 = vld [vmem:[%s10558_s9 + $0x8] sm:$0xff] }
0x191a   :  { %8578 = vmatmul.mubr.msk.f32.vlgmr.msra.gmra.mxu1 %vm467_vm5, %v6376_v34  ;;  %v6383_v12 = vrot.slane %v6369_v9, %v10153_v16  ;;  %v6702_v9 = vld [vmem:[%s10558_s9] sm:$0xff]  ;;  %v6704_v34 = vld [vmem:[%s10558_s9 + $0x10] sm:$0xff] }
0x191b   :  { %8581 = vmatpush3.xpose.msk.msra.mxu1 %vm467_vm5, %v10230_v23  ;;  %8582 = vmatprep.mubr.msk.f32.mxu1 %vm9215_vm1, %v9214_v1 }
0x191c   :  { %8585 = vmatprep.subr.mxu1 %v9214_v1 }
0x191e   :  { %8583 = vmatmul.mubr.msk.f32.vlgmr.msra.gmra.mxu1 %vm467_vm5, %v6383_v12 }
0x191f   :  { %8586 = vmatpush3.msra.mxu1 %v10191_v42  ;;  %8587 = vmatprep.mubr.msk.f32.mxu1 %vm9215_vm1, %v9214_v1 }
0x1920   :  { %8590 = vmatprep.subr.mxu1 %v9214_v1 }
0x19da   :  { %v6452_v39 = vpop.f32.mrf.mxu1 }
0x19db   :  { %v6530_v40 = vsel %vm5124_vm3, %v6452_v39, -inf }
0x19dc   :  { %6531 = vmax.xlane.f32.xlu0 %v6530_v40  ;;  %v8579_v41 = vpop.f32.mrf.mxu1 }
0x19dd   :  { %v7015_v41 = vld [vmem:[%s10559_s29] sm:$0x7] }
0x19de   :  { %v6524_v55 = vpop.f32.mrf.mxu1 }
0x19df   :  { %v6533_v46 = vsel %vm5124_vm3, %v6524_v55, -inf }
0x19e0   :  { %6534 = vmax.xlane.f32.xlu0 %v6533_v46  ;;  %v8584_v49 = vpop.f32.mrf.mxu1  ;;  %v7020_v46 = vrot.slane %v7015_v41, %v9424_v7 }
0x1a65   :  { %v6532_v52 = vpop.xlane.xlu0 %6531 }
0x1a66   :  { %v6536_v53 = vsub.f32 %v6452_v39, %v6532_v52 }
0x1a68   :  { %v6538_v57 = vmul.f32 1.442695, %v6536_v53 }
0x1a69   :  { %v6535_v42 = vpop.xlane.xlu0 %6534 }
0x1a6a   :  { %8868 = vpow2.f32 %v6538_v57  ;;  %v6537_v60 = vsub.f32 %v6524_v55, %v6535_v42  ;;  %v7027_v57 = vsub.s32 2, %v9415_v4  ;;  %v7024_v42 = vrot.slane %v7015_v41, %v9427_v8 }
0x1a6c   :  { %v6540_v62 = vmul.f32 1.442695, %v6537_v60 }
0x1a6e   :  { %8870 = vpow2.f32 %v6540_v62 }
0x1a77   :  { %v8869_v0 = vpop.eup %8868 }
0x1a78   :  { %v6544_v63 = vsel %vm5124_vm3, %v8869_v0, 0.0 }
0x1a79   :  { %6545 = vadd.xlane.f32.xlu0 %v6544_v63 }
0x1a7b   :  { %v8871_v3 = vpop.eup %8870 }
0x1a7c   :  { %v6547_v5 = vsel %vm5124_vm3, %v8871_v3, 0.0 }
0x1a7d   :  { %6548 = vadd.xlane.f32.xlu0 %v6547_v5 }
0x1b02   :  { %v6546_v10 = vpop.xlane.xlu0 %6545 }
0x1b03   :  { %v6550_v33 = vadd.f32 1e-09, %v6546_v10 }
0x1b05   :  { %8872 = vrcp.f32 %v6550_v33 }
0x1b06   :  { %v6549_v13 = vpop.xlane.xlu0 %6548 }
0x1b07   :  { %v6551_v48 = vadd.f32 1e-09, %v6549_v13 }
0x1b09   :  { %8874 = vrcp.f32 %v6551_v48  ;;  %v6086_v48 = vsub.f32 %v10346_v27, %v10350_v44 }
0x1b12   :  { %v8873_v54 = vpop.eup %8872 }
0x1b13   :  { %v6554_v59 = vmul.f32 %v8873_v54, %v8869_v0 }
0x1b15   :  { %8588 = vmatmul.mubr.msk.f32.vlgmr.msra.gmra.mxu1 %vm5151_vm4, %v6554_v59 }
0x1b16   :  { %v8875_v35 = vpop.eup %8874  ;;  %8591 = vmatpush3.msra.mxu1 %v10230_v23  ;;  %8592 = vmatprep.mubr.msk.f32.mxu1 %vm9215_vm1, %v9214_v1  ;;  %v7524_v23 = vld [vmem:[%s10558_s9 + $0x90] sm:$0xff] }
0x1b17   :  { %v6555_v14 = vmul.f32 %v8875_v35, %v8871_v3  ;;  %8595 = vmatprep.subr.mxu1 %v9214_v1  ;;  %6760 = vmatpush1.msra.mxu0 %v7524_v23  ;;  %v6087_v23 = vmul.f32 1.442695, %v6086_v48 }
0x1b18   :  { %6761 = vmatprep.subr.mxu0 %v7522_v25 }
0x1b19   :  { %8593 = vmatmul.mubr.msk.f32.vlgmr.msra.gmra.mxu1 %vm5151_vm4, %v6555_v14  ;;  %6762 = vmatpush1.msra.mxu0 %v7521_v37 }
0x1b1a   :  { %8603 = vmatprep.mubr.msk.f32.mxu1 %vm9215_vm1, %v9214_v1  ;;  %8596 = vmatpush3.msra.mxu1 %v7529_v19 }
0x1b1b   :  { %8597 = vmatprep.subr.mxu1 %v9214_v1  ;;  %6763 = vmatprep.subr.mxu0 %v7519_v45 }
0x1b1c   :  { %8598 = vmatpush3.msra.mxu1 %v7526_v22  ;;  %6764 = vmatpush1.msra.mxu0 %v7518_v18 }
0x1b1d   :  { %8599 = vmatprep.subr.mxu1 %v9214_v1  ;;  %6898 = vmatprep.subr.mxu0 %v6712_v47 }
0x1b1e   :  { %8600 = vmatpush3.msra.mxu1 %v7523_v38 }
0x1b1f   :  { %8601 = vmatprep.subr.mxu1 %v9214_v1 }
0x1b20   :  { %8602 = vmatpush3.msra.mxu1 %v7520_v20 }
0x1b21   :  { %8606 = vmatprep.subr.mxu1 %v9214_v1 }
0x1bd5   :  { %v6625_v43 = vpop.f32.mrf.mxu1 }
0x1bd7   :  { %v8589_v28 = vpop.f32.mrf.mxu1 }
0x1bd9   :  { %v6698_v30 = vpop.f32.mrf.mxu1 }
0x1bda   :  { %v6729_v36 = vrot.slane %v6698_v30, 7 }
0x1bdb   :  { %v8594_v26 = vpop.f32.mrf.mxu1 }
0x1bdc   :  { %v6730_v50 = vsel %vm1234_vm7, %v6729_v36, %v6625_v43 }
0x1bdd   :  { %7530 = vmatmul.mubr.msk.f32.vlgmr.msra.gmra.mxu0 %vm467_vm5, %v6730_v50  ;;  %8604 = vmatmul.mubr.msk.f32.vlgmr.msra.gmra.mxu1 %vm467_vm5, %v6730_v50 }
0x1bde   :  { %6899 = vmatpush1.msra.mxu0 %v6711_v31  ;;  %8607 = vmatpush3.msra.mxu1 %v6713_v29 }
0x1bdf   :  { %6900 = vmatprep.subr.mxu0 %v6709_v51  ;;  %8608 = vmatprep.subr.mxu1 %v9214_v1 }
0x1be0   :  { %6901 = vmatpush1.msra.mxu0 %v6708_v61  ;;  %8609 = vmatpush3.msra.mxu1 %v6710_v2 }
0x1be1   :  { %6902 = vmatprep.subr.mxu0 %v6706_v24  ;;  %8610 = vmatprep.subr.mxu1 %v9214_v1 }
0x1be2   :  { %6903 = vmatpush1.msra.mxu0 %v6705_v17  ;;  %8611 = vmatpush3.msra.mxu1 %v6707_v11 }
0x1be3   :  { %6904 = vmatprep.subr.mxu0 %v6703_v56  ;;  %8612 = vmatprep.subr.mxu1 %v9214_v1 }
0x1be4   :  { %6905 = vmatpush1.msra.mxu0 %v6702_v9  ;;  %6938 = vmatprep.mubr.f32.mxu0 %v9214_v1 }
0x1be5   :  { %8613 = vmatpush3.msra.mxu1 %v6704_v34  ;;  %8614 = vmatprep.mubr.msk.f32.mxu1 %vm9215_vm1, %v9214_v1 }
0x1be6   :  { %7532 = vmatmul.mubr.msk.f32.vlgmr.msra.gmra.mxu0 %vm467_vm5, %v10405_v32  ;;  %8615 = vmatmul.mubr.msk.f32.vlgmr.msra.gmra.mxu1 %vm467_vm5, %v10405_v32  ;;  %v7028_v32 = vrot.slane %v7015_v41, %v7027_v57 }
0x1c9d   :  { %v6870_v12 = vpop.f32.mrf.mxu1  ;;  %v6799_v40 = vpop.f32.mrf.mxu0 }
0x1c9f   :  { %v8605_v39 = vpop.f32.mrf.mxu1  ;;  %v6801_v55 = vpop.f32.mrf.mxu0 }
0x1ca6   :  { %v6940_v49 = vpop.f32.mrf.mxu0  ;;  %v7011_v52 = vpop.f32.mrf.mxu1 }
0x1ca7   :  { %v6941_v53 = vadd.f32 %v6940_v49, %v6799_v40  ;;  %v7012_v3 = vadd.f32 %v7011_v52, %v6870_v12 }
0x1ca8   :  { %v6942_v60 = vpop.f32.mrf.mxu0  ;;  %v8616_v62 = vpop.f32.mrf.mxu1 }
0x1ca9   :  { %v7032_v0 = vadd.f32 %v7020_v46, %v6941_v53  ;;  %v6943_v63 = vadd.f32 %v6942_v60, %v6801_v55  ;;  %v7034_v10 = vadd.f32 %v7028_v32, %v7012_v3 }
0x1cab   :  { %v7033_v5 = vadd.f32 %v7024_v42, %v6943_v63  ;;  %v7035_v6 = vsel %vm309_vm0, %v7032_v0, -inf  ;;  %v7205_v33 = vsel %vm309_vm0, %v7034_v10, -inf }
0x1cac   :  { %7036 = vmax.xlane.f32.xlu0 %v7035_v6 }
0x1cad   :  { %v7120_v7 = vsel %vm309_vm0, %v7033_v5, -inf }
0x1cb0   :  { %7121 = vmax.xlane.f32.xlu0 %v7120_v7 }
0x1cb4   :  { %7206 = vmax.xlane.f32.xlu0 %v7205_v33 }
0x1d35   :  { %v7037_v4 = vpop.xlane.xlu0 %7036 }
0x1d36   :  { %v7038_v13 = vsub.f32 %v7032_v0, %v7037_v4  ;;  %vm7073_vm1 = vcmp.ge.f32.partialorder %v7032_v0, %v7037_v4 }
0x1d37   :  { %v7074_v8 = vsel %vm7073_vm1, %v9451_v15, 128 }
0x1d38   :  { %v7039_v54 = vmul.f32 1.442695, %v7038_v13  ;;  %v7075_v59 = vsel %vm309_vm0, %v7074_v8, 2147483647 }
0x1d39   :  { %v7122_v35 = vpop.xlane.xlu0 %7121  ;;  %v7077_v14 = vshra.s32 %v7075_v59, 16  ;;  %v7076_v61 = vand.u32 65535, %v7075_v59 }
0x1d3a   :  { %8876 = vpow2.f32 %v7039_v54  ;;  %v7123_v58 = vsub.f32 %v7033_v5, %v7122_v35  ;;  %vm7158_vm5 = vcmp.ge.f32.partialorder %v7033_v5, %v7122_v35 }
0x1d3b   :  { %v7159_v19 = vsel %vm7158_vm5, %v9451_v15, 128  ;;  %v7079_v21 = vcvt.s32.f32 %v7077_v14  ;;  %v7078_v24 = vcvt.s32.f32 %v7076_v61 }
0x1d3c   :  { %v7124_v22 = vmul.f32 1.442695, %v7123_v58  ;;  %v7160_v25 = vsel %vm309_vm0, %v7159_v19, 2147483647 }
0x1d3d   :  { %7080 = vmin.xlane.f32.xlu1 %v7079_v21  ;;  %v7207_v37 = vpop.xlane.xlu0 %7206  ;;  %v7162_v38 = vshra.s32 %v7160_v25, 16  ;;  %v7161_v17 = vand.u32 65535, %v7160_v25 }
0x1d3e   :  { %8878 = vpow2.f32 %v7124_v22  ;;  %v7208_v27 = vsub.f32 %v7034_v10, %v7207_v37  ;;  %vm7243_vm7 = vcmp.ge.f32.partialorder %v7034_v10, %v7207_v37 }
0x1d3f   :  { %v7244_v44 = vsel %vm7243_vm7, %v9451_v15, 128  ;;  %v7164_v45 = vcvt.s32.f32 %v7162_v38  ;;  %8880 = vpow2.f32 %v6087_v23  ;;  %v7163_v9 = vcvt.s32.f32 %v7161_v17 }
0x1d40   :  { %v7209_v18 = vmul.f32 1.442695, %v7208_v27  ;;  %v7245_v20 = vsel %vm309_vm0, %v7244_v44, 2147483647 }
0x1d41   :  { %7165 = vmin.xlane.f32.xlu0 %v7164_v45  ;;  %v7247_v47 = vshra.s32 %v7245_v20, 16  ;;  %v7246_v34 = vand.u32 65535, %v7245_v20 }
0x1d42   :  { %8882 = vpow2.f32 %v7209_v18 }
0x1d43   :  { %v7249_v43 = vcvt.s32.f32 %v7247_v47  ;;  %v7248_v40 = vcvt.s32.f32 %v7246_v34 }
0x1d45   :  { %7250 = vmin.xlane.f32.xlu1 %v7249_v43 }
0x1d47   :  { %v8877_v28 = vpop.eup %8876 }
0x1d48   :  { %v7041_v30 = vsel %vm309_vm0, %v8877_v28, 0.0 }
0x1d49   :  { %7042 = vadd.xlane.f32.xlu0 %v7041_v30 }
0x1d4b   :  { %v8879_v36 = vpop.eup %8878 }
0x1d4c   :  { %v7126_v26 = vsel %vm309_vm0, %v8879_v36, 0.0  ;;  %v8881_v31 = vpop.eup %8880 }
0x1d4d   :  { %7127 = vadd.xlane.f32.xlu1 %v7126_v26  ;;  %v6089_v50 = vsel %vm309_vm0, %v8881_v31, 0.0 }
0x1d4f   :  { %v8883_v29 = vpop.eup %8882 }
0x1d50   :  { %v7211_v51 = vsel %vm309_vm0, %v8883_v29, 0.0 }
0x1d51   :  { %6090 = vadd.xlane.f32.xlu1 %v6089_v50  ;;  %7212 = vadd.xlane.f32.xlu0 %v7211_v51 }
0x1dc6   :  { %v7081_v2 = vpop.xlane.xlu1 %7080 }
0x1dc7   :  { %vm7082_vm13 = vcmp.eq.f32.partialorder %v7079_v21, %v7081_v2 }
0x1dc8   :  { %v7083_v11 = vsel %vm7082_vm13, %v7078_v24, inf }
0x1dc9   :  { %7084 = vmin.xlane.f32.xlu0 %v7083_v11 }
0x1dca   :  { %v7166_v56 = vpop.xlane.xlu0 %7165 }
0x1dcb   :  { %vm7167_vm14 = vcmp.eq.f32.partialorder %v7164_v45, %v7166_v56 }
0x1dcc   :  { %v7168_v12 = vsel %vm7167_vm14, %v7163_v9, inf }
0x1dcd   :  { %7169 = vmin.xlane.f32.xlu1 %v7168_v12 }
0x1dce   :  { %v7251_v39 = vpop.xlane.xlu1 %7250 }
0x1dcf   :  { %vm7252_vm15 = vcmp.eq.f32.partialorder %v7249_v43, %v7251_v39 }
0x1dd0   :  { %v7253_v41 = vsel %vm7252_vm15, %v7248_v40, inf }
0x1dd1   :  { %7254 = vmin.xlane.f32.xlu0 %v7253_v41 }
0x1dd2   :  { %v7043_v55 = vpop.xlane.xlu0 %7042 }
0x1dd3   :  { %8884 = vrcp.f32 %v7043_v55 }
0x1dd6   :  { %v7128_v46 = vpop.xlane.xlu1 %7127 }
0x1dd7   :  { %8886 = vrcp.f32 %v7128_v46 }
0x1dda   :  { %v6091_v49 = vpop.xlane.xlu1 %6090  ;;  %v7213_v52 = vpop.xlane.xlu0 %7212 }
0x1ddb   :  { %8888 = vrcp.f32 %v6091_v49 }
0x1ddc   :  { %8890 = vrcp.f32 %v7213_v52 }
0x1de0   :  { %v8885_v53 = vpop.eup %8884 }
0x1de1   :  { %v7045_v57 = vmul.f32 %v8885_v53, %v8877_v28 }
0x1de3   :  { %v7053_v42 = vrot.slane %v7045_v57, %v10153_v16 }
0x1de4   :  { %v8887_v60 = vpop.eup %8886 }
0x1de5   :  { %v7054_v62 = vcombine.high %v7053_v42, %v7053_v42  ;;  %7534 = vst.sshfl [vmem:[%s9368_s21] sm:$0x1 pattern:$0x73625140] %v7053_v42  ;;  %v7130_v0 = vmul.f32 %v8887_v60, %v8879_v36 }
0x1de7   :  { %7535 = vst.sshfl [vmem:[%s9368_s21 + $0x4] sm:$0x1 pattern:$0x73625140] %v7054_v62  ;;  %v7138_v63 = vrot.slane %v7130_v0, %v10153_v16 }
0x1de8   :  { %v8889_v3 = vpop.eup %8888 }
0x1de9   :  { %v8891_v32 = vpop.eup %8890  ;;  %v7139_v5 = vcombine.high %v7138_v63, %v7138_v63  ;;  %7539 = vst.sshfl [vmem:[%s9368_s21 + $0x1] sm:$0x1 pattern:$0x73625140] %v7138_v63  ;;  %v6093_v6 = vmul.f32 %v8889_v3, %v8881_v31 }
0x1dea   :  { %v7215_v10 = vmul.f32 %v8891_v32, %v8883_v29 }
0x1deb   :  { %7540 = vst.sshfl [vmem:[%s9368_s21 + $0x5] sm:$0x1 pattern:$0x73625140] %v7139_v5  ;;  %6094 = vst [vmem:[#allocation23] sm:$0x3] %v6093_v6 }
0x1dec   :  { %v7223_v7 = vrot.slane %v7215_v10, %v10153_v16 }
0x1ded   :  { %9146 = shalt.err (!%p9143_p3)
}
0x1dee   :  { %7299 = dma.vmem_to_hbm [thread:$0]  %s7297_s1, 32, %s9363_s20, [#allocation5]   ;;  %v7224_v33 = vcombine.high %v7223_v7, %v7223_v7  ;;  %7544 = vst.sshfl [vmem:[%s9368_s21 + $0x2] sm:$0x1 pattern:$0x73625140] %v7223_v7  ;;  %v7087_v4 = vcvt.f32.s32 %v7081_v2  ;;  %v7172_v48 = vcvt.f32.s32 %v7166_v56  ;;  %v7257_v58 = vcvt.f32.s32 %v7251_v39 }
0x1df0   :  { %7545 = vst.sshfl [vmem:[%s9368_s21 + $0x6] sm:$0x1 pattern:$0x73625140] %v7224_v33  ;;  %v7088_v8 = vshll.u32 %v7087_v4, 16  ;;  %v7173_v14 = vshll.u32 %v7172_v48, 16 }
0x1df1   :  { %v7258_v37 = vshll.u32 %v7257_v58, 16 }
0x1e52   :  { %v7085_v13 = vpop.xlane.xlu0 %7084 }
0x1e53   :  { %v7086_v54 = vcvt.f32.s32 %v7085_v13 }
0x1e55   :  { %v7089_v59 = vadd.s32 %v7088_v8, %v7086_v54 }
0x1e56   :  { %v7170_v35 = vpop.xlane.xlu1 %7169 }
0x1e57   :  { %vm7090_vm0 = vcmp.eq.s32.totalorder %v9451_v15, %v7089_v59  ;;  %v7171_v19 = vcvt.f32.s32 %v7170_v35 }
0x1e58   :  { %v7536_v21 = vsel %vm7090_vm0, 1.0, %v9214_v1 }
0x1e59   :  { %v7100_v23 = vrot.slane %v7536_v21, %v10153_v16  ;;  %v7174_v22 = vadd.s32 %v7173_v14, %v7171_v19 }
0x1e5a   :  { %v7255_v25 = vpop.xlane.xlu0 %7254 }
0x1e5b   :  { %v7101_v38 = vcombine.high %v7100_v23, %v7100_v23  ;;  %7537 = vst.sshfl [vmem:[%s9373_s25] sm:$0x1 pattern:$0x73625140] %v7100_v23  ;;  %vm7175_vm2 = vcmp.eq.s32.totalorder %v9451_v15, %v7174_v22  ;;  %v7256_v27 = vcvt.f32.s32 %v7255_v25 }
0x1e5c   :  { %v7541_v44 = vsel %vm7175_vm2, 1.0, %v9214_v1 }
0x1e5d   :  { %7538 = vst.sshfl [vmem:[%s9373_s25 + $0x4] sm:$0x1 pattern:$0x73625140] %v7101_v38  ;;  %v7185_v45 = vrot.slane %v7541_v44, %v10153_v16  ;;  %v7259_v18 = vadd.s32 %v7258_v37, %v7256_v27 }
0x1e5f   :  { %v7186_v20 = vcombine.high %v7185_v45, %v7185_v45  ;;  %7542 = vst.sshfl [vmem:[%s9373_s25 + $0x1] sm:$0x1 pattern:$0x73625140] %v7185_v45  ;;  %vm7260_vm3 = vcmp.eq.s32.totalorder %v9451_v15, %v7259_v18 }
0x1e60   :  { %v7546_v47 = vsel %vm7260_vm3, 1.0, %v9214_v1 }
0x1e61   :  { %7543 = vst.sshfl [vmem:[%s9373_s25 + $0x5] sm:$0x1 pattern:$0x73625140] %v7186_v20  ;;  %v7270_v43 = vrot.slane %v7546_v47, %v10153_v16 }
0x1e63   :  { %v7271_v28 = vcombine.high %v7270_v43, %v7270_v43  ;;  %7547 = vst.sshfl [vmem:[%s9373_s25 + $0x2] sm:$0x1 pattern:$0x73625140] %v7270_v43 }
0x1e65   :  { %7548 = vst.sshfl [vmem:[%s9373_s25 + $0x6] sm:$0x1 pattern:$0x73625140] %v7271_v28 }
0x1e66   :  { %9169 = dma.done.wait [#allocation5], 32  }
0x1e67   :  { %9170 = vsyncadd [#allocation5], 4294967264 }
0x1e68   :  { %7311 = vsyncpa [#allocation4], 1 }
0x1e69   :  { %7312 = vsyncpa [#allocation8], 1 }
0x1e6a   :  { %7313 = vsyncpa [#allocation11], 1 }
0x1e6b   :  { %7314 = vsyncpa [#allocation14], 1 }
0x1e6c   :  { %7315 = vsyncpa [#allocation17], 1 }
0x1e6d   :  { %7316 = vsyncpa [#allocation20], 1 }
0x1e6e   :  { %7317 = vsyncpa [#allocation5], 1 }
0x1e6f   :  { %7318 = vsyncpa [#allocation6], 1 }

</bundles_post_ra>
